<compile_context>
chip_gen: v5e
topology: v5e:2x2
jax: 0.10.0
libtpu: 0.0.40
codegen_flags: <defaults>
</compile_context>

<pallas_src>
import functools

import jax
import jax.numpy as jnp
from jax import lax
from jax.experimental import pallas as pl
from jax.experimental.pallas import tpu as pltpu

_EPS = 1e-5
_NEG_INF = -1e9


# ------------------------------- helpers -----------------------------------

@functools.lru_cache(maxsize=None)
def _vmem_limit_bytes():
    """Per-generation scoped-VMEM budget (v7x only has 64 MiB physical)."""
    try:
        cap = int(pltpu.get_tpu_info().vmem_capacity_bytes)
    except Exception:
        cap = 64 * 1024 * 1024
    return min((cap * 3) // 4, 64 * 1024 * 1024)


@functools.lru_cache(maxsize=None)
def _single_buffer_weights_supported():
    """Probe whether BlockSpec(pipeline_mode=pl.Buffered(1)) works here."""
    try:
        def _copy(x_ref, o_ref):
            o_ref[...] = x_ref[...]
        x = jnp.zeros((8, 128), jnp.float32)
        out = pl.pallas_call(
            _copy,
            out_shape=jax.ShapeDtypeStruct((8, 128), jnp.float32),
            grid=(2,),
            in_specs=[pl.BlockSpec((8, 128), lambda i: (0, 0),
                                   pipeline_mode=pl.Buffered(1))],
            out_specs=pl.BlockSpec((8, 128), lambda i: (0, 0)),
        )(x)
        jax.block_until_ready(out)
        return True
    except Exception:
        return False


def _const_spec(arr):
    """Whole-array, grid-invariant BlockSpec; single-buffered when supported."""
    index_map = lambda *_: (0,) * arr.ndim
    if _single_buffer_weights_supported():
        return pl.BlockSpec(arr.shape, index_map, pipeline_mode=pl.Buffered(1))
    return pl.BlockSpec(arr.shape, index_map)


def _cparams(semantics):
    return pltpu.CompilerParams(dimension_semantics=semantics,
                                vmem_limit_bytes=_vmem_limit_bytes())


def _choose_seq_tile(seq_len, target=256):
    t = min(seq_len, max(8, target))
    for cand in range(t, 7, -1):
        if seq_len % cand == 0 and cand % 8 == 0:
            return cand
    return seq_len


def _layer_norm(x, g, b, eps=_EPS):
    mu = jnp.mean(x, axis=-1, keepdims=True)
    var = jnp.mean(jnp.square(x - mu), axis=-1, keepdims=True)
    return (x - mu) * lax.rsqrt(var + eps) * g + b


# ----------------------------- Pallas kernels -------------------------------

def _layer_kernel(x_ref, mask_ref, ln1g_ref, ln1b_ref, wq_ref, bq_ref,
                  wkv_ref, bkv_ref, wo_ref, bo_ref, ln2g_ref, ln2b_ref,
                  w1_ref, b1_ref, w2_ref, b2_ref, out_ref, k_sc, v_sc,
                  *, num_heads, head_dim, q_tile):
    """One fused transformer layer for a (batch, q-tile) grid cell.

    K/V for the full sequence are computed once per batch element (qi == 0)
    and kept in VMEM scratch; scores / softmax / context never leave VMEM and
    the context stays head-packed so the output projection is one K=D matmul.
    """
    qi = pl.program_id(1)
    d_model = num_heads * head_dim

    @pl.when(qi == 0)
    def _():
        h_full = _layer_norm(x_ref[0].astype(jnp.float32),
                             ln1g_ref[...], ln1b_ref[...])
        kv = jnp.dot(h_full.astype(jnp.bfloat16), wkv_ref[...],
                     preferred_element_type=jnp.float32) + bkv_ref[...]
        k_sc[...] = kv[:, :d_model].astype(k_sc.dtype)
        v_sc[...] = kv[:, d_model:].astype(v_sc.dtype)

    # Q for this q-tile (wq / bq are pre-scaled by 1/sqrt(head_dim) on host).
    row0 = pl.multiple_of(qi * q_tile, q_tile)
    x_q = x_ref[0, pl.ds(row0, q_tile), :].astype(jnp.float32)
    h_q = _layer_norm(x_q, ln1g_ref[...], ln1b_ref[...])
    q = (jnp.dot(h_q.astype(jnp.bfloat16), wq_ref[...],
                 preferred_element_type=jnp.float32)
         + bq_ref[...]).astype(jnp.bfloat16)

    mask = mask_ref[0]                                       # (1, L) bias
    k = k_sc[...]
    v = v_sc[...]

    ctx_heads = []
    for h in range(num_heads):                               # static unroll
        lo = h * head_dim
        q_h = q[:, lo:lo + head_dim]
        k_h = k[:, lo:lo + head_dim]
        v_h = v[:, lo:lo + head_dim]
        s = lax.dot_general(q_h, k_h, (((1,), (1,)), ((), ())),
                            preferred_element_type=jnp.float32) + mask
        s_max = jnp.max(s, axis=-1, keepdims=True)
        p = jnp.exp(s - s_max)
        inv = pl.reciprocal(jnp.sum(p, axis=-1, keepdims=True), approx=True)
        p = (p * inv).astype(jnp.bfloat16)
        ctx_heads.append(jnp.dot(p, v_h, preferred_element_type=jnp.float32))
    ctx = jnp.concatenate(ctx_heads, axis=-1).astype(jnp.bfloat16)   # (TQ, D)

    attn = jnp.dot(ctx, wo_ref[...],
                   preferred_element_type=jnp.float32) + bo_ref[...]
    x_new = x_q + attn

    h2 = _layer_norm(x_new, ln2g_ref[...], ln2b_ref[...])
    f = jnp.dot(h2.astype(jnp.bfloat16), w1_ref[...],
                preferred_element_type=jnp.float32) + b1_ref[...]
    # TODO(synk): reference ESM uses exact (erf) GELU; tanh approximation kept
    # for robust Mosaic lowering (matches the pure-JAX reference below).
    f = jax.nn.gelu(f, approximate=True)
    f = jnp.dot(f.astype(jnp.bfloat16), w2_ref[...],
                preferred_element_type=jnp.float32) + b2_ref[...]
    out_ref[0] = (x_new + f).astype(out_ref.dtype)


def _lm_head_kernel(x_ref, g_ref, b_ref, w_ref, bias_ref, logits_ref,
                    hidden_ref=None):
    x = x_ref[0].astype(jnp.float32)                         # (TQ, D)
    h = _layer_norm(x, g_ref[...], b_ref[...])
    logits_ref[0] = (jnp.dot(h.astype(jnp.bfloat16), w_ref[...],
                             preferred_element_type=jnp.float32)
                     + bias_ref[...]).astype(logits_ref.dtype)
    if hidden_ref is not None:                               # trace-time branch
        hidden_ref[0] = h.astype(hidden_ref.dtype)


# ------------------------------ JAX wrappers --------------------------------

def _transformer_layer(x, mask_bias, lp, *, num_heads, q_tile):
    B, L, D = x.shape
    hd = D // num_heads
    kernel = functools.partial(_layer_kernel, num_heads=num_heads,
                               head_dim=hd, q_tile=q_tile)
    return pl.pallas_call(
        kernel,
        out_shape=jax.ShapeDtypeStruct((B, L, D), jnp.bfloat16),
        grid=(B, L // q_tile),
        in_specs=[pl.BlockSpec((1, L, D), lambda b, qi: (b, 0, 0)),
                  pl.BlockSpec((1, 1, L), lambda b, qi: (b, 0, 0)),
                  _const_spec(lp["ln1_g"]), _const_spec(lp["ln1_b"]),
                  _const_spec(lp["wq"]), _const_spec(lp["bq"]),
                  _const_spec(lp["wkv"]), _const_spec(lp["bkv"]),
                  _const_spec(lp["wo"]), _const_spec(lp["bo"]),
                  _const_spec(lp["ln2_g"]), _const_spec(lp["ln2_b"]),
                  _const_spec(lp["w1"]), _const_spec(lp["b1"]),
                  _const_spec(lp["w2"]), _const_spec(lp["b2"])],
        out_specs=pl.BlockSpec((1, q_tile, D), lambda b, qi: (b, qi, 0)),
        scratch_shapes=[pltpu.VMEM((L, D), jnp.bfloat16),   # K (head-packed)
                        pltpu.VMEM((L, D), jnp.bfloat16)],  # V (head-packed)
        compiler_params=_cparams(("parallel", "arbitrary")),
    )(x, mask_bias, lp["ln1_g"], lp["ln1_b"], lp["wq"], lp["bq"],
      lp["wkv"], lp["bkv"], lp["wo"], lp["bo"], lp["ln2_g"], lp["ln2_b"],
      lp["w1"], lp["b1"], lp["w2"], lp["b2"])


def _lm_head(x, fp, *, seq_tile, return_hidden):
    B, L, D = x.shape
    Vp = fp["w_lm"].shape[1]
    x_spec = pl.BlockSpec((1, seq_tile, D), lambda b, i: (b, i, 0))
    logits_spec = pl.BlockSpec((1, seq_tile, Vp), lambda b, i: (b, i, 0))
    if return_hidden:
        out_shape = (jax.ShapeDtypeStruct((B, L, Vp), jnp.float32),
                     jax.ShapeDtypeStruct((B, L, D), jnp.float32))
        out_specs = (logits_spec,
                     pl.BlockSpec((1, seq_tile, D), lambda b, i: (b, i, 0)))
    else:
        out_shape = jax.ShapeDtypeStruct((B, L, Vp), jnp.float32)
        out_specs = logits_spec
    return pl.pallas_call(
        _lm_head_kernel,
        out_shape=out_shape,
        grid=(B, L // seq_tile),
        in_specs=[x_spec,
                  _const_spec(fp["lnf_g"]), _const_spec(fp["lnf_b"]),
                  _const_spec(fp["w_lm"]), _const_spec(fp["b_lm"])],
        out_specs=out_specs,
        compiler_params=_cparams(("parallel", "parallel")),
    )(x, fp["lnf_g"], fp["lnf_b"], fp["w_lm"], fp["b_lm"])


@functools.partial(jax.jit, static_argnames=("num_heads", "q_tile",
                                             "vocab_size", "pad_id",
                                             "return_hidden"))
def _forward_impl(fast, tok_emb, pos_emb, input_ids, *, num_heads, q_tile,
                  vocab_size, pad_id, return_hidden):
    L = input_ids.shape[1]
    # glue (outside Pallas): embedding gather + positional add + pad mask
    x = (jnp.take(tok_emb, input_ids, axis=0)
         + pos_emb[None, :L, :]).astype(jnp.bfloat16)
    mask_bias = jnp.where(input_ids == pad_id, _NEG_INF,
                          0.0).astype(jnp.float32)[:, None, :]   # (B, 1, L)
    for lp in fast["layers"]:
        x = _transformer_layer(x, mask_bias, lp, num_heads=num_heads,
                               q_tile=q_tile)
    if return_hidden:
        logits_pad, hidden = _lm_head(x, fast, seq_tile=q_tile,
                                      return_hidden=True)
        return logits_pad[..., :vocab_size], hidden
    logits_pad = _lm_head(x, fast, seq_tile=q_tile, return_hidden=False)
    return logits_pad[..., :vocab_size]


# --------------------------- parameters & model -----------------------------

def init_params(key, vocab, d, ffn, layers, max_len):
    ks = jax.random.split(key, 3 + layers)

    def dense(k, fi, fo):
        return jax.random.normal(k, (fi, fo), jnp.float32) * 0.02

    params = {
        "tok_emb": jax.random.normal(ks[0], (vocab, d), jnp.float32) * 0.02,
        "pos_emb": jax.random.normal(ks[1], (max_len, d), jnp.float32) * 0.02,
        "lnf_g": jnp.ones((1, d), jnp.float32),
        "lnf_b": jnp.zeros((1, d), jnp.float32),
        "w_lm": dense(ks[2], d, vocab),
        "b_lm": jnp.zeros((1, vocab), jnp.float32),
        "layers": [],
    }
    for i in range(layers):
        lk = jax.random.split(ks[3 + i], 6)
        params["layers"].append({
            "ln1_g": jnp.ones((1, d), jnp.float32),
            "ln1_b": jnp.zeros((1, d), jnp.float32),
            "wq": dense(lk[0], d, d), "bq": jnp.zeros((1, d), jnp.float32),
            "wk": dense(lk[1], d, d), "bk": jnp.zeros((1, d), jnp.float32),
            "wv": dense(lk[2], d, d), "bv": jnp.zeros((1, d), jnp.float32),
            "wo": dense(lk[3], d, d), "bo": jnp.zeros((1, d), jnp.float32),
            "ln2_g": jnp.ones((1, d), jnp.float32),
            "ln2_b": jnp.zeros((1, d), jnp.float32),
            "w1": dense(lk[4], d, ffn), "b1": jnp.zeros((1, ffn), jnp.float32),
            "w2": dense(lk[5], ffn, d), "b2": jnp.zeros((1, d), jnp.float32),
        })
    return params


def _prepare_fast_params(params, *, num_heads, vocab_size):
    """bf16 matmul weights, fused KV, pre-scaled Q, lane-padded LM head."""
    d = params["tok_emb"].shape[1]
    hd = d // num_heads
    scale = 1.0 / float(hd) ** 0.5
    vpad = ((vocab_size + 127) // 128) * 128
    fast = {
        "lnf_g": params["lnf_g"], "lnf_b": params["lnf_b"],
        "w_lm": jnp.zeros((d, vpad), jnp.bfloat16).at[:, :vocab_size].set(
            params["w_lm"].astype(jnp.bfloat16)),
        "b_lm": jnp.zeros((1, vpad), jnp.float32).at[:, :vocab_size].set(
            params["b_lm"]),
        "layers": [],
    }
    for lp in params["layers"]:
        fast["layers"].append({
            "ln1_g": lp["ln1_g"], "ln1_b": lp["ln1_b"],
            # 1/sqrt(hd) folded into the Q projection
            "wq": (lp["wq"] * scale).astype(jnp.bfloat16),
            "bq": lp["bq"] * scale,
            "wkv": jnp.concatenate([lp["wk"], lp["wv"]],
                                   axis=1).astype(jnp.bfloat16),
            "bkv": jnp.concatenate([lp["bk"], lp["bv"]], axis=1),
            "wo": lp["wo"].astype(jnp.bfloat16), "bo": lp["bo"],
            "ln2_g": lp["ln2_g"], "ln2_b": lp["ln2_b"],
            "w1": lp["w1"].astype(jnp.bfloat16), "b1": lp["b1"],
            "w2": lp["w2"].astype(jnp.bfloat16), "b2": lp["b2"],
        })
    return fast


class EvoFlowPallas:
    """forward(input_ids) -> logits [B, L, V] (optionally + last_hidden_state)."""

    def __init__(self, vocab_size=16, d_model=64, num_heads=4, ffn_dim=128,
                 num_layers=2, max_len=64, seq_tile=256, seed=0):
        assert d_model % num_heads == 0
        # ESM-style special token ids (mirrors self.alphabet.* in the module)
        self.bos_id, self.pad_id, self.eos_id, self.x_id = 0, 1, 2, 3
        self.mask_id = vocab_size - 1
        self.vocab_size = vocab_size
        self.num_heads = num_heads
        self.seq_tile = seq_tile
        self.params = init_params(jax.random.PRNGKey(seed), vocab_size,
                                  d_model, ffn_dim, num_layers, max_len)
        self.fast = _prepare_fast_params(self.params, num_heads=num_heads,
                                         vocab_size=vocab_size)
        _single_buffer_weights_supported()   # probe once, eagerly
        # TODO(synk): at real dRNA-FM scale (d~1280, ffn~5120) the resident FFN
        # weights need K-tiling with an extra grid axis to stay inside v7x's
        # 64 MiB VMEM; at demo sizes whole-array residency is fine.

    def __call__(self, input_ids, return_last_hidden_state=False):
        L = input_ids.shape[1]
        t = _choose_seq_tile(L, self.seq_tile)
        return _forward_impl(self.fast, self.params["tok_emb"],
                             self.params["pos_emb"], input_ids,
                             num_heads=self.num_heads, q_tile=t,
                             vocab_size=self.vocab_size, pad_id=self.pad_id,
                             return_hidden=return_last_hidden_state)

    # TODO(synk): decode()/sample() are host-side string decoding + iterative
    # ancestral-sampling loops over the external tokenizer; no Pallas equivalent.


# ------------------------------ pure-JAX ref --------------------------------

def _reference_forward(params, input_ids, *, num_heads, pad_id, eps=_EPS):
    B, L = input_ids.shape
    x = (jnp.take(params["tok_emb"], input_ids, axis=0)
         + params["pos_emb"][None, :L, :]).astype(jnp.float32)
    D = x.shape[-1]
    hd = D // num_heads
    bias = jnp.where(input_ids == pad_id, _NEG_INF, 0.0)[:, None, None, :]

    def ln(v, g, b):
        mu = jnp.mean(v, axis=-1, keepdims=True)
        var = jnp.mean(jnp.square(v - mu), axis=-1, keepdims=True)
        return (v - mu) * lax.rsqrt(var + eps) * g + b

    def split(a):
        return a.reshape(B, L, num_heads, hd).transpose(0, 2, 1, 3)

    for lp in params["layers"]:
        h = ln(x, lp["ln1_g"], lp["ln1_b"])
        q = split(h @ lp["wq"] + lp["bq"])
        k = split(h @ lp["wk"] + lp["bk"])
        v = split(h @ lp["wv"] + lp["bv"])
        s = jnp.einsum("bhqd,bhkd->bhqk", q, k) / (hd ** 0.5) + bias
        pattn = jax.nn.softmax(s, axis=-1)
        ctx = jnp.einsum("bhqk,bhkd->bhqd", pattn, v)
        ctx = ctx.transpose(0, 2, 1, 3).reshape(B, L, D)
        x = x + ctx @ lp["wo"] + lp["bo"]
        h2 = ln(x, lp["ln2_g"], lp["ln2_b"])
        f = jax.nn.gelu(h2 @ lp["w1"] + lp["b1"], approximate=True)
        x = x + f @ lp["w2"] + lp["b2"]

    h = ln(x, params["lnf_g"], params["lnf_b"])
    return h @ params["w_lm"] + params["b_lm"], h


if __name__ == "__main__":
    B, L = 2, 64
    V, D, H, F, NL = 16, 64, 4, 128, 2

    model = EvoFlowPallas(vocab_size=V, d_model=D, num_heads=H, ffn_dim=F,
                          num_layers=NL, max_len=L, seed=0)

    key = jax.random.PRNGKey(0)
    body = jax.random.randint(key, (B, L - 2), minval=4, maxval=V,
                              dtype=jnp.int32)
    input_ids = jnp.concatenate(
        [jnp.full((B, 1), model.bos_id, jnp.int32),
         body,
         jnp.full((B, 1), model.eos_id, jnp.int32)], axis=1)
    # pad the tail of the second sequence to exercise the key mask
    input_ids = input_ids.at[1, -12:].set(model.pad_id)

    logits, hidden = model(input_ids, return_last_hidden_state=True)
    logits_only = model(input_ids)
    jax.block_until_ready((logits, hidden, logits_only))

    assert logits.shape == (B, L, V), logits.shape
    assert hidden.shape == (B, L, D), hidden.shape
    assert logits_only.shape == (B, L, V), logits_only.shape
    assert bool(jnp.all(jnp.isfinite(logits)))
    assert bool(jnp.all(jnp.isfinite(hidden)))

    ref_logits, ref_hidden = _reference_forward(
        model.params, input_ids, num_heads=H, pad_id=model.pad_id)
    assert float(jnp.max(jnp.abs(logits - ref_logits))) < 5e-2
    assert float(jnp.max(jnp.abs(hidden - ref_hidden))) < 1e-1
    assert float(jnp.max(jnp.abs(logits_only - logits))) < 1e-3

    # exercise the multi-q-tile path (scratch K/V reused across q tiles)
    model_small_tile = EvoFlowPallas(vocab_size=V, d_model=D, num_heads=H,
                                     ffn_dim=F, num_layers=NL, max_len=L,
                                     seq_tile=32, seed=0)
    logits_t32 = model_small_tile(input_ids)
    jax.block_until_ready(logits_t32)
    assert float(jnp.max(jnp.abs(logits_t32 - logits))) < 1e-2

    print("KERNEL_OK")
</pallas_src>

<mosaic_0001>
module attributes {stable_mosaic.version = 11 : i64} {
  func.func @_copy(%arg0: i32, %arg1: memref<8x128xf32, #tpu.memory_space<vmem>>, %arg2: memref<8x128xf32, #tpu.memory_space<vmem>>) attributes {dimension_semantics = [#tpu.dimension_semantics<arbitrary>], iteration_bounds = array<i64: 2>, scalar_prefetch = 0 : i64, scratch_operands = 0 : i64, tpu.core_type = #tpu.core_type<tc>, window_params = [{pipeline_mode = #tpu.pipeline_mode<synchronous>, transform_indices = @transform_0, window_bounds = array<i64: 8, 128>}, {pipeline_mode = #tpu.pipeline_mode<synchronous>, transform_indices = @transform_1, window_bounds = array<i64: 8, 128>}]} {
    %c0 = arith.constant 0 : index
    %c0_0 = arith.constant 0 : index
    %0 = vector.load %arg1[%c0, %c0_0] : memref<8x128xf32, #tpu.memory_space<vmem>>, vector<8x128xf32>
    %c0_1 = arith.constant 0 : index
    %c0_2 = arith.constant 0 : index
    %1 = vector.load %arg2[%c0_1, %c0_2] : memref<8x128xf32, #tpu.memory_space<vmem>>, vector<8x128xf32>
    tpu.vector_store %arg2[%c0_1, %c0_2], %0 {strides = array<i32>} : memref<8x128xf32, #tpu.memory_space<vmem>>, vector<8x128xf32>,
    return
  }
  func.func @transform_0(%arg0: i32) -> (i32, i32) {
    %c0_i32 = arith.constant 0 : i32
    %c0_i32_0 = arith.constant 0 : i32
    %c0_i32_1 = arith.constant 0 : i32
    return %c0_i32, %c0_i32_0 : i32, i32
  }
  func.func @transform_1(%arg0: i32) -> (i32, i32) {
    %c0_i32 = arith.constant 0 : i32
    %c0_i32_0 = arith.constant 0 : i32
    %c0_i32_1 = arith.constant 0 : i32
    return %c0_i32, %c0_i32_0 : i32, i32
  }
}

module attributes {stable_mosaic.version = 11 : i64} {
  func.func @_lm_head_kernel(%arg0: i32, %arg1: i32, %arg2: memref<1x64x64xbf16, #tpu.memory_space<vmem>>, %arg3: memref<1x64xf32, #tpu.memory_space<vmem>>, %arg4: memref<1x64xf32, #tpu.memory_space<vmem>>, %arg5: memref<64x128xbf16, #tpu.memory_space<vmem>>, %arg6: memref<1x128xf32, #tpu.memory_space<vmem>>, %arg7: memref<1x64x128xf32, #tpu.memory_space<vmem>>, %arg8: memref<1x64x64xf32, #tpu.memory_space<vmem>>) attributes {dimension_semantics = [#tpu.dimension_semantics<parallel>, #tpu.dimension_semantics<parallel>], iteration_bounds = array<i64: 2, 1>, scalar_prefetch = 0 : i64, scratch_operands = 0 : i64, tpu.core_type = #tpu.core_type<tc>, window_params = [{transform_indices = @transform_0, window_bounds = array<i64: 1, 64, 64>}, {pipeline_mode = #tpu.pipeline_mode<synchronous>, transform_indices = @transform_1, window_bounds = array<i64: 1, 64>}, {pipeline_mode = #tpu.pipeline_mode<synchronous>, transform_indices = @transform_2, window_bounds = array<i64: 1, 64>}, {pipeline_mode = #tpu.pipeline_mode<synchronous>, transform_indices = @transform_3, window_bounds = array<i64: 64, 128>}, {pipeline_mode = #tpu.pipeline_mode<synchronous>, transform_indices = @transform_4, window_bounds = array<i64: 1, 128>}, {transform_indices = @transform_5, window_bounds = array<i64: 1, 64, 128>}, {transform_indices = @transform_6, window_bounds = array<i64: 1, 64, 64>}]} {
    %c0 = arith.constant 0 : index
    %c0_0 = arith.constant 0 : index
    %c0_1 = arith.constant 0 : index
    %0 = vector.load %arg2[%c0, %c0_0, %c0_1] : memref<1x64x64xbf16, #tpu.memory_space<vmem>>, vector<1x64x64xbf16>
    %1 = vector.shape_cast %0 : vector<1x64x64xbf16> to vector<64x64xbf16>
    %2 = arith.extf %1 : vector<64x64xbf16> to vector<64x64xf32>
    %c0_2 = arith.constant 0 : index
    %c0_3 = arith.constant 0 : index
    %3 = vector.load %arg3[%c0_2, %c0_3] : memref<1x64xf32, #tpu.memory_space<vmem>>, vector<1x64xf32>
    %c0_4 = arith.constant 0 : index
    %c0_5 = arith.constant 0 : index
    %4 = vector.load %arg4[%c0_4, %c0_5] : memref<1x64xf32, #tpu.memory_space<vmem>>, vector<1x64xf32>
    %cst = arith.constant dense<0.000000e+00> : vector<64xf32>
    %5 = vector.multi_reduction <add>, %2, %cst [1] : vector<64x64xf32> to vector<64xf32>
    %6 = vector.shape_cast %5 : vector<64xf32> to vector<64x1xf32>
    %cst_6 = arith.constant 6.400000e+01 : f32
    %7 = vector.broadcast %cst_6 : f32 to vector<64x1xf32>
    %8 = arith.divf %6, %7 : vector<64x1xf32>
    %9 = vector.broadcast %8 : vector<64x1xf32> to vector<64x64xf32>
    %10 = arith.subf %2, %9 : vector<64x64xf32>
    %11 = arith.mulf %10, %10 : vector<64x64xf32>
    %cst_7 = arith.constant dense<0.000000e+00> : vector<64xf32>
    %12 = vector.multi_reduction <add>, %11, %cst_7 [1] : vector<64x64xf32> to vector<64xf32>
    %13 = vector.shape_cast %12 : vector<64xf32> to vector<64x1xf32>
    %cst_8 = arith.constant 6.400000e+01 : f32
    %14 = vector.broadcast %cst_8 : f32 to vector<64x1xf32>
    %15 = arith.divf %13, %14 : vector<64x1xf32>
    %16 = vector.broadcast %8 : vector<64x1xf32> to vector<64x64xf32>
    %17 = arith.subf %2, %16 : vector<64x64xf32>
    %cst_9 = arith.constant 9.99999974E-6 : f32
    %18 = vector.broadcast %cst_9 : f32 to vector<64x1xf32>
    %19 = arith.addf %15, %18 : vector<64x1xf32>
    %20 = math.rsqrt %19 : vector<64x1xf32>
    %21 = vector.broadcast %20 : vector<64x1xf32> to vector<64x64xf32>
    %22 = arith.mulf %17, %21 : vector<64x64xf32>
    %23 = vector.broadcast %3 : vector<1x64xf32> to vector<64x64xf32>
    %24 = arith.mulf %22, %23 : vector<64x64xf32>
    %25 = vector.broadcast %4 : vector<1x64xf32> to vector<64x64xf32>
    %26 = arith.addf %24, %25 : vector<64x64xf32>
    %27 = arith.truncf %26 : vector<64x64xf32> to vector<64x64xbf16>
    %c0_10 = arith.constant 0 : index
    %c0_11 = arith.constant 0 : index
    %28 = vector.load %arg5[%c0_10, %c0_11] : memref<64x128xbf16, #tpu.memory_space<vmem>>, vector<64x128xbf16>
    %cst_12 = arith.constant dense<0.000000e+00> : vector<64x128xf32>
    %29 = tpu.matmul %27, %28, %cst_12 {dimension_numbers = #tpu.dot_dimension_numbers<[1], [0], [0], [1], [0, 0, 1, 1], [], []>} : vector<64x64xbf16>, vector<64x128xbf16>, vector<64x128xf32> -> vector<64x128xf32>
    %c0_13 = arith.constant 0 : index
    %c0_14 = arith.constant 0 : index
    %30 = vector.load %arg6[%c0_13, %c0_14] : memref<1x128xf32, #tpu.memory_space<vmem>>, vector<1x128xf32>
    %31 = vector.broadcast %30 : vector<1x128xf32> to vector<64x128xf32>
    %32 = arith.addf %29, %31 : vector<64x128xf32>
    %c0_15 = arith.constant 0 : index
    %c0_16 = arith.constant 0 : index
    %c0_17 = arith.constant 0 : index
    %33 = vector.load %arg7[%c0_15, %c0_16, %c0_17] : memref<1x64x128xf32, #tpu.memory_space<vmem>>, vector<1x64x128xf32>
    %34 = vector.shape_cast %33 : vector<1x64x128xf32> to vector<64x128xf32>
    %35 = vector.shape_cast %32 : vector<64x128xf32> to vector<1x64x128xf32>
    tpu.vector_store %arg7[%c0_15, %c0_16, %c0_17], %35 {strides = array<i32>} : memref<1x64x128xf32, #tpu.memory_space<vmem>>, vector<1x64x128xf32>,
    %c0_18 = arith.constant 0 : index
    %c0_19 = arith.constant 0 : index
    %c0_20 = arith.constant 0 : index
    %36 = vector.load %arg8[%c0_18, %c0_19, %c0_20] : memref<1x64x64xf32, #tpu.memory_space<vmem>>, vector<1x64x64xf32>
    %37 = vector.shape_cast %36 : vector<1x64x64xf32> to vector<64x64xf32>
    %38 = vector.shape_cast %26 : vector<64x64xf32> to vector<1x64x64xf32>
    tpu.vector_store %arg8[%c0_18, %c0_19, %c0_20], %38 {strides = array<i32>} : memref<1x64x64xf32, #tpu.memory_space<vmem>>, vector<1x64x64xf32>,
    return
  }
  func.func @transform_0(%arg0: i32, %arg1: i32) -> (i32, i32, i32) {
    %c0_i32 = arith.constant 0 : i32
    %c0_i32_0 = arith.constant 0 : i32
    return %arg0, %arg1, %c0_i32 : i32, i32, i32
  }
  func.func @transform_1(%arg0: i32, %arg1: i32) -> (i32, i32) {
    %c0_i32 = arith.constant 0 : i32
    %c0_i32_0 = arith.constant 0 : i32
    %c0_i32_1 = arith.constant 0 : i32
    return %c0_i32, %c0_i32_0 : i32, i32
  }
  func.func @transform_2(%arg0: i32, %arg1: i32) -> (i32, i32) {
    %c0_i32 = arith.constant 0 : i32
    %c0_i32_0 = arith.constant 0 : i32
    %c0_i32_1 = arith.constant 0 : i32
    return %c0_i32, %c0_i32_0 : i32, i32
  }
  func.func @transform_3(%arg0: i32, %arg1: i32) -> (i32, i32) {
    %c0_i32 = arith.constant 0 : i32
    %c0_i32_0 = arith.constant 0 : i32
    %c0_i32_1 = arith.constant 0 : i32
    return %c0_i32, %c0_i32_0 : i32, i32
  }
  func.func @transform_4(%arg0: i32, %arg1: i32) -> (i32, i32) {
    %c0_i32 = arith.constant 0 : i32
    %c0_i32_0 = arith.constant 0 : i32
    %c0_i32_1 = arith.constant 0 : i32
    return %c0_i32, %c0_i32_0 : i32, i32
  }
  func.func @transform_5(%arg0: i32, %arg1: i32) -> (i32, i32, i32) {
    %c0_i32 = arith.constant 0 : i32
    %c0_i32_0 = arith.constant 0 : i32
    return %arg0, %arg1, %c0_i32 : i32, i32, i32
  }
  func.func @transform_6(%arg0: i32, %arg1: i32) -> (i32, i32, i32) {
    %c0_i32 = arith.constant 0 : i32
    %c0_i32_0 = arith.constant 0 : i32
    return %arg0, %arg1, %c0_i32 : i32, i32, i32
  }
}

module attributes {stable_mosaic.version = 11 : i64} {
  func.func @_layer_kernel(%arg0: i32, %arg1: i32, %arg2: memref<1x64x64xbf16, #tpu.memory_space<vmem>>, %arg3: memref<1x1x64xf32, #tpu.memory_space<vmem>>, %arg4: memref<1x64xf32, #tpu.memory_space<vmem>>, %arg5: memref<1x64xf32, #tpu.memory_space<vmem>>, %arg6: memref<64x64xbf16, #tpu.memory_space<vmem>>, %arg7: memref<1x64xf32, #tpu.memory_space<vmem>>, %arg8: memref<64x128xbf16, #tpu.memory_space<vmem>>, %arg9: memref<1x128xf32, #tpu.memory_space<vmem>>, %arg10: memref<64x64xbf16, #tpu.memory_space<vmem>>, %arg11: memref<1x64xf32, #tpu.memory_space<vmem>>, %arg12: memref<1x64xf32, #tpu.memory_space<vmem>>, %arg13: memref<1x64xf32, #tpu.memory_space<vmem>>, %arg14: memref<64x128xbf16, #tpu.memory_space<vmem>>, %arg15: memref<1x128xf32, #tpu.memory_space<vmem>>, %arg16: memref<128x64xbf16, #tpu.memory_space<vmem>>, %arg17: memref<1x64xf32, #tpu.memory_space<vmem>>, %arg18: memref<1x64x64xbf16, #tpu.memory_space<vmem>>, %arg19: memref<64x64xbf16, #tpu.memory_space<vmem>>, %arg20: memref<64x64xbf16, #tpu.memory_space<vmem>>) attributes {dimension_semantics = [#tpu.dimension_semantics<parallel>, #tpu.dimension_semantics<arbitrary>], iteration_bounds = array<i64: 2, 1>, scalar_prefetch = 0 : i64, scratch_operands = 2 : i64, tpu.core_type = #tpu.core_type<tc>, window_params = [{transform_indices = @transform_0, window_bounds = array<i64: 1, 64, 64>}, {transform_indices = @transform_1, window_bounds = array<i64: 1, 1, 64>}, {pipeline_mode = #tpu.pipeline_mode<synchronous>, transform_indices = @transform_2, window_bounds = array<i64: 1, 64>}, {pipeline_mode = #tpu.pipeline_mode<synchronous>, transform_indices = @transform_3, window_bounds = array<i64: 1, 64>}, {pipeline_mode = #tpu.pipeline_mode<synchronous>, transform_indices = @transform_4, window_bounds = array<i64: 64, 64>}, {pipeline_mode = #tpu.pipeline_mode<synchronous>, transform_indices = @transform_5, window_bounds = array<i64: 1, 64>}, {pipeline_mode = #tpu.pipeline_mode<synchronous>, transform_indices = @transform_6, window_bounds = array<i64: 64, 128>}, {pipeline_mode = #tpu.pipeline_mode<synchronous>, transform_indices = @transform_7, window_bounds = array<i64: 1, 128>}, {pipeline_mode = #tpu.pipeline_mode<synchronous>, transform_indices = @transform_8, window_bounds = array<i64: 64, 64>}, {pipeline_mode = #tpu.pipeline_mode<synchronous>, transform_indices = @transform_9, window_bounds = array<i64: 1, 64>}, {pipeline_mode = #tpu.pipeline_mode<synchronous>, transform_indices = @transform_10, window_bounds = array<i64: 1, 64>}, {pipeline_mode = #tpu.pipeline_mode<synchronous>, transform_indices = @transform_11, window_bounds = array<i64: 1, 64>}, {pipeline_mode = #tpu.pipeline_mode<synchronous>, transform_indices = @transform_12, window_bounds = array<i64: 64, 128>}, {pipeline_mode = #tpu.pipeline_mode<synchronous>, transform_indices = @transform_13, window_bounds = array<i64: 1, 128>}, {pipeline_mode = #tpu.pipeline_mode<synchronous>, transform_indices = @transform_14, window_bounds = array<i64: 128, 64>}, {pipeline_mode = #tpu.pipeline_mode<synchronous>, transform_indices = @transform_15, window_bounds = array<i64: 1, 64>}, {transform_indices = @transform_16, window_bounds = array<i64: 1, 64, 64>}]} {
    %c0_i32 = arith.constant 0 : i32
    %0 = arith.cmpi eq, %arg1, %c0_i32 : i32
    %1 = arith.extui %0 : i1 to i32
    %c0_i32_0 = arith.constant 0 : i32
    %2 = arith.cmpi ne, %1, %c0_i32_0 : i32
    scf.if %2 {
      %c0_69 = arith.constant 0 : index
      %c0_70 = arith.constant 0 : index
      %c0_71 = arith.constant 0 : index
      %178 = vector.load %arg2[%c0_69, %c0_70, %c0_71] : memref<1x64x64xbf16, #tpu.memory_space<vmem>>, vector<1x64x64xbf16>
      %179 = vector.shape_cast %178 : vector<1x64x64xbf16> to vector<64x64xbf16>
      %180 = arith.extf %179 : vector<64x64xbf16> to vector<64x64xf32>
      %c0_72 = arith.constant 0 : index
      %c0_73 = arith.constant 0 : index
      %181 = vector.load %arg4[%c0_72, %c0_73] : memref<1x64xf32, #tpu.memory_space<vmem>>, vector<1x64xf32>
      %c0_74 = arith.constant 0 : index
      %c0_75 = arith.constant 0 : index
      %182 = vector.load %arg5[%c0_74, %c0_75] : memref<1x64xf32, #tpu.memory_space<vmem>>, vector<1x64xf32>
      %cst_76 = arith.constant dense<0.000000e+00> : vector<64xf32>
      %183 = vector.multi_reduction <add>, %180, %cst_76 [1] : vector<64x64xf32> to vector<64xf32>
      %184 = vector.shape_cast %183 : vector<64xf32> to vector<64x1xf32>
      %cst_77 = arith.constant 6.400000e+01 : f32
      %185 = vector.broadcast %cst_77 : f32 to vector<64x1xf32>
      %186 = arith.divf %184, %185 : vector<64x1xf32>
      %187 = vector.broadcast %186 : vector<64x1xf32> to vector<64x64xf32>
      %188 = arith.subf %180, %187 : vector<64x64xf32>
      %189 = arith.mulf %188, %188 : vector<64x64xf32>
      %cst_78 = arith.constant dense<0.000000e+00> : vector<64xf32>
      %190 = vector.multi_reduction <add>, %189, %cst_78 [1] : vector<64x64xf32> to vector<64xf32>
      %191 = vector.shape_cast %190 : vector<64xf32> to vector<64x1xf32>
      %cst_79 = arith.constant 6.400000e+01 : f32
      %192 = vector.broadcast %cst_79 : f32 to vector<64x1xf32>
      %193 = arith.divf %191, %192 : vector<64x1xf32>
      %194 = vector.broadcast %186 : vector<64x1xf32> to vector<64x64xf32>
      %195 = arith.subf %180, %194 : vector<64x64xf32>
      %cst_80 = arith.constant 9.99999974E-6 : f32
      %196 = vector.broadcast %cst_80 : f32 to vector<64x1xf32>
      %197 = arith.addf %193, %196 : vector<64x1xf32>
      %198 = math.rsqrt %197 : vector<64x1xf32>
      %199 = vector.broadcast %198 : vector<64x1xf32> to vector<64x64xf32>
      %200 = arith.mulf %195, %199 : vector<64x64xf32>
      %201 = vector.broadcast %181 : vector<1x64xf32> to vector<64x64xf32>
      %202 = arith.mulf %200, %201 : vector<64x64xf32>
      %203 = vector.broadcast %182 : vector<1x64xf32> to vector<64x64xf32>
      %204 = arith.addf %202, %203 : vector<64x64xf32>
      %205 = arith.truncf %204 : vector<64x64xf32> to vector<64x64xbf16>
      %c0_81 = arith.constant 0 : index
      %c0_82 = arith.constant 0 : index
      %206 = vector.load %arg8[%c0_81, %c0_82] : memref<64x128xbf16, #tpu.memory_space<vmem>>, vector<64x128xbf16>
      %cst_83 = arith.constant dense<0.000000e+00> : vector<64x128xf32>
      %207 = tpu.matmul %205, %206, %cst_83 {dimension_numbers = #tpu.dot_dimension_numbers<[1], [0], [0], [1], [0, 0, 1, 1], [], []>} : vector<64x64xbf16>, vector<64x128xbf16>, vector<64x128xf32> -> vector<64x128xf32>
      %c0_84 = arith.constant 0 : index
      %c0_85 = arith.constant 0 : index
      %208 = vector.load %arg9[%c0_84, %c0_85] : memref<1x128xf32, #tpu.memory_space<vmem>>, vector<1x128xf32>
      %209 = vector.broadcast %208 : vector<1x128xf32> to vector<64x128xf32>
      %210 = arith.addf %207, %209 : vector<64x128xf32>
      %211 = vector.extract_strided_slice %210 {offsets = [0, 0], sizes = [64, 64], strides = [1, 1]} : vector<64x128xf32> to vector<64x64xf32>
      %212 = arith.truncf %211 : vector<64x64xf32> to vector<64x64xbf16>
      %c0_86 = arith.constant 0 : index
      %c0_87 = arith.constant 0 : index
      %213 = vector.load %arg19[%c0_86, %c0_87] : memref<64x64xbf16, #tpu.memory_space<vmem>>, vector<64x64xbf16>
      tpu.vector_store %arg19[%c0_86, %c0_87], %212 {strides = array<i32>} : memref<64x64xbf16, #tpu.memory_space<vmem>>, vector<64x64xbf16>,
      %214 = vector.extract_strided_slice %210 {offsets = [0, 64], sizes = [64, 64], strides = [1, 1]} : vector<64x128xf32> to vector<64x64xf32>
      %215 = arith.truncf %214 : vector<64x64xf32> to vector<64x64xbf16>
      %c0_88 = arith.constant 0 : index
      %c0_89 = arith.constant 0 : index
      %216 = vector.load %arg20[%c0_88, %c0_89] : memref<64x64xbf16, #tpu.memory_space<vmem>>, vector<64x64xbf16>
      tpu.vector_store %arg20[%c0_88, %c0_89], %215 {strides = array<i32>} : memref<64x64xbf16, #tpu.memory_space<vmem>>, vector<64x64xbf16>,
    } else {
    }
    %c64_i32 = arith.constant 64 : i32
    %3 = arith.muli %arg1, %c64_i32 : i32
    %4 = tpu.assume_multiple %3, 64 : i32
    %c0 = arith.constant 0 : index
    %5 = arith.index_cast %4 : i32 to index
    %c0_1 = arith.constant 0 : index
    %6 = vector.load %arg2[%c0, %5, %c0_1] : memref<1x64x64xbf16, #tpu.memory_space<vmem>>, vector<1x64x64xbf16>
    %7 = vector.shape_cast %6 : vector<1x64x64xbf16> to vector<64x64xbf16>
    %8 = arith.extf %7 : vector<64x64xbf16> to vector<64x64xf32>
    %c0_2 = arith.constant 0 : index
    %c0_3 = arith.constant 0 : index
    %9 = vector.load %arg4[%c0_2, %c0_3] : memref<1x64xf32, #tpu.memory_space<vmem>>, vector<1x64xf32>
    %c0_4 = arith.constant 0 : index
    %c0_5 = arith.constant 0 : index
    %10 = vector.load %arg5[%c0_4, %c0_5] : memref<1x64xf32, #tpu.memory_space<vmem>>, vector<1x64xf32>
    %cst = arith.constant dense<0.000000e+00> : vector<64xf32>
    %11 = vector.multi_reduction <add>, %8, %cst [1] : vector<64x64xf32> to vector<64xf32>
    %12 = vector.shape_cast %11 : vector<64xf32> to vector<64x1xf32>
    %cst_6 = arith.constant 6.400000e+01 : f32
    %13 = vector.broadcast %cst_6 : f32 to vector<64x1xf32>
    %14 = arith.divf %12, %13 : vector<64x1xf32>
    %15 = vector.broadcast %14 : vector<64x1xf32> to vector<64x64xf32>
    %16 = arith.subf %8, %15 : vector<64x64xf32>
    %17 = arith.mulf %16, %16 : vector<64x64xf32>
    %cst_7 = arith.constant dense<0.000000e+00> : vector<64xf32>
    %18 = vector.multi_reduction <add>, %17, %cst_7 [1] : vector<64x64xf32> to vector<64xf32>
    %19 = vector.shape_cast %18 : vector<64xf32> to vector<64x1xf32>
    %cst_8 = arith.constant 6.400000e+01 : f32
    %20 = vector.broadcast %cst_8 : f32 to vector<64x1xf32>
    %21 = arith.divf %19, %20 : vector<64x1xf32>
    %22 = vector.broadcast %14 : vector<64x1xf32> to vector<64x64xf32>
    %23 = arith.subf %8, %22 : vector<64x64xf32>
    %cst_9 = arith.constant 9.99999974E-6 : f32
    %24 = vector.broadcast %cst_9 : f32 to vector<64x1xf32>
    %25 = arith.addf %21, %24 : vector<64x1xf32>
    %26 = math.rsqrt %25 : vector<64x1xf32>
    %27 = vector.broadcast %26 : vector<64x1xf32> to vector<64x64xf32>
    %28 = arith.mulf %23, %27 : vector<64x64xf32>
    %29 = vector.broadcast %9 : vector<1x64xf32> to vector<64x64xf32>
    %30 = arith.mulf %28, %29 : vector<64x64xf32>
    %31 = vector.broadcast %10 : vector<1x64xf32> to vector<64x64xf32>
    %32 = arith.addf %30, %31 : vector<64x64xf32>
    %33 = arith.truncf %32 : vector<64x64xf32> to vector<64x64xbf16>
    %c0_10 = arith.constant 0 : index
    %c0_11 = arith.constant 0 : index
    %34 = vector.load %arg6[%c0_10, %c0_11] : memref<64x64xbf16, #tpu.memory_space<vmem>>, vector<64x64xbf16>
    %cst_12 = arith.constant dense<0.000000e+00> : vector<64x64xf32>
    %35 = tpu.matmul %33, %34, %cst_12 {dimension_numbers = #tpu.dot_dimension_numbers<[1], [0], [0], [1], [0, 0, 1, 1], [], []>} : vector<64x64xbf16>, vector<64x64xbf16>, vector<64x64xf32> -> vector<64x64xf32>
    %c0_13 = arith.constant 0 : index
    %c0_14 = arith.constant 0 : index
    %36 = vector.load %arg7[%c0_13, %c0_14] : memref<1x64xf32, #tpu.memory_space<vmem>>, vector<1x64xf32>
    %37 = vector.broadcast %36 : vector<1x64xf32> to vector<64x64xf32>
    %38 = arith.addf %35, %37 : vector<64x64xf32>
    %39 = arith.truncf %38 : vector<64x64xf32> to vector<64x64xbf16>
    %c0_15 = arith.constant 0 : index
    %c0_16 = arith.constant 0 : index
    %c0_17 = arith.constant 0 : index
    %40 = vector.load %arg3[%c0_15, %c0_16, %c0_17] : memref<1x1x64xf32, #tpu.memory_space<vmem>>, vector<1x1x64xf32>
    %41 = vector.shape_cast %40 : vector<1x1x64xf32> to vector<1x64xf32>
    %c0_18 = arith.constant 0 : index
    %c0_19 = arith.constant 0 : index
    %42 = vector.load %arg19[%c0_18, %c0_19] : memref<64x64xbf16, #tpu.memory_space<vmem>>, vector<64x64xbf16>
    %c0_20 = arith.constant 0 : index
    %c0_21 = arith.constant 0 : index
    %43 = vector.load %arg20[%c0_20, %c0_21] : memref<64x64xbf16, #tpu.memory_space<vmem>>, vector<64x64xbf16>
    %44 = vector.extract_strided_slice %39 {offsets = [0, 0], sizes = [64, 16], strides = [1, 1]} : vector<64x64xbf16> to vector<64x16xbf16>
    %45 = vector.extract_strided_slice %42 {offsets = [0, 0], sizes = [64, 16], strides = [1, 1]} : vector<64x64xbf16> to vector<64x16xbf16>
    %46 = vector.extract_strided_slice %43 {offsets = [0, 0], sizes = [64, 16], strides = [1, 1]} : vector<64x64xbf16> to vector<64x16xbf16>
    %cst_22 = arith.constant dense<0.000000e+00> : vector<64x64xf32>
    %47 = tpu.matmul %44, %45, %cst_22 {dimension_numbers = #tpu.dot_dimension_numbers<[1], [1], [0], [0], [0, 0, 1, 0], [], []>} : vector<64x16xbf16>, vector<64x16xbf16>, vector<64x64xf32> -> vector<64x64xf32>
    %48 = vector.broadcast %41 : vector<1x64xf32> to vector<64x64xf32>
    %49 = arith.addf %47, %48 : vector<64x64xf32>
    %cst_23 = arith.constant dense<0xFF800000> : vector<64xf32>
    %50 = vector.multi_reduction <maximumf>, %49, %cst_23 [1] : vector<64x64xf32> to vector<64xf32>
    %51 = vector.shape_cast %50 : vector<64xf32> to vector<64x1xf32>
    %52 = vector.broadcast %51 : vector<64x1xf32> to vector<64x64xf32>
    %53 = arith.subf %49, %52 : vector<64x64xf32>
    %54 = math.exp %53 : vector<64x64xf32>
    %cst_24 = arith.constant dense<0.000000e+00> : vector<64xf32>
    %55 = vector.multi_reduction <add>, %54, %cst_24 [1] : vector<64x64xf32> to vector<64xf32>
    %56 = vector.shape_cast %55 : vector<64xf32> to vector<64x1xf32>
    %57 = tpu.reciprocal %56 {approx = true} : vector<64x1xf32> -> vector<64x1xf32>
    %58 = vector.broadcast %57 : vector<64x1xf32> to vector<64x64xf32>
    %59 = arith.mulf %54, %58 : vector<64x64xf32>
    %60 = arith.truncf %59 : vector<64x64xf32> to vector<64x64xbf16>
    %cst_25 = arith.constant dense<0.000000e+00> : vector<64x16xf32>
    %61 = tpu.matmul %60, %46, %cst_25 {dimension_numbers = #tpu.dot_dimension_numbers<[1], [0], [0], [1], [0, 0, 1, 1], [], []>} : vector<64x64xbf16>, vector<64x16xbf16>, vector<64x16xf32> -> vector<64x16xf32>
    %62 = vector.extract_strided_slice %39 {offsets = [0, 16], sizes = [64, 16], strides = [1, 1]} : vector<64x64xbf16> to vector<64x16xbf16>
    %63 = vector.extract_strided_slice %42 {offsets = [0, 16], sizes = [64, 16], strides = [1, 1]} : vector<64x64xbf16> to vector<64x16xbf16>
    %64 = vector.extract_strided_slice %43 {offsets = [0, 16], sizes = [64, 16], strides = [1, 1]} : vector<64x64xbf16> to vector<64x16xbf16>
    %cst_26 = arith.constant dense<0.000000e+00> : vector<64x64xf32>
    %65 = tpu.matmul %62, %63, %cst_26 {dimension_numbers = #tpu.dot_dimension_numbers<[1], [1], [0], [0], [0, 0, 1, 0], [], []>} : vector<64x16xbf16>, vector<64x16xbf16>, vector<64x64xf32> -> vector<64x64xf32>
    %66 = vector.broadcast %41 : vector<1x64xf32> to vector<64x64xf32>
    %67 = arith.addf %65, %66 : vector<64x64xf32>
    %cst_27 = arith.constant dense<0xFF800000> : vector<64xf32>
    %68 = vector.multi_reduction <maximumf>, %67, %cst_27 [1] : vector<64x64xf32> to vector<64xf32>
    %69 = vector.shape_cast %68 : vector<64xf32> to vector<64x1xf32>
    %70 = vector.broadcast %69 : vector<64x1xf32> to vector<64x64xf32>
    %71 = arith.subf %67, %70 : vector<64x64xf32>
    %72 = math.exp %71 : vector<64x64xf32>
    %cst_28 = arith.constant dense<0.000000e+00> : vector<64xf32>
    %73 = vector.multi_reduction <add>, %72, %cst_28 [1] : vector<64x64xf32> to vector<64xf32>
    %74 = vector.shape_cast %73 : vector<64xf32> to vector<64x1xf32>
    %75 = tpu.reciprocal %74 {approx = true} : vector<64x1xf32> -> vector<64x1xf32>
    %76 = vector.broadcast %75 : vector<64x1xf32> to vector<64x64xf32>
    %77 = arith.mulf %72, %76 : vector<64x64xf32>
    %78 = arith.truncf %77 : vector<64x64xf32> to vector<64x64xbf16>
    %cst_29 = arith.constant dense<0.000000e+00> : vector<64x16xf32>
    %79 = tpu.matmul %78, %64, %cst_29 {dimension_numbers = #tpu.dot_dimension_numbers<[1], [0], [0], [1], [0, 0, 1, 1], [], []>} : vector<64x64xbf16>, vector<64x16xbf16>, vector<64x16xf32> -> vector<64x16xf32>
    %80 = vector.extract_strided_slice %39 {offsets = [0, 32], sizes = [64, 16], strides = [1, 1]} : vector<64x64xbf16> to vector<64x16xbf16>
    %81 = vector.extract_strided_slice %42 {offsets = [0, 32], sizes = [64, 16], strides = [1, 1]} : vector<64x64xbf16> to vector<64x16xbf16>
    %82 = vector.extract_strided_slice %43 {offsets = [0, 32], sizes = [64, 16], strides = [1, 1]} : vector<64x64xbf16> to vector<64x16xbf16>
    %cst_30 = arith.constant dense<0.000000e+00> : vector<64x64xf32>
    %83 = tpu.matmul %80, %81, %cst_30 {dimension_numbers = #tpu.dot_dimension_numbers<[1], [1], [0], [0], [0, 0, 1, 0], [], []>} : vector<64x16xbf16>, vector<64x16xbf16>, vector<64x64xf32> -> vector<64x64xf32>
    %84 = vector.broadcast %41 : vector<1x64xf32> to vector<64x64xf32>
    %85 = arith.addf %83, %84 : vector<64x64xf32>
    %cst_31 = arith.constant dense<0xFF800000> : vector<64xf32>
    %86 = vector.multi_reduction <maximumf>, %85, %cst_31 [1] : vector<64x64xf32> to vector<64xf32>
    %87 = vector.shape_cast %86 : vector<64xf32> to vector<64x1xf32>
    %88 = vector.broadcast %87 : vector<64x1xf32> to vector<64x64xf32>
    %89 = arith.subf %85, %88 : vector<64x64xf32>
    %90 = math.exp %89 : vector<64x64xf32>
    %cst_32 = arith.constant dense<0.000000e+00> : vector<64xf32>
    %91 = vector.multi_reduction <add>, %90, %cst_32 [1] : vector<64x64xf32> to vector<64xf32>
    %92 = vector.shape_cast %91 : vector<64xf32> to vector<64x1xf32>
    %93 = tpu.reciprocal %92 {approx = true} : vector<64x1xf32> -> vector<64x1xf32>
    %94 = vector.broadcast %93 : vector<64x1xf32> to vector<64x64xf32>
    %95 = arith.mulf %90, %94 : vector<64x64xf32>
    %96 = arith.truncf %95 : vector<64x64xf32> to vector<64x64xbf16>
    %cst_33 = arith.constant dense<0.000000e+00> : vector<64x16xf32>
    %97 = tpu.matmul %96, %82, %cst_33 {dimension_numbers = #tpu.dot_dimension_numbers<[1], [0], [0], [1], [0, 0, 1, 1], [], []>} : vector<64x64xbf16>, vector<64x16xbf16>, vector<64x16xf32> -> vector<64x16xf32>
    %98 = vector.extract_strided_slice %39 {offsets = [0, 48], sizes = [64, 16], strides = [1, 1]} : vector<64x64xbf16> to vector<64x16xbf16>
    %99 = vector.extract_strided_slice %42 {offsets = [0, 48], sizes = [64, 16], strides = [1, 1]} : vector<64x64xbf16> to vector<64x16xbf16>
    %100 = vector.extract_strided_slice %43 {offsets = [0, 48], sizes = [64, 16], strides = [1, 1]} : vector<64x64xbf16> to vector<64x16xbf16>
    %cst_34 = arith.constant dense<0.000000e+00> : vector<64x64xf32>
    %101 = tpu.matmul %98, %99, %cst_34 {dimension_numbers = #tpu.dot_dimension_numbers<[1], [1], [0], [0], [0, 0, 1, 0], [], []>} : vector<64x16xbf16>, vector<64x16xbf16>, vector<64x64xf32> -> vector<64x64xf32>
    %102 = vector.broadcast %41 : vector<1x64xf32> to vector<64x64xf32>
    %103 = arith.addf %101, %102 : vector<64x64xf32>
    %cst_35 = arith.constant dense<0xFF800000> : vector<64xf32>
    %104 = vector.multi_reduction <maximumf>, %103, %cst_35 [1] : vector<64x64xf32> to vector<64xf32>
    %105 = vector.shape_cast %104 : vector<64xf32> to vector<64x1xf32>
    %106 = vector.broadcast %105 : vector<64x1xf32> to vector<64x64xf32>
    %107 = arith.subf %103, %106 : vector<64x64xf32>
    %108 = math.exp %107 : vector<64x64xf32>
    %cst_36 = arith.constant dense<0.000000e+00> : vector<64xf32>
    %109 = vector.multi_reduction <add>, %108, %cst_36 [1] : vector<64x64xf32> to vector<64xf32>
    %110 = vector.shape_cast %109 : vector<64xf32> to vector<64x1xf32>
    %111 = tpu.reciprocal %110 {approx = true} : vector<64x1xf32> -> vector<64x1xf32>
    %112 = vector.broadcast %111 : vector<64x1xf32> to vector<64x64xf32>
    %113 = arith.mulf %108, %112 : vector<64x64xf32>
    %114 = arith.truncf %113 : vector<64x64xf32> to vector<64x64xbf16>
    %cst_37 = arith.constant dense<0.000000e+00> : vector<64x16xf32>
    %115 = tpu.matmul %114, %100, %cst_37 {dimension_numbers = #tpu.dot_dimension_numbers<[1], [0], [0], [1], [0, 0, 1, 1], [], []>} : vector<64x64xbf16>, vector<64x16xbf16>, vector<64x16xf32> -> vector<64x16xf32>
    %116 = tpu.concatenate %61, %79, %97, %115 in 1 : vector<64x16xf32>, vector<64x16xf32>, vector<64x16xf32>, vector<64x16xf32> -> vector<64x64xf32>
    %117 = arith.truncf %116 : vector<64x64xf32> to vector<64x64xbf16>
    %c0_38 = arith.constant 0 : index
    %c0_39 = arith.constant 0 : index
    %118 = vector.load %arg10[%c0_38, %c0_39] : memref<64x64xbf16, #tpu.memory_space<vmem>>, vector<64x64xbf16>
    %cst_40 = arith.constant dense<0.000000e+00> : vector<64x64xf32>
    %119 = tpu.matmul %117, %118, %cst_40 {dimension_numbers = #tpu.dot_dimension_numbers<[1], [0], [0], [1], [0, 0, 1, 1], [], []>} : vector<64x64xbf16>, vector<64x64xbf16>, vector<64x64xf32> -> vector<64x64xf32>
    %c0_41 = arith.constant 0 : index
    %c0_42 = arith.constant 0 : index
    %120 = vector.load %arg11[%c0_41, %c0_42] : memref<1x64xf32, #tpu.memory_space<vmem>>, vector<1x64xf32>
    %121 = vector.broadcast %120 : vector<1x64xf32> to vector<64x64xf32>
    %122 = arith.addf %119, %121 : vector<64x64xf32>
    %123 = arith.addf %8, %122 : vector<64x64xf32>
    %c0_43 = arith.constant 0 : index
    %c0_44 = arith.constant 0 : index
    %124 = vector.load %arg12[%c0_43, %c0_44] : memref<1x64xf32, #tpu.memory_space<vmem>>, vector<1x64xf32>
    %c0_45 = arith.constant 0 : index
    %c0_46 = arith.constant 0 : index
    %125 = vector.load %arg13[%c0_45, %c0_46] : memref<1x64xf32, #tpu.memory_space<vmem>>, vector<1x64xf32>
    %cst_47 = arith.constant dense<0.000000e+00> : vector<64xf32>
    %126 = vector.multi_reduction <add>, %123, %cst_47 [1] : vector<64x64xf32> to vector<64xf32>
    %127 = vector.shape_cast %126 : vector<64xf32> to vector<64x1xf32>
    %cst_48 = arith.constant 6.400000e+01 : f32
    %128 = vector.broadcast %cst_48 : f32 to vector<64x1xf32>
    %129 = arith.divf %127, %128 : vector<64x1xf32>
    %130 = vector.broadcast %129 : vector<64x1xf32> to vector<64x64xf32>
    %131 = arith.subf %123, %130 : vector<64x64xf32>
    %132 = arith.mulf %131, %131 : vector<64x64xf32>
    %cst_49 = arith.constant dense<0.000000e+00> : vector<64xf32>
    %133 = vector.multi_reduction <add>, %132, %cst_49 [1] : vector<64x64xf32> to vector<64xf32>
    %134 = vector.shape_cast %133 : vector<64xf32> to vector<64x1xf32>
    %cst_50 = arith.constant 6.400000e+01 : f32
    %135 = vector.broadcast %cst_50 : f32 to vector<64x1xf32>
    %136 = arith.divf %134, %135 : vector<64x1xf32>
    %137 = vector.broadcast %129 : vector<64x1xf32> to vector<64x64xf32>
    %138 = arith.subf %123, %137 : vector<64x64xf32>
    %cst_51 = arith.constant 9.99999974E-6 : f32
    %139 = vector.broadcast %cst_51 : f32 to vector<64x1xf32>
    %140 = arith.addf %136, %139 : vector<64x1xf32>
    %141 = math.rsqrt %140 : vector<64x1xf32>
    %142 = vector.broadcast %141 : vector<64x1xf32> to vector<64x64xf32>
    %143 = arith.mulf %138, %142 : vector<64x64xf32>
    %144 = vector.broadcast %124 : vector<1x64xf32> to vector<64x64xf32>
    %145 = arith.mulf %143, %144 : vector<64x64xf32>
    %146 = vector.broadcast %125 : vector<1x64xf32> to vector<64x64xf32>
    %147 = arith.addf %145, %146 : vector<64x64xf32>
    %148 = arith.truncf %147 : vector<64x64xf32> to vector<64x64xbf16>
    %c0_52 = arith.constant 0 : index
    %c0_53 = arith.constant 0 : index
    %149 = vector.load %arg14[%c0_52, %c0_53] : memref<64x128xbf16, #tpu.memory_space<vmem>>, vector<64x128xbf16>
    %cst_54 = arith.constant dense<0.000000e+00> : vector<64x128xf32>
    %150 = tpu.matmul %148, %149, %cst_54 {dimension_numbers = #tpu.dot_dimension_numbers<[1], [0], [0], [1], [0, 0, 1, 1], [], []>} : vector<64x64xbf16>, vector<64x128xbf16>, vector<64x128xf32> -> vector<64x128xf32>
    %c0_55 = arith.constant 0 : index
    %c0_56 = arith.constant 0 : index
    %151 = vector.load %arg15[%c0_55, %c0_56] : memref<1x128xf32, #tpu.memory_space<vmem>>, vector<1x128xf32>
    %152 = vector.broadcast %151 : vector<1x128xf32> to vector<64x128xf32>
    %153 = arith.addf %150, %152 : vector<64x128xf32>
    %154 = arith.mulf %153, %153 : vector<64x128xf32>
    %155 = arith.mulf %153, %154 : vector<64x128xf32>
    %cst_57 = arith.constant 4.471500e-02 : f32
    %156 = vector.broadcast %cst_57 : f32 to vector<64x128xf32>
    %157 = arith.mulf %156, %155 : vector<64x128xf32>
    %158 = arith.addf %153, %157 : vector<64x128xf32>
    %cst_58 = arith.constant 0.797884583 : f32
    %159 = vector.broadcast %cst_58 : f32 to vector<64x128xf32>
    %160 = arith.mulf %159, %158 : vector<64x128xf32>
    %161 = math.tanh %160 : vector<64x128xf32>
    %cst_59 = arith.constant 1.000000e+00 : f32
    %162 = vector.broadcast %cst_59 : f32 to vector<64x128xf32>
    %163 = arith.addf %162, %161 : vector<64x128xf32>
    %cst_60 = arith.constant 5.000000e-01 : f32
    %164 = vector.broadcast %cst_60 : f32 to vector<64x128xf32>
    %165 = arith.mulf %164, %163 : vector<64x128xf32>
    %166 = arith.mulf %153, %165 : vector<64x128xf32>
    %167 = arith.truncf %166 : vector<64x128xf32> to vector<64x128xbf16>
    %c0_61 = arith.constant 0 : index
    %c0_62 = arith.constant 0 : index
    %168 = vector.load %arg16[%c0_61, %c0_62] : memref<128x64xbf16, #tpu.memory_space<vmem>>, vector<128x64xbf16>
    %cst_63 = arith.constant dense<0.000000e+00> : vector<64x64xf32>
    %169 = tpu.matmul %167, %168, %cst_63 {dimension_numbers = #tpu.dot_dimension_numbers<[1], [0], [0], [1], [0, 0, 1, 1], [], []>} : vector<64x128xbf16>, vector<128x64xbf16>, vector<64x64xf32> -> vector<64x64xf32>
    %c0_64 = arith.constant 0 : index
    %c0_65 = arith.constant 0 : index
    %170 = vector.load %arg17[%c0_64, %c0_65] : memref<1x64xf32, #tpu.memory_space<vmem>>, vector<1x64xf32>
    %171 = vector.broadcast %170 : vector<1x64xf32> to vector<64x64xf32>
    %172 = arith.addf %169, %171 : vector<64x64xf32>
    %173 = arith.addf %123, %172 : vector<64x64xf32>
    %174 = arith.truncf %173 : vector<64x64xf32> to vector<64x64xbf16>
    %c0_66 = arith.constant 0 : index
    %c0_67 = arith.constant 0 : index
    %c0_68 = arith.constant 0 : index
    %175 = vector.load %arg18[%c0_66, %c0_67, %c0_68] : memref<1x64x64xbf16, #tpu.memory_space<vmem>>, vector<1x64x64xbf16>
    %176 = vector.shape_cast %175 : vector<1x64x64xbf16> to vector<64x64xbf16>
    %177 = vector.shape_cast %174 : vector<64x64xbf16> to vector<1x64x64xbf16>
    tpu.vector_store %arg18[%c0_66, %c0_67, %c0_68], %177 {strides = array<i32>} : memref<1x64x64xbf16, #tpu.memory_space<vmem>>, vector<1x64x64xbf16>,
    return
  }
  func.func @transform_0(%arg0: i32, %arg1: i32) -> (i32, i32, i32) {
    %c0_i32 = arith.constant 0 : i32
    %c0_i32_0 = arith.constant 0 : i32
    %c0_i32_1 = arith.constant 0 : i32
    return %arg0, %c0_i32, %c0_i32_0 : i32, i32, i32
  }
  func.func @transform_1(%arg0: i32, %arg1: i32) -> (i32, i32, i32) {
    %c0_i32 = arith.constant 0 : i32
    %c0_i32_0 = arith.constant 0 : i32
    %c0_i32_1 = arith.constant 0 : i32
    return %arg0, %c0_i32, %c0_i32_0 : i32, i32, i32
  }
  func.func @transform_2(%arg0: i32, %arg1: i32) -> (i32, i32) {
    %c0_i32 = arith.constant 0 : i32
    %c0_i32_0 = arith.constant 0 : i32
    %c0_i32_1 = arith.constant 0 : i32
    return %c0_i32, %c0_i32_0 : i32, i32
  }
  func.func @transform_3(%arg0: i32, %arg1: i32) -> (i32, i32) {
    %c0_i32 = arith.constant 0 : i32
    %c0_i32_0 = arith.constant 0 : i32
    %c0_i32_1 = arith.constant 0 : i32
    return %c0_i32, %c0_i32_0 : i32, i32
  }
  func.func @transform_4(%arg0: i32, %arg1: i32) -> (i32, i32) {
    %c0_i32 = arith.constant 0 : i32
    %c0_i32_0 = arith.constant 0 : i32
    %c0_i32_1 = arith.constant 0 : i32
    return %c0_i32, %c0_i32_0 : i32, i32
  }
  func.func @transform_5(%arg0: i32, %arg1: i32) -> (i32, i32) {
    %c0_i32 = arith.constant 0 : i32
    %c0_i32_0 = arith.constant 0 : i32
    %c0_i32_1 = arith.constant 0 : i32
    return %c0_i32, %c0_i32_0 : i32, i32
  }
  func.func @transform_6(%arg0: i32, %arg1: i32) -> (i32, i32) {
    %c0_i32 = arith.constant 0 : i32
    %c0_i32_0 = arith.constant 0 : i32
    %c0_i32_1 = arith.constant 0 : i32
    return %c0_i32, %c0_i32_0 : i32, i32
  }
  func.func @transform_7(%arg0: i32, %arg1: i32) -> (i32, i32) {
    %c0_i32 = arith.constant 0 : i32
    %c0_i32_0 = arith.constant 0 : i32
    %c0_i32_1 = arith.constant 0 : i32
    return %c0_i32, %c0_i32_0 : i32, i32
  }
  func.func @transform_8(%arg0: i32, %arg1: i32) -> (i32, i32) {
    %c0_i32 = arith.constant 0 : i32
    %c0_i32_0 = arith.constant 0 : i32
    %c0_i32_1 = arith.constant 0 : i32
    return %c0_i32, %c0_i32_0 : i32, i32
  }
  func.func @transform_9(%arg0: i32, %arg1: i32) -> (i32, i32) {
    %c0_i32 = arith.constant 0 : i32
    %c0_i32_0 = arith.constant 0 : i32
    %c0_i32_1 = arith.constant 0 : i32
    return %c0_i32, %c0_i32_0 : i32, i32
  }
  func.func @transform_10(%arg0: i32, %arg1: i32) -> (i32, i32) {
    %c0_i32 = arith.constant 0 : i32
    %c0_i32_0 = arith.constant 0 : i32
    %c0_i32_1 = arith.constant 0 : i32
    return %c0_i32, %c0_i32_0 : i32, i32
  }
  func.func @transform_11(%arg0: i32, %arg1: i32) -> (i32, i32) {
    %c0_i32 = arith.constant 0 : i32
    %c0_i32_0 = arith.constant 0 : i32
    %c0_i32_1 = arith.constant 0 : i32
    return %c0_i32, %c0_i32_0 : i32, i32
  }
  func.func @transform_12(%arg0: i32, %arg1: i32) -> (i32, i32) {
    %c0_i32 = arith.constant 0 : i32
    %c0_i32_0 = arith.constant 0 : i32
    %c0_i32_1 = arith.constant 0 : i32
    return %c0_i32, %c0_i32_0 : i32, i32
  }
  func.func @transform_13(%arg0: i32, %arg1: i32) -> (i32, i32) {
    %c0_i32 = arith.constant 0 : i32
    %c0_i32_0 = arith.constant 0 : i32
    %c0_i32_1 = arith.constant 0 : i32
    return %c0_i32, %c0_i32_0 : i32, i32
  }
  func.func @transform_14(%arg0: i32, %arg1: i32) -> (i32, i32) {
    %c0_i32 = arith.constant 0 : i32
    %c0_i32_0 = arith.constant 0 : i32
    %c0_i32_1 = arith.constant 0 : i32
    return %c0_i32, %c0_i32_0 : i32, i32
  }
  func.func @transform_15(%arg0: i32, %arg1: i32) -> (i32, i32) {
    %c0_i32 = arith.constant 0 : i32
    %c0_i32_0 = arith.constant 0 : i32
    %c0_i32_1 = arith.constant 0 : i32
    return %c0_i32, %c0_i32_0 : i32, i32
  }
  func.func @transform_16(%arg0: i32, %arg1: i32) -> (i32, i32, i32) {
    %c0_i32 = arith.constant 0 : i32
    %c0_i32_0 = arith.constant 0 : i32
    return %arg0, %arg1, %c0_i32 : i32, i32, i32
  }
}

</mosaic_0001>

<bundles_post_ra>
// kernel: tpu_custom_call.1
= control target key start
LH: loop header
LB: loop body
LE: loop exit
PB: predicated region body
PF: predicated region fallthrough
CT: control target
= control target key end

     0   :  { %6 = vsyncpa [#allocation3], 0  ;;  %s286_s0 = inlined_call_operand.hbm [shape: f32[8,128], index: 0, kind: input, shape index: {}]   ;;  %s287_s1 = inlined_call_operand.hbm [shape: f32[8,128], index: 1, kind: output, shape index: {}]  }
   0x1   :  { %7 = vsyncpa [#allocation4], 0  ;;  %s269_s6 = smov 0  }
   0x2 LB: > { %s148_s7 = sadd.s32 4294967295, %s255_s6   ;;  %p149_p0 = scmp.ge.s32.totalorder %s255_s6, 1  ;;  %s255_s6 = sphi %s269_s6, %s13_s6  }
   0x3   : > { %p60_p1 = scmp.lt.s32.totalorder %s255_s6, 3  ;;  %s72_s10 = sshll.u32 %s286_s0, 4  ;;  %s73_s10 = int_to_ptr.hbm [resolvable:$true] %s72_s10 }
   0x4   : > { %p169_p3 = scmp.eq.s32.totalorder %s148_s7, 0  ;;  %s257_s11 = smov [#allocation2]  }
   0x5   : > { %p61_p2 = pnand %p149_p0, %p60_p1  ;;  %s74_s12 = sshll.u32 %s257_s11, 4  ;;  %s75_s12 = int_to_ptr.vmem [resolvable:$true] %s74_s12 }
   0x7   : > { %p165_p4 = pneg %p61_p2  ;;  %87 = sbr.rel (%p61_p2) target bundleno = 19 (0x13), region = 24 }
   0x9   : > { %p166_p5 = pnand %p169_p3, %p165_p4 }
   0xb   : > { %168 = dma.hbm_to_vmem [thread:$0]  (!%p166_p5), %s73_s10, 128, %s75_s12, [#allocation3]  }
   0xc   : > { %246 = dma.done.wait (%p169_p3), [#allocation3], 128  }
   0xd   : > { %248 = vsyncadd (%p169_p3), [#allocation3], 4294967168  ;;  %s258_s13 = smov [#allocation5]   ;;  %s108_s17 = sshll.u32 %s287_s1, 4  ;;  %v98_v0 = vld [vmem:[#allocation2] sm:$0xff]  ;;  %s109_s17 = int_to_ptr.hbm [resolvable:$true] %s108_s17 }
   0xe   : > { %s106_s14 = sshll.u32 %s258_s13, 4  ;;  %p171_p6 = scmp.eq.s32.totalorder %s148_s7, 1  ;;  %99 = vst [vmem:[#allocation5] sm:$0xff] %v98_v0  ;;  %s107_s14 = int_to_ptr.vmem [resolvable:$true] %s106_s14 }
  0x10   : > { %162 = dma.vmem_to_hbm [thread:$0]  (%p171_p6), %s107_s14, 128, %s109_s17, [#allocation4]  }
  0x11   : > { %250 = dma.done.wait (%p171_p6), [#allocation4], 128  }
  0x12   : > { %252 = vsyncadd (%p171_p6), [#allocation4], 4294967168 }
  0x13 PF: > { %s13_s6 = sadd.s32 1, %s255_s6  }
  0x14   : > { %p10_p7 = scmp.ge.s32.totalorder %s13_s6, 4  }
  0x16   :  { %12 = sbr.rel (!%p10_p7) target bundleno = 2 (0x2), region = 53 }
  0x1b   :  { %122 = vsyncpa [#allocation3], 1 }
  0x1c   :  { %124 = vsyncpa [#allocation3 + $0x1], 1 }
  0x1d   :  { %125 = vsyncpa [#allocation4], 1 }
  0x1e   :  { %127 = vsyncpa [#allocation4 + $0x1], 1 }

// kernel: _forward_impl.5
= control target key start
LH: loop header
LB: loop body
LE: loop exit
PB: predicated region body
PF: predicated region fallthrough
CT: control target
= control target key end

     0   :  { %s1329_s0 = inlined_call_operand.vmem [shape: bf16[2,64,64], index: 0, kind: input, shape index: {}]   ;;  %s1330_s1 = inlined_call_operand.vmem [shape: f32[1,64], index: 1, kind: input, shape index: {}]   ;;  %s1331_s2 = inlined_call_operand.vmem [shape: f32[1,64], index: 2, kind: input, shape index: {}]   ;;  %s1332_s3 = inlined_call_operand.vmem [shape: bf16[64,128], index: 3, kind: input, shape index: {}]   ;;  %s1333_s4 = inlined_call_operand.vmem [shape: f32[1,128], index: 4, kind: input, shape index: {}]   ;;  %s1334_s5 = inlined_call_operand.vmem [shape: f32[2,64,128], index: 5, kind: output, shape index: {0}]   ;;  %s1335_s6 = inlined_call_operand.hbm [shape: f32[2,64,64], index: 6, kind: output, shape index: {1}]  }
   0x1   :  { %1336 = sst [smem:[#allocation5_spill]] %s1329_s0 }
   0x2   :  { %12 = vsyncpa [#allocation3], 0 }
   0x3   :  { %14 = vsyncpa [#allocation3 + $0x1], 0  ;;  %s1044_s21 = smov 0   ;;  %s1046_s22 = smov 0  }
   0x4   :  { %s1048_s23 = smov 0   ;;  %s1050_s24 = smov 0  }
   0x5   :  { %s1052_s25 = smov 0   ;;  %s1054_s26 = smov 0  }
   0x6 LB: > { %s774_s27 = sadd.s32 4294967295, %s1004_s26   ;;  %s775_s28 = sadd.s32 4294967294, %s1004_s26   ;;  %s1004_s26 = sphi %s1054_s26, %s20_s26   ;;  %s1000_s25 = sphi %s1052_s25, %s1346_s25   ;;  %s996_s24 = sphi %s1050_s24, %s1345_s24   ;;  %s992_s23 = sphi %s1048_s23, %s1344_s23   ;;  %s988_s22 = sphi %s1046_s22, %s1343_s22   ;;  %s984_s21 = sphi %s1044_s21, %s1342_s21  }
   0x7   : > { %s32_s29 = sadd.s32 1, %s1000_s25  ;;  %s181_s30 = sadd.s32 1, %s992_s23 }
   0x8   : > { %p34_p0 = scmp.ge.s32.totalorder %s32_s29, 2  ;;  %p191_p1 = scmp.ne.s32.totalorder %s992_s23, %s988_s22 }
   0x9   : > { %p192_p2 = scmp.eq.s32.totalorder %s774_s27, 1  ;;  %p197_p3 = scmp.ne.s32.totalorder %s988_s22, %s984_s21 }
   0xa   : > { %s1348_s29 = smov (%p34_p0, %s32_s29), 0  ;;  %p198_p5 = scmp.eq.s32.totalorder %s775_s28, 1 }
   0xb   : > { %p1084_p4 = por %p192_p2, %p191_p1  ;;  %s176_s8 = ssub.s32 %s1000_s25, %s1348_s29 }
   0xc   : > { %p778_p6 = scmp.ge.s32.totalorder %s1004_s26, 1  ;;  %p179_p7 = scmp.eq.s32.totalorder %s176_s8, 0 }
   0xd   : > { %p1091_p8 = por %p198_p5, %p197_p3  ;;  %p241_p9 = scmp.lt.s32.totalorder %s1004_s26, 3 }
   0xe   : > { %s1097_s10 = scalar_select %p179_p7, %s992_s23, %s181_s30  }
   0xf   : > { %p242_p10 = pnand %p778_p6, %p241_p9 }
  0x10   : > { %p285_p11 = scmp.lt.s32.totalorder (!%p242_p10), %s996_s24, 1  ;;  %s1339_s0 = sld [smem:[#allocation5_spill]] (!%p242_p10) }
  0x11   : > { %245 = sbr.rel (%p242_p10) target bundleno = 461 (0x1cd), region = 40  ;;  %s281_s8 = sand.u32 (!%p242_p10), 1, %s988_s22  }
  0x12   : > { %s779_s14 = sshll.u32 (!%p242_p10), %s281_s8, 6  ;;  %s815_s18 = sshll.u32 (!%p242_p10), %s996_s24, 6 }
  0x13   : > { %s1232_s17 = scalar_lea.vmem (!%p242_p10), [#allocation2], %s779_s14  ;;  %s654_s27 = scalar_lea.hbm (!%p242_p10), %s1335_s6, %s815_s18 }
  0x14   : > { %s655_s28 = sshll.u32 (!%p242_p10), %s1232_s17, 4  ;;  %s657_s30 = sshll.u32 (!%p242_p10), %s654_s27, 4  ;;  %s656_s28 = int_to_ptr.vmem [resolvable:$true] %s655_s28  ;;  %s658_s30 = int_to_ptr.hbm [resolvable:$true] %s657_s30 }
  0x15   : > { %s940_s13 = sshra.s32 (!%p242_p10), %s658_s30, 4  ;;  %s941_s13 = int_to_ptr.hbm [resolvable:$true] %s940_s13 }
  0x16   : > { %s1101_s11 = scalar_select %p285_p11, %s996_s24, 1  ;;  %vm324_vm0 = vcmask 523264   ;;  %v1006_v20 = vmov 64.0  }
  0x17   : > { %908 = vrcp.f32 %v1006_v20  ;;  %s942_s14 = scalar_lea.hbm %s941_s13, 64  ;;  %s946_s24 = scalar_lea.hbm %s1335_s6, 128 }
  0x18   : > { %s809_s12 = sshll.u32 %s1101_s11, 5  ;;  %p943_p12 = scmp.ne.s32.totalorder %s941_s13, %s942_s14 }
  0x19   : > { %s292_s15 = scalar_lea.vmem %s1339_s0, %s809_s12  ;;  %s637_s12 = scalar_lea.sflag [#allocation3], %s281_s8 }
  0x1a   : > { %v834_v0 = vld [vmem:[%s292_s15 + $0x18] sm:$0xff]   ;;  %v833_v1 = vld [vmem:[%s292_s15 + $0x10] sm:$0xff]   ;;  %v817_v2 = vld [vmem:[%s292_s15] sm:$0xff]   ;;  %p944_p13 = pnand %p943_p12, %p1084_p4  ;;  %p947_p1 = scmp.lt.s32.totalorder %s941_s13, %s1335_s6 }
  0x1b   : > { %v830_v3 = vunpack.c.l.bf16 %v834_v0  ;;  %v826_v4 = vunpack.c.l.bf16 %v833_v1  ;;  %v818_v5 = vunpack.c.l.bf16 %v817_v2  ;;  %v831_v9 = vunpack.c.h.bf16 %v834_v0  ;;  %v832_v15 = vld [vmem:[%s292_s15 + $0x8] sm:$0xff]   ;;  %p948_p2 = scmp.lt.s32.totalorder %s946_s24, %s942_s14 }
  0x1c   : > { %v827_v10 = vunpack.c.h.bf16 %v833_v1  ;;  %v819_v11 = vunpack.c.h.bf16 %v817_v2  ;;  %v822_v16 = vunpack.c.l.bf16 %v832_v15  ;;  %v823_v17 = vunpack.c.h.bf16 %v832_v15  ;;  %p945_p0 = pneg %p944_p13 }
  0x1d   : > { %v343_v6 = vsel %vm324_vm0, %v830_v3, 0.0  ;;  %v337_v7 = vsel %vm324_vm0, %v826_v4, 0.0  ;;  %v325_v8 = vsel %vm324_vm0, %v818_v5, 0.0  ;;  %v346_v12 = vsel %vm324_vm0, %v831_v9, 0.0  ;;  %v909_v21 = vpop.eup %908  ;;  %p949_p3 = por %p948_p2, %p947_p1 }
  0x1e   : > { %344 = vadd.xlane.f32.xlu1 %v343_v6  ;;  %338 = vadd.xlane.f32.xlu0 %v337_v7  ;;  %v340_v13 = vsel %vm324_vm0, %v827_v10, 0.0  ;;  %v328_v14 = vsel %vm324_vm0, %v819_v11, 0.0  ;;  %v331_v18 = vsel %vm324_vm0, %v822_v16, 0.0  ;;  %v334_v19 = vsel %vm324_vm0, %v823_v17, 0.0 }
  0x1f   : > { %326 = vadd.xlane.f32.xlu2 %v325_v8  ;;  %v350_v22 = vmul.f32 64.0, %v909_v21  ;;  %vm354_vm1 = vweird.f32 %v909_v21  ;;  %p950_p5 = pnand %p949_p3, %p945_p0 }
  0x21   : > { %v351_v23 = vsub.f32 1.0, %v350_v22 }
  0x23   : > { %v352_v24 = vmul.f32 %v909_v21, %v351_v23 }
  0x25   : > { %v353_v25 = vadd.f32 %v909_v21, %v352_v24 }
  0x26   : > { %347 = vadd.xlane.f32.xlu1 %v346_v12  ;;  %341 = vadd.xlane.f32.xlu0 %v340_v13  ;;  %v811_v12 = vld [vmem:[%s1332_s3] sm:$0xff] }
  0x27   : > { %329 = vadd.xlane.f32.xlu2 %v328_v14  ;;  %v1115_v26 = vsel %vm354_vm1, %v909_v21, %v353_v25 }
  0x2e   : > { %332 = vadd.xlane.f32.xlu0 %v331_v18  ;;  %335 = vadd.xlane.f32.xlu1 %v334_v19 }
  0x91   : > { %v345_v27 = vpop.xlane.xlu1 %344  ;;  %v339_v28 = vpop.xlane.xlu0 %338 }
  0x92   : > { %v362_v29 = vmul.f32 %v1115_v26, %v345_v27  ;;  %v360_v30 = vmul.f32 %v1115_v26, %v339_v28  ;;  %v327_v31 = vpop.xlane.xlu2 %326 }
  0x93   : > { %v356_v40 = vmul.f32 %v1115_v26, %v327_v31 }
  0x94   : > { %v1119_v32 = vsub.f32 %v830_v3, %v362_v29  ;;  %v1121_v33 = vsub.f32 %v826_v4, %v360_v30  ;;  %v814_v3 = vld [vmem:[%s1332_s3 + $0x18] sm:$0xff]  ;;  %v813_v4 = vld [vmem:[%s1332_s3 + $0x10] sm:$0xff] }
  0x95   : > { %v1139_v48 = vsub.f32 %v818_v5, %v356_v40  ;;  %836 = vmatpush.bf16.msra.mxu2 %v814_v3  ;;  %837 = vmatpush.bf16.msra.mxu3 %v814_v3 }
  0x96   : > { %v378_v34 = vmul.f32 %v1119_v32, %v1119_v32  ;;  %v376_v35 = vmul.f32 %v1121_v33, %v1121_v33  ;;  %586 = vmatpush.bf16.msra.mxu0 %v814_v3  ;;  %835 = vmatpush.bf16.msra.mxu1 %v814_v3 }
  0x97   : > { %v372_v59 = vmul.f32 %v1139_v48, %v1139_v48 }
  0x98   : > { %v398_v36 = vsel %vm324_vm0, %v378_v34, 0.0  ;;  %v392_v37 = vsel %vm324_vm0, %v376_v35, 0.0 }
  0x99   : > { %v348_v38 = vpop.xlane.xlu1 %347  ;;  %v342_v39 = vpop.xlane.xlu0 %341  ;;  %399 = vadd.xlane.f32.xlu1 %v398_v36  ;;  %393 = vadd.xlane.f32.xlu2 %v392_v37  ;;  %v380_v63 = vsel %vm324_vm0, %v372_v59, 0.0  ;;  %v1211_v59 = vld [vmem:[%s1331_s2] ss:$0 sm:$0xff] }
  0x9a   : > { %v363_v41 = vmul.f32 %v1115_v26, %v348_v38  ;;  %v361_v42 = vmul.f32 %v1115_v26, %v342_v39  ;;  %v330_v43 = vpop.xlane.xlu2 %329  ;;  %839 = vmatpush.bf16.msra.mxu2 %v813_v4  ;;  %840 = vmatpush.bf16.msra.mxu3 %v813_v4 }
  0x9b   : > { %v357_v44 = vmul.f32 %v1115_v26, %v330_v43  ;;  %587 = vmatpush.bf16.msra.mxu0 %v813_v4  ;;  %838 = vmatpush.bf16.msra.mxu1 %v813_v4 }
  0x9c   : > { %v1133_v45 = vsub.f32 %v831_v9, %v363_v41  ;;  %v1135_v46 = vsub.f32 %v827_v10, %v361_v42  ;;  %v812_v9 = vld [vmem:[%s1332_s3 + $0x8] sm:$0xff] }
  0x9d   : > { %v1137_v47 = vsub.f32 %v819_v11, %v357_v44 }
  0x9e   : > { %v377_v49 = vmul.f32 %v1135_v46, %v1135_v46  ;;  %v379_v50 = vmul.f32 %v1133_v45, %v1133_v45  ;;  %842 = vmatpush.bf16.msra.mxu2 %v812_v9  ;;  %843 = vmatpush.bf16.msra.mxu3 %v812_v9 }
  0x9f   : > { %v373_v51 = vmul.f32 %v1137_v47, %v1137_v47  ;;  %588 = vmatpush.bf16.msra.mxu0 %v812_v9  ;;  %841 = vmatpush.bf16.msra.mxu1 %v812_v9 }
  0xa0   : > { %v395_v52 = vsel %vm324_vm0, %v377_v49, 0.0  ;;  %v401_v53 = vsel %vm324_vm0, %v379_v50, 0.0 }
  0xa1   : > { %396 = vadd.xlane.f32.xlu0 %v395_v52  ;;  %v333_v54 = vpop.xlane.xlu0 %332  ;;  %402 = vadd.xlane.f32.xlu2 %v401_v53  ;;  %v383_v55 = vsel %vm324_vm0, %v373_v51, 0.0  ;;  %v336_v56 = vpop.xlane.xlu1 %335  ;;  %v1200_v52 = vld [vmem:[%s1330_s1] ss:$0 sm:$0xff] }
  0xa2   : > { %v358_v57 = vmul.f32 %v1115_v26, %v333_v54  ;;  %384 = vadd.xlane.f32.xlu1 %v383_v55  ;;  %v359_v58 = vmul.f32 %v1115_v26, %v336_v56  ;;  %845 = vmatpush.bf16.msra.mxu2 %v811_v12 }
  0xa3   : > { %846 = vmatpush.bf16.msra.mxu3 %v811_v12  ;;  %589 = vmatpush.bf16.msra.mxu0 %v811_v12 }
  0xa4   : > { %v1154_v60 = vsub.f32 %v822_v16, %v358_v57  ;;  %v1156_v61 = vsub.f32 %v823_v17, %v359_v58  ;;  %844 = vmatpush.bf16.msra.mxu1 %v811_v12 }
  0xa6   : > { %v374_v62 = vmul.f32 %v1154_v60, %v1154_v60  ;;  %v375_v1 = vmul.f32 %v1156_v61, %v1156_v61 }
  0xa8   : > { %v386_v0 = vsel %vm324_vm0, %v374_v62, 0.0  ;;  %v389_v2 = vsel %vm324_vm0, %v375_v1, 0.0 }
  0xa9   : > { %387 = vadd.xlane.f32.xlu2 %v386_v0  ;;  %381 = vadd.xlane.f32.xlu0 %v380_v63 }
  0xb1   : > { %390 = vadd.xlane.f32.xlu0 %v389_v2 }
 0x10c   : > { %v400_v5 = vpop.xlane.xlu1 %399  ;;  %v394_v6 = vpop.xlane.xlu2 %393 }
 0x10d   : > { %v410_v7 = vmul.f32 %v400_v5, %v1115_v26  ;;  %v408_v8 = vmul.f32 %v394_v6, %v1115_v26 }
 0x10f   : > { %v418_v10 = vadd.f32 1e-05, %v410_v7  ;;  %v416_v11 = vadd.f32 1e-05, %v408_v8 }
 0x111   : > { %910 = vrsqrt.f32 %v418_v10  ;;  %vm486_vm2 = vweird.f32 %v418_v10  ;;  %vm466_vm6 = vweird.f32 %v416_v11 }
 0x112   : > { %912 = vrsqrt.f32 %v416_v11 }
 0x114   : > { %v397_v13 = vpop.xlane.xlu0 %396  ;;  %v403_v14 = vpop.xlane.xlu2 %402 }
 0x115   : > { %v409_v15 = vmul.f32 %v397_v13, %v1115_v26  ;;  %v385_v16 = vpop.xlane.xlu1 %384  ;;  %v411_v17 = vmul.f32 %v403_v14, %v1115_v26 }
 0x116   : > { %v405_v18 = vmul.f32 %v385_v16, %v1115_v26 }
 0x117   : > { %v911_v19 = vpop.eup %910  ;;  %v1182_v20 = vadd.f32 1e-05, %v409_v15  ;;  %v1184_v21 = vadd.f32 1e-05, %v411_v17 }
 0x118   : > { %v913_v22 = vpop.eup %912  ;;  %v481_v23 = vmul.f32 %v911_v19, %v418_v10  ;;  %v413_v24 = vadd.f32 1e-05, %v405_v18  ;;  %vm487_vm3 = vweird.f32 %v911_v19 }
 0x119   : > { %v461_v25 = vmul.f32 %v913_v22, %v416_v11  ;;  %914 = vrsqrt.f32 %v1182_v20  ;;  %vm467_vm4 = vweird.f32 %v913_v22  ;;  %vm488_vm5 = vmor %vm486_vm2, %vm487_vm3  ;;  %vm476_vm8 = vweird.f32 %v1182_v20 }
 0x11a   : > { %v482_v27 = vmul.f32 %v911_v19, %v481_v23  ;;  %916 = vrsqrt.f32 %v413_v24  ;;  %vm468_vm7 = vmor %vm466_vm6, %vm467_vm4  ;;  %vm436_vm9 = vweird.f32 %v413_v24  ;;  %vm496_vm12 = vweird.f32 %v1184_v21 }
 0x11b   : > { %v462_v28 = vmul.f32 %v913_v22, %v461_v25  ;;  %918 = vrsqrt.f32 %v1184_v21 }
 0x11c   : > { %v483_v29 = vmul.f32 0.5, %v482_v27  ;;  %v382_v30 = vpop.xlane.xlu0 %381  ;;  %v388_v31 = vpop.xlane.xlu2 %387 }
 0x11d   : > { %v463_v34 = vmul.f32 0.5, %v462_v28  ;;  %v404_v35 = vmul.f32 %v382_v30, %v1115_v26  ;;  %v406_v36 = vmul.f32 %v388_v31, %v1115_v26 }
 0x11e   : > { %v484_v37 = vsub.f32 1.5, %v483_v29 }
 0x11f   : > { %v915_v38 = vpop.eup %914  ;;  %v464_v39 = vsub.f32 1.5, %v463_v34  ;;  %v1190_v40 = vadd.f32 1e-05, %v404_v35  ;;  %v1193_v44 = vadd.f32 1e-05, %v406_v36 }
 0x120   : > { %v917_v41 = vpop.eup %916  ;;  %v485_v42 = vmul.f32 %v911_v19, %v484_v37  ;;  %v471_v43 = vmul.f32 %v915_v38, %v1182_v20  ;;  %vm477_vm11 = vweird.f32 %v915_v38 }
 0x121   : > { %v919_v49 = vpop.eup %918  ;;  %v465_v50 = vmul.f32 %v913_v22, %v464_v39  ;;  %v431_v51 = vmul.f32 %v917_v41, %v413_v24  ;;  %920 = vrsqrt.f32 %v1190_v40  ;;  %vm437_vm10 = vweird.f32 %v917_v41  ;;  %vm478_vm15 = vmor %vm476_vm8, %vm477_vm11 }
 0x122   : > { %v489_v53 = vsel %vm488_vm5, %v911_v19, %v485_v42  ;;  %v472_v54 = vmul.f32 %v915_v38, %v471_v43  ;;  %v491_v55 = vmul.f32 %v919_v49, %v1184_v21  ;;  %922 = vrsqrt.f32 %v1193_v44  ;;  %vm1223_vm13 = vmor %vm436_vm9, %vm437_vm10 }
 0x123   : > { %v506_v56 = vmul.f32 %v489_v53, %v1119_v32  ;;  %v469_v57 = vsel %vm468_vm7, %v913_v22, %v465_v50  ;;  %v432_v58 = vmul.f32 %v917_v41, %v431_v51  ;;  %vm497_vm14 = vweird.f32 %v919_v49 }
 0x124   : > { %v504_v62 = vmul.f32 %v469_v57, %v1121_v33  ;;  %v473_v63 = vmul.f32 0.5, %v472_v54  ;;  %v492_v0 = vmul.f32 %v919_v49, %v491_v55  ;;  %v391_v1 = vpop.xlane.xlu0 %390  ;;  %vm498_vm1 = vmor %vm496_vm12, %vm497_vm14  ;;  %vm426_vm3 = vweird.f32 %v1190_v40 }
 0x125   : > { %v433_v2 = vmul.f32 0.5, %v432_v58  ;;  %v407_v32 = vmul.f32 %v391_v1, %v1115_v26  ;;  %v517_v3 = vmul.f32 %v1200_v52, %v506_v56  ;;  %vm446_vm4 = vweird.f32 %v1193_v44 }
 0x126   : > { %v474_v4 = vsub.f32 1.5, %v473_v63  ;;  %v493_v5 = vmul.f32 0.5, %v492_v0  ;;  %v515_v6 = vmul.f32 %v1200_v52, %v504_v62 }
 0x127   : > { %v921_v7 = vpop.eup %920  ;;  %v434_v8 = vsub.f32 1.5, %v433_v2  ;;  %v1219_v33 = vadd.f32 1e-05, %v407_v32  ;;  %v528_v9 = vadd.f32 %v1211_v59, %v517_v3 }
 0x128   : > { %v475_v10 = vmul.f32 %v915_v38, %v474_v4  ;;  %v494_v26 = vsub.f32 1.5, %v493_v5  ;;  %v421_v12 = vmul.f32 %v921_v7, %v1190_v40  ;;  %v526_v14 = vadd.f32 %v1211_v59, %v515_v6  ;;  %v923_v15 = vpop.eup %922 }
 0x129   : > { %v435_v13 = vmul.f32 %v917_v41, %v434_v8  ;;  %924 = vrsqrt.f32 %v1219_v33  ;;  %625 = vst.msk [vmem:[%s1232_s17 + $0x30] sm:$0xff] %vm324_vm0, %v528_v9  ;;  %v441_v22 = vmul.f32 %v923_v15, %v1193_v44  ;;  %vm427_vm2 = vweird.f32 %v921_v7 }
 0x12a   : > { %v479_v16 = vsel %vm478_vm15, %v915_v38, %v475_v10  ;;  %v495_v17 = vmul.f32 %v919_v49, %v494_v26  ;;  %v422_v18 = vmul.f32 %v921_v7, %v421_v12  ;;  %623 = vst.msk [vmem:[%s1232_s17 + $0x20] sm:$0xff] %vm324_vm0, %v526_v14  ;;  %vm428_vm5 = vmor %vm426_vm3, %vm427_vm2  ;;  %vm447_vm6 = vweird.f32 %v923_v15 }
 0x12b   : > { %v505_v19 = vmul.f32 %v479_v16, %v1135_v46  ;;  %v439_v20 = vsel %vm1223_vm13, %v917_v41, %v435_v13  ;;  %v442_v28 = vmul.f32 %v923_v15, %v441_v22  ;;  %vm448_vm7 = vmor %vm446_vm4, %vm447_vm6  ;;  %vm456_vm9 = vweird.f32 %v1219_v33 }
 0x12c   : > { %v501_v23 = vmul.f32 %v439_v20, %v1137_v47  ;;  %v499_v24 = vsel %vm498_vm1, %v919_v49, %v495_v17  ;;  %v423_v25 = vmul.f32 0.5, %v422_v18 }
 0x12d   : > { %v507_v27 = vmul.f32 %v499_v24, %v1133_v45  ;;  %v516_v29 = vmul.f32 %v1200_v52, %v505_v19  ;;  %v443_v31 = vmul.f32 0.5, %v442_v28 }
 0x12e   : > { %v424_v46 = vsub.f32 1.5, %v423_v25  ;;  %v512_v30 = vmul.f32 %v1200_v52, %v501_v23 }
 0x12f   : > { %v925_v21 = vpop.eup %924  ;;  %v527_v34 = vadd.f32 %v1211_v59, %v516_v29  ;;  %v518_v47 = vmul.f32 %v1200_v52, %v507_v27  ;;  %v444_v37 = vsub.f32 1.5, %v443_v31 }
 0x130   : > { %v425_v35 = vmul.f32 %v921_v7, %v424_v46  ;;  %v451_v45 = vmul.f32 %v925_v21, %v1219_v33  ;;  %v523_v36 = vadd.f32 %v1211_v59, %v512_v30  ;;  %vm457_vm8 = vweird.f32 %v925_v21 }
 0x131   : > { %v532_v38 = vpack.c.bf16 %v527_v34, %v526_v14  ;;  %624 = vst.msk [vmem:[%s1232_s17 + $0x28] sm:$0xff] %vm324_vm0, %v527_v34  ;;  %v529_v39 = vadd.f32 %v1211_v59, %v518_v47  ;;  %v445_v43 = vmul.f32 %v923_v15, %v444_v37  ;;  %vm458_vm10 = vmor %vm456_vm9, %vm457_vm8 }
 0x132   : > { %v429_v40 = vsel %vm428_vm5, %v921_v7, %v425_v35  ;;  %v452_v41 = vmul.f32 %v925_v21, %v451_v45  ;;  %620 = vst.msk [vmem:[%s1232_s17 + $0x8] sm:$0xff] %vm324_vm0, %v523_v36 }
 0x133   : > { %v500_v42 = vmul.f32 %v429_v40, %v1139_v48  ;;  %802 = vmatmul.msk.bf16.vlgmr.msra.gmra.mxu2 %vm324_vm0, %v532_v38  ;;  %v533_v49 = vpack.c.bf16 %v529_v39, %v528_v9  ;;  %626 = vst.msk [vmem:[%s1232_s17 + $0x38] sm:$0xff] %vm324_vm0, %v529_v39  ;;  %v449_v51 = vsel %vm448_vm7, %v923_v15, %v445_v43 }
 0x134   : > { %v453_v50 = vmul.f32 0.5, %v452_v41  ;;  %v502_v54 = vmul.f32 %v449_v51, %v1154_v60 }
 0x135   : > { %803 = vmatmul.msk.bf16.vlgmr.msra.gmra.mxu3 %vm324_vm0, %v533_v49  ;;  %v511_v53 = vmul.f32 %v1200_v52, %v500_v42 }
 0x136   : > { %v454_v48 = vsub.f32 1.5, %v453_v50  ;;  %v513_v44 = vmul.f32 %v1200_v52, %v502_v54 }
 0x137   : > { %v522_v55 = vadd.f32 %v1211_v59, %v511_v53 }
 0x138   : > { %v455_v56 = vmul.f32 %v925_v21, %v454_v48  ;;  %v524_v60 = vadd.f32 %v1211_v59, %v513_v44 }
 0x139   : > { %v530_v57 = vpack.c.bf16 %v523_v36, %v522_v55  ;;  %619 = vst.msk [vmem:[%s1232_s17] sm:$0xff] %vm324_vm0, %v522_v55 }
 0x13a   : > { %v459_v58 = vsel %vm458_vm10, %v925_v21, %v455_v56  ;;  %621 = vst.msk [vmem:[%s1232_s17 + $0x10] sm:$0xff] %vm324_vm0, %v524_v60 }
 0x13b   : > { %v503_v62 = vmul.f32 %v459_v58, %v1156_v61  ;;  %800 = vmatmul.msk.bf16.vlgmr.msra.gmra.mxu0 %vm324_vm0, %v530_v57 }
 0x13d   : > { %v514_v63 = vmul.f32 %v1200_v52, %v503_v62 }
 0x13f   : > { %v525_v0 = vadd.f32 %v1211_v59, %v514_v63 }
 0x141   : > { %v531_v1 = vpack.c.bf16 %v525_v0, %v524_v60  ;;  %622 = vst.msk [vmem:[%s1232_s17 + $0x18] sm:$0xff] %vm324_vm0, %v525_v0 }
 0x143   : > { %801 = vmatmul.msk.bf16.vlgmr.msra.gmra.mxu1 %vm324_vm0, %v531_v1 }
 0x144   : > { %953 = shalt.err (!%p950_p5)
}
 0x145   : > { %s1007_s8 = smov 128   ;;  %s1008_s17 = smov 8   ;;  %v907_v61 = vld [vmem:[%s1333_s4] ss:$0 sm:$0xff] }
 0x146   : > { %847 = dma.vmem_to_hbm [thread:$0]  (%p1084_p4), %s656_s28, 1024, %s658_s30, %s637_s12, %s1007_s8, %s1007_s8, %s1008_s17  }
 0x147   : > { %s810_s18 = sshll.u32 %s1101_s11, 6 }
 0x148   : > { %s302_s0 = scalar_lea.vmem %s1334_s5, %s810_s18 }
 0x1b6   : > { %v601_v52 = vpop.f32.mrf.mxu2 }
 0x1b7   : > { %v602_v59 = vadd.f32 %v907_v61, %v601_v52 }
 0x1b8   : > { %v606_v2 = vpop.f32.mrf.mxu3  ;;  %v591_v32 = vpop.f32.mrf.mxu0 }
 0x1b9   : > { %615 = vst [vmem:[%s302_s0 + $0x20] sm:$0xff] %v602_v59  ;;  %v607_v3 = vadd.f32 %v907_v61, %v606_v2  ;;  %v592_v4 = vadd.f32 %v907_v61, %v591_v32 }
 0x1bb   : > { %617 = vst [vmem:[%s302_s0 + $0x30] sm:$0xff] %v607_v3 }
 0x1bc   : > { %611 = vst [vmem:[%s302_s0] sm:$0xff] %v592_v4 }
 0x1be   : > { %v603_v5 = vpop.f32.mrf.mxu2 }
 0x1bf   : > { %v604_v6 = vadd.f32 %v907_v61, %v603_v5 }
 0x1c0   : > { %v608_v7 = vpop.f32.mrf.mxu3  ;;  %v593_v8 = vpop.f32.mrf.mxu0 }
 0x1c1   : > { %616 = vst [vmem:[%s302_s0 + $0x28] sm:$0xff] %v604_v6  ;;  %v609_v33 = vadd.f32 %v907_v61, %v608_v7  ;;  %v594_v9 = vadd.f32 %v907_v61, %v593_v8  ;;  %v596_v10 = vpop.f32.mrf.mxu1 }
 0x1c2   : > { %v597_v11 = vadd.f32 %v907_v61, %v596_v10 }
 0x1c3   : > { %618 = vst [vmem:[%s302_s0 + $0x38] sm:$0xff] %v609_v33 }
 0x1c4   : > { %612 = vst [vmem:[%s302_s0 + $0x8] sm:$0xff] %v594_v9 }
 0x1c5   : > { %613 = vst [vmem:[%s302_s0 + $0x10] sm:$0xff] %v597_v11 }
 0x1c9   : > { %v598_v26 = vpop.f32.mrf.mxu1 }
 0x1ca   : > { %v599_v12 = vadd.f32 %v907_v61, %v598_v26 }
 0x1cc   : > { %614 = vst [vmem:[%s302_s0 + $0x18] sm:$0xff] %v599_v12 }
 0x1cd PF: > { %p853_p4 = scmp.ge.s32.totalorder %s1004_s26, 2  ;;  %s684_s7 = sand.u32 1, %s984_s21  }
 0x1ce   : > { %s685_s11 = scalar_lea.sflag [#allocation3], %s684_s7 }
 0x1cf   : > { %p850_p6 = pnand %p853_p4, %p1091_p8 }
 0x1d1   : > { %p851_p7 = pneg %p850_p6 }
 0x1d3   : > { %979 = dma.done.wait (%p851_p7), %s685_s11, 1024  }
 0x1d4   : > { %981 = vsyncadd (%p851_p7), %s685_s11, 4294966272  ;;  %s20_s26 = sadd.s32 1, %s1004_s26   ;;  %s1342_s21 = smov %s988_s22 }
 0x1d5   : > { %p17_p9 = scmp.ge.s32.totalorder %s20_s26, 4   ;;  %s1343_s22 = smov %s992_s23 }
 0x1d6   : > { %s1344_s23 = smov %s1097_s10  ;;  %s1345_s24 = smov %s1000_s25 }
 0x1d7   : > { %s1346_s25 = smov %s1348_s29  ;;  %19 = sbr.rel (!%p17_p9) target bundleno = 6 (0x6), region = 87 }
 0x1dc   :  { %691 = vsyncpa [#allocation3], 1 }
 0x1dd   :  { %693 = vsyncpa [#allocation3 + $0x1], 1 }

// kernel: _forward_impl.3
= control target key start
LH: loop header
LB: loop body
LE: loop exit
PB: predicated region body
PF: predicated region fallthrough
CT: control target
= control target key end

     0   :  { %s3617_s21 = smov 0   ;;  %s3619_s22 = smov 0   ;;  %s4934_s0 = inlined_call_operand.vmem [shape: bf16[2,64,64], index: 0, kind: input, shape index: {}]   ;;  %s4935_s1 = inlined_call_operand.vmem [shape: f32[2,1,64], index: 1, kind: input, shape index: {}]   ;;  %s4936_s2 = inlined_call_operand.vmem [shape: f32[1,64], index: 2, kind: input, shape index: {}]   ;;  %s4937_s3 = inlined_call_operand.vmem [shape: f32[1,64], index: 3, kind: input, shape index: {}]   ;;  %s4938_s4 = inlined_call_operand.vmem [shape: bf16[64,64], index: 4, kind: input, shape index: {}]   ;;  %s4939_s5 = inlined_call_operand.vmem [shape: f32[1,64], index: 5, kind: input, shape index: {}]   ;;  %s4940_s6 = inlined_call_operand.vmem [shape: bf16[64,128], index: 6, kind: input, shape index: {}]   ;;  %s4941_s7 = inlined_call_operand.vmem [shape: f32[1,128], index: 7, kind: input, shape index: {}]   ;;  %s4942_s8 = inlined_call_operand.vmem [shape: bf16[64,64], index: 8, kind: input, shape index: {}]   ;;  %s4943_s9 = inlined_call_operand.vmem [shape: f32[1,64], index: 9, kind: input, shape index: {}]   ;;  %s4944_s10 = inlined_call_operand.vmem [shape: f32[1,64], index: 10, kind: input, shape index: {}]   ;;  %s4945_s11 = inlined_call_operand.vmem [shape: f32[1,64], index: 11, kind: input, shape index: {}]   ;;  %s4946_s12 = inlined_call_operand.vmem [shape: bf16[64,128], index: 12, kind: input, shape index: {}]   ;;  %s4947_s13 = inlined_call_operand.vmem [shape: f32[1,128], index: 13, kind: input, shape index: {}]   ;;  %s4948_s14 = inlined_call_operand.vmem [shape: bf16[128,64], index: 14, kind: input, shape index: {}]   ;;  %s4949_s15 = inlined_call_operand.vmem [shape: f32[1,64], index: 15, kind: input, shape index: {}]   ;;  %s4950_s16 = inlined_call_operand.vmem [shape: bf16[2,64,64], index: 16, kind: output, shape index: {}]  }
   0x1   :  { %4951 = sst [smem:[#allocation4_spill]] %s4934_s0  ;;  %s3621_s23 = smov 0  }
   0x2 LB: > { %s38_s24 = sadd.s32 1, %s3518_s22  ;;  %p2943_p0 = scmp.ge.s32.totalorder %s3522_s23, 1  ;;  %s3522_s23 = sphi %s3621_s23, %s26_s23   ;;  %s3518_s22 = sphi %s3619_s22, %s4970_s22   ;;  %s3514_s21 = sphi %s3617_s21, %s4969_s21  }
   0x3   : > { %p40_p1 = scmp.ge.s32.totalorder %s38_s24, 2  ;;  %p484_p2 = scmp.lt.s32.totalorder %s3522_s23, 3 }
   0x5   : > { %s4972_s24 = smov (%p40_p1, %s38_s24), 0  ;;  %p485_p3 = pnand %p2943_p0, %p484_p2 }
   0x6   : > { %p541_p4 = scmp.lt.s32.totalorder (!%p485_p3), %s3514_s21, 1  ;;  %s4952_s0 = sld [smem:[#allocation4_spill]] (!%p485_p3) }
   0x7   : > { %488 = sbr.rel (%p485_p3) target bundleno = 2648 (0xa58), region = 84  ;;  %s3526_s18 = smov (!%p485_p3), 112  }
   0x8   : > { %s3527_s19 = smov (!%p485_p3), 96   ;;  %s3528_s20 = smov (!%p485_p3), 80  }
   0xc   : > { %s4974_s21 = smov (!%p541_p4, %s3514_s21), 1  ;;  %vm582_vm0 = vcmask 523264   ;;  %v3524_v20 = vmov 64.0  }
   0xd   : > { %s3126_s25 = sshll.u32 %s4974_s21, 5  ;;  %s548_s28 = scalar_lea.vmem %s4935_s1, %s4974_s21  ;;  %3306 = vrcp.f32 %v3524_v20 }
   0xe   : > { %s545_s17 = scalar_lea.vmem %s4952_s0, %s3126_s25  ;;  %s3530_s0 = smov 32  }
   0xf   : > { %v3193_v0 = vld [vmem:[%s545_s17 + $0x10] sm:$0xff]   ;;  %v3161_v1 = vld [vmem:[%s545_s17] sm:$0xff]   ;;  %v3194_v2 = vld [vmem:[%s545_s17 + $0x18] sm:$0xff]   ;;  %s4900_s27 = scalar_lea.vmem %s4950_s16, %s3126_s25 }
  0x10   : > { %v3647_v3 = vunpack.c.l.bf16 %v3193_v0  ;;  %v3649_v4 = vunpack.c.l.bf16 %v3161_v1  ;;  %v3651_v5 = vunpack.c.l.bf16 %v3194_v2  ;;  %v3664_v9 = vunpack.c.h.bf16 %v3193_v0  ;;  %v3192_v15 = vld [vmem:[%s545_s17 + $0x8] sm:$0xff]   ;;  %s3525_s17 = smov 64  }
  0x11   : > { %v3666_v10 = vunpack.c.h.bf16 %v3161_v1  ;;  %v3669_v11 = vunpack.c.h.bf16 %v3194_v2  ;;  %v3683_v16 = vunpack.c.h.bf16 %v3192_v15  ;;  %v3685_v17 = vunpack.c.l.bf16 %v3192_v15 }
  0x12   : > { %v3655_v6 = vsel %vm582_vm0, %v3647_v3, 0.0  ;;  %v583_v7 = vsel %vm582_vm0, %v3649_v4, 0.0  ;;  %v3662_v8 = vsel %vm582_vm0, %v3651_v5, 0.0  ;;  %v3673_v12 = vsel %vm582_vm0, %v3664_v9, 0.0 }
  0x13   : > { %596 = vadd.xlane.f32.xlu0 %v3655_v6  ;;  %584 = vadd.xlane.f32.xlu1 %v583_v7  ;;  %v586_v13 = vsel %vm582_vm0, %v3666_v10, 0.0  ;;  %v3679_v14 = vsel %vm582_vm0, %v3669_v11, 0.0  ;;  %v592_v18 = vsel %vm582_vm0, %v3683_v16, 0.0  ;;  %v589_v19 = vsel %vm582_vm0, %v3685_v17, 0.0  ;;  %v3307_v21 = vpop.eup %3306 }
  0x14   : > { %602 = vadd.xlane.f32.xlu2 %v3662_v8  ;;  %v608_v22 = vmul.f32 64.0, %v3307_v21  ;;  %vm612_vm1 = vweird.f32 %v3307_v21 }
  0x16   : > { %v609_v23 = vsub.f32 1.0, %v608_v22  ;;  %v3128_v22 = vld [vmem:[%s4940_s6] sm:$0xff] }
  0x18   : > { %v610_v24 = vmul.f32 %v3307_v21, %v609_v23 }
  0x1a   : > { %v611_v25 = vadd.f32 %v3307_v21, %v610_v24 }
  0x1b   : > { %599 = vadd.xlane.f32.xlu0 %v3673_v12  ;;  %587 = vadd.xlane.f32.xlu1 %v586_v13 }
  0x1c   : > { %605 = vadd.xlane.f32.xlu2 %v3679_v14  ;;  %v3691_v26 = vsel %vm612_vm1, %v3307_v21, %v611_v25  ;;  %v3130_v21 = vld [vmem:[%s4940_s6 + $0x10] sm:$0xff] }
  0x23   : > { %593 = vadd.xlane.f32.xlu1 %v592_v18  ;;  %590 = vadd.xlane.f32.xlu0 %v589_v19 }
  0x2b   : > { %951 = vadd.xlane.f32.xlu1 %v583_v7 }
  0x86   : > { %v597_v27 = vpop.xlane.xlu0 %596  ;;  %v585_v28 = vpop.xlane.xlu1 %584 }
  0x87   : > { %v618_v29 = vmul.f32 %v3691_v26, %v597_v27  ;;  %v603_v31 = vpop.xlane.xlu2 %602  ;;  %v614_v39 = vmul.f32 %v3691_v26, %v585_v28 }
  0x88   : > { %v620_v38 = vmul.f32 %v3691_v26, %v603_v31 }
  0x89   : > { %v3695_v30 = vsub.f32 %v3647_v3, %v618_v29  ;;  %v3718_v46 = vsub.f32 %v3649_v4, %v614_v39 }
  0x8a   : > { %v3711_v42 = vsub.f32 %v3651_v5, %v620_v38 }
  0x8b   : > { %v634_v32 = vmul.f32 %v3695_v30, %v3695_v30  ;;  %v630_v53 = vmul.f32 %v3718_v46, %v3718_v46 }
  0x8c   : > { %v636_v51 = vmul.f32 %v3711_v42, %v3711_v42 }
  0x8d   : > { %v650_v33 = vsel %vm582_vm0, %v634_v32, 0.0  ;;  %v638_v58 = vsel %vm582_vm0, %v630_v53, 0.0 }
  0x8e   : > { %651 = vadd.xlane.f32.xlu2 %v650_v33  ;;  %v600_v34 = vpop.xlane.xlu0 %599  ;;  %v588_v35 = vpop.xlane.xlu1 %587  ;;  %v656_v55 = vsel %vm582_vm0, %v636_v51, 0.0 }
  0x8f   : > { %v619_v36 = vmul.f32 %v3691_v26, %v600_v34  ;;  %v615_v37 = vmul.f32 %v3691_v26, %v588_v35  ;;  %v606_v45 = vpop.xlane.xlu2 %605 }
  0x90   : > { %v621_v50 = vmul.f32 %v3691_v26, %v606_v45 }
  0x91   : > { %v3705_v40 = vsub.f32 %v3664_v9, %v619_v36  ;;  %v3708_v41 = vsub.f32 %v3666_v10, %v615_v37 }
  0x92   : > { %v3729_v54 = vsub.f32 %v3669_v11, %v621_v50 }
  0x93   : > { %v635_v43 = vmul.f32 %v3705_v40, %v3705_v40  ;;  %v631_v44 = vmul.f32 %v3708_v41, %v3708_v41 }
  0x94   : > { %v637_v61 = vmul.f32 %v3729_v54, %v3729_v54 }
  0x95   : > { %v653_v47 = vsel %vm582_vm0, %v635_v43, 0.0  ;;  %v641_v48 = vsel %vm582_vm0, %v631_v44, 0.0 }
  0x96   : > { %954 = vadd.xlane.f32.xlu2 %v586_v13  ;;  %654 = vadd.xlane.f32.xlu0 %v653_v47  ;;  %v594_v49 = vpop.xlane.xlu1 %593  ;;  %v591_v57 = vpop.xlane.xlu0 %590  ;;  %v659_v1 = vsel %vm582_vm0, %v637_v61, 0.0 }
  0x97   : > { %642 = vadd.xlane.f32.xlu1 %v641_v48  ;;  %v617_v52 = vmul.f32 %v3691_v26, %v594_v49  ;;  %v616_v60 = vmul.f32 %v3691_v26, %v591_v57 }
  0x99   : > { %v3733_v56 = vsub.f32 %v3683_v16, %v617_v52  ;;  %v3743_v0 = vsub.f32 %v3685_v17, %v616_v60 }
  0x9b   : > { %v633_v62 = vmul.f32 %v3733_v56, %v3733_v56  ;;  %v632_v13 = vmul.f32 %v3743_v0, %v3743_v0 }
  0x9d   : > { %v647_v2 = vsel %vm582_vm0, %v633_v62, 0.0 }
  0x9e   : > { %657 = vadd.xlane.f32.xlu2 %v656_v55  ;;  %639 = vadd.xlane.f32.xlu0 %v638_v58  ;;  %v952_v59 = vpop.xlane.xlu1 %951 }
  0x9f   : > { %957 = vadd.xlane.f32.xlu1 %v589_v19  ;;  %v981_v63 = vmul.f32 %v952_v59, %v3691_v26  ;;  %v644_v19 = vsel %vm582_vm0, %v632_v13, 0.0 }
  0xa1   : > { %v3748_v7 = vsub.f32 %v3649_v4, %v981_v63 }
  0xa3   : > { %v997_v15 = vmul.f32 %v3748_v7, %v3748_v7 }
  0xa5   : > { %v1005_v20 = vsel %vm582_vm0, %v997_v15, 0.0 }
  0xa6   : > { %960 = vadd.xlane.f32.xlu2 %v592_v18  ;;  %660 = vadd.xlane.f32.xlu0 %v659_v1  ;;  %v3131_v18 = vld [vmem:[%s4940_s6 + $0x18] sm:$0xff] }
  0xa7   : > { %648 = vadd.xlane.f32.xlu1 %v647_v2  ;;  %3198 = vmatpush.bf16.msra.mxu1 %v3131_v18 }
  0xa8   : > { %844 = vmatpush.bf16.msra.mxu0 %v3131_v18 }
  0xab   : > { %3199 = vmatpush.bf16.msra.mxu1 %v3130_v21 }
  0xac   : > { %845 = vmatpush.bf16.msra.mxu0 %v3130_v21 }
  0xae   : > { %963 = vadd.xlane.f32.xlu2 %v3655_v6  ;;  %645 = vadd.xlane.f32.xlu0 %v644_v19 }
  0xaf   : > { %1006 = vadd.xlane.f32.xlu1 %v1005_v20 }
  0xb6   : > { %966 = vadd.xlane.f32.xlu0 %v3673_v12  ;;  %v3129_v12 = vld [vmem:[%s4940_s6 + $0x8] sm:$0xff] }
  0xb7   : > { %972 = vadd.xlane.f32.xlu1 %v3679_v14  ;;  %3200 = vmatpush.bf16.msra.mxu1 %v3129_v12 }
  0xb8   : > { %846 = vmatpush.bf16.msra.mxu0 %v3129_v12 }
  0xbb   : > { %3201 = vmatpush.bf16.msra.mxu1 %v3128_v22 }
  0xbc   : > { %847 = vmatpush.bf16.msra.mxu0 %v3128_v22 }
  0xbe   : > { %969 = vadd.xlane.f32.xlu0 %v3662_v8 }
 0x101   : > { %v652_v6 = vpop.xlane.xlu2 %651 }
 0x102   : > { %v666_v14 = vmul.f32 %v652_v6, %v3691_v26 }
 0x104   : > { %v674_v8 = vadd.f32 1e-05, %v666_v14 }
 0x106   : > { %3308 = vrsqrt.f32 %v674_v8  ;;  %vm724_vm3 = vweird.f32 %v674_v8 }
 0x109   : > { %v955_v23 = vpop.xlane.xlu2 %954  ;;  %v655_v24 = vpop.xlane.xlu0 %654 }
 0x10a   : > { %v982_v25 = vmul.f32 %v955_v23, %v3691_v26  ;;  %v667_v27 = vmul.f32 %v655_v24, %v3691_v26  ;;  %v643_v28 = vpop.xlane.xlu1 %642 }
 0x10b   : > { %v663_v29 = vmul.f32 %v643_v28, %v3691_v26 }
 0x10c   : > { %v3776_v31 = vpop.eup %3308  ;;  %v3779_v32 = vsub.f32 %v3666_v10, %v982_v25  ;;  %v675_v33 = vadd.f32 1e-05, %v667_v27 }
 0x10d   : > { %v719_v34 = vmul.f32 %v3776_v31, %v674_v8  ;;  %v3782_v35 = vadd.f32 1e-05, %v663_v29  ;;  %vm725_vm2 = vweird.f32 %v3776_v31 }
 0x10e   : > { %3310 = vrsqrt.f32 %v675_v33  ;;  %v998_v36 = vmul.f32 %v3779_v32, %v3779_v32  ;;  %vm734_vm4 = vweird.f32 %v675_v33  ;;  %vm3813_vm6 = vmor %vm724_vm3, %vm725_vm2 }
 0x10f   : > { %v720_v37 = vmul.f32 %v3776_v31, %v719_v34  ;;  %3312 = vrsqrt.f32 %v3782_v35  ;;  %vm694_vm7 = vweird.f32 %v3782_v35 }
 0x110   : > { %v1008_v38 = vsel %vm582_vm0, %v998_v36, 0.0 }
 0x111   : > { %v721_v39 = vmul.f32 0.5, %v720_v37  ;;  %1009 = vadd.xlane.f32.xlu2 %v1008_v38  ;;  %v658_v43 = vpop.xlane.xlu2 %657  ;;  %v640_v44 = vpop.xlane.xlu0 %639 }
 0x112   : > { %v668_v45 = vmul.f32 %v658_v43, %v3691_v26  ;;  %v662_v47 = vmul.f32 %v640_v44, %v3691_v26  ;;  %v958_v48 = vpop.xlane.xlu1 %957  ;;  %v3851_v43 = vld [vmem:[%s4936_s2] ss:$0 sm:$0xff] }
 0x113   : > { %v983_v49 = vmul.f32 %v958_v48, %v3691_v26  ;;  %v722_v51 = vsub.f32 1.5, %v721_v39 }
 0x114   : > { %v3311_v50 = vpop.eup %3310  ;;  %v3792_v52 = vadd.f32 1e-05, %v668_v45  ;;  %v3794_v53 = vadd.f32 1e-05, %v662_v47 }
 0x115   : > { %v3796_v55 = vpop.eup %3312  ;;  %v729_v57 = vmul.f32 %v3311_v50, %v675_v33  ;;  %v3799_v58 = vsub.f32 %v3685_v17, %v983_v49  ;;  %v723_v61 = vmul.f32 %v3776_v31, %v722_v51  ;;  %vm735_vm5 = vweird.f32 %v3311_v50 }
 0x116   : > { %v689_v59 = vmul.f32 %v3796_v55, %v3782_v35  ;;  %3314 = vrsqrt.f32 %v3792_v52  ;;  %vm3826_vm8 = vmor %vm734_vm4, %vm735_vm5  ;;  %vm695_vm9 = vweird.f32 %v3796_v55  ;;  %vm744_vm11 = vweird.f32 %v3792_v52 }
 0x117   : > { %v730_v60 = vmul.f32 %v3311_v50, %v729_v57  ;;  %3316 = vrsqrt.f32 %v3794_v53  ;;  %v999_v63 = vmul.f32 %v3799_v58, %v3799_v58  ;;  %v727_v22 = vsel %vm3813_vm6, %v3776_v31, %v723_v61  ;;  %vm3855_vm10 = vmor %vm694_vm7, %vm695_vm9 }
 0x118   : > { %v690_v62 = vmul.f32 %v3796_v55, %v689_v59  ;;  %v762_v39 = vmul.f32 %v727_v22, %v3695_v30  ;;  %vm684_vm12 = vweird.f32 %v3794_v53 }
 0x119   : > { %v731_v1 = vmul.f32 0.5, %v730_v60  ;;  %v961_v2 = vpop.xlane.xlu2 %960  ;;  %v661_v13 = vpop.xlane.xlu0 %660  ;;  %v1011_v18 = vsel %vm582_vm0, %v999_v63, 0.0 }
 0x11a   : > { %v691_v15 = vmul.f32 0.5, %v690_v62  ;;  %v984_v19 = vmul.f32 %v961_v2, %v3691_v26  ;;  %v669_v20 = vmul.f32 %v661_v13, %v3691_v26  ;;  %v649_v21 = vpop.xlane.xlu1 %648  ;;  %1012 = vadd.xlane.f32.xlu2 %v1011_v18 }
 0x11b   : > { %v732_v12 = vsub.f32 1.5, %v731_v1  ;;  %v665_v14 = vmul.f32 %v649_v21, %v3691_v26 }
 0x11c   : > { %v3819_v8 = vpop.eup %3314  ;;  %v692_v24 = vsub.f32 1.5, %v691_v15  ;;  %v3831_v25 = vsub.f32 %v3683_v16, %v984_v19  ;;  %v3833_v27 = vadd.f32 1e-05, %v669_v20 }
 0x11d   : > { %v3317_v28 = vpop.eup %3316  ;;  %v733_v29 = vmul.f32 %v3311_v50, %v732_v12  ;;  %v739_v34 = vmul.f32 %v3819_v8, %v3792_v52  ;;  %v3838_v31 = vadd.f32 1e-05, %v665_v14  ;;  %vm745_vm14 = vweird.f32 %v3819_v8 }
 0x11e   : > { %v693_v33 = vmul.f32 %v3796_v55, %v692_v24  ;;  %v679_v36 = vmul.f32 %v3317_v28, %v3794_v53  ;;  %3318 = vrsqrt.f32 %v3833_v27  ;;  %v1000_v47 = vmul.f32 %v3831_v25, %v3831_v25  ;;  %vm3904_vm4 = vmor %vm744_vm11, %vm745_vm14 }
 0x11f   : > { %v737_v37 = vsel %vm3826_vm8, %v3311_v50, %v733_v29  ;;  %v740_v38 = vmul.f32 %v3819_v8, %v739_v34  ;;  %3320 = vrsqrt.f32 %v3838_v31  ;;  %vm685_vm13 = vweird.f32 %v3317_v28 }
 0x120   : > { %v680_v45 = vmul.f32 %v3317_v28, %v679_v36  ;;  %v697_v48 = vsel %vm3855_vm10, %v3796_v55, %v693_v33  ;;  %v763_v51 = vmul.f32 %v737_v37, %v3705_v40  ;;  %v1014_v59 = vsel %vm582_vm0, %v1000_v47, 0.0  ;;  %v3876_v40 = vld [vmem:[%s4937_s3] ss:$0 sm:$0xff]  ;;  %vm686_vm15 = vmor %vm684_vm12, %vm685_vm13 }
 0x121   : > { %v741_v30 = vmul.f32 0.5, %v740_v38  ;;  %v964_v49 = vpop.xlane.xlu2 %963  ;;  %v646_v50 = vpop.xlane.xlu0 %645  ;;  %1015 = vadd.xlane.f32.xlu0 %v1014_v59  ;;  %v773_v55 = vmul.f32 %v3851_v43, %v762_v39  ;;  %v759_v13 = vmul.f32 %v697_v48, %v3708_v41  ;;  %vm754_vm1 = vweird.f32 %v3833_v27 }
 0x122   : > { %v681_v57 = vmul.f32 0.5, %v680_v45  ;;  %v985_v35 = vmul.f32 %v964_v49, %v3691_v26  ;;  %v664_v60 = vmul.f32 %v646_v50, %v3691_v26  ;;  %v3868_v61 = vpop.xlane.xlu1 %1006  ;;  %v774_v18 = vmul.f32 %v3851_v43, %v763_v51 }
 0x123   : > { %v742_v62 = vsub.f32 1.5, %v741_v30  ;;  %vm714_vm2 = vweird.f32 %v3838_v31  ;;  %v784_v14 = vadd.f32 %v3876_v40, %v773_v55  ;;  %v770_v24 = vmul.f32 %v3851_v43, %v759_v13 }
 0x124   : > { %v3319_v63 = vpop.eup %3318  ;;  %v682_v1 = vsub.f32 1.5, %v681_v57  ;;  %v3878_v2 = vadd.f32 1e-05, %v664_v60  ;;  %v3886_v20 = vsub.f32 %v3647_v3, %v985_v35  ;;  %v785_v34 = vadd.f32 %v3876_v40, %v774_v18 }
 0x125   : > { %v3881_v15 = vpop.eup %3320  ;;  %v749_v19 = vmul.f32 %v3319_v63, %v3833_v27  ;;  %v743_v21 = vmul.f32 %v3819_v8, %v742_v62  ;;  %vm755_vm3 = vweird.f32 %v3319_v63  ;;  %v781_v55 = vadd.f32 %v3876_v40, %v770_v24 }
 0x126   : > { %v683_v6 = vmul.f32 %v3317_v28, %v682_v1  ;;  %v709_v12 = vmul.f32 %v3881_v15, %v3838_v31  ;;  %3322 = vrsqrt.f32 %v3878_v2  ;;  %vm715_vm5 = vweird.f32 %v3881_v15  ;;  %vm3922_vm6 = vmor %vm754_vm1, %vm755_vm3 }
 0x127   : > { %v750_v41 = vmul.f32 %v3319_v63, %v749_v19  ;;  %v747_v37 = vsel %vm3904_vm4, %v3819_v8, %v743_v21  ;;  %v790_v45 = vpack.c.bf16 %v785_v34, %v784_v14  ;;  %vm3941_vm7 = vmor %vm714_vm2, %vm715_vm5  ;;  %vm704_vm8 = vweird.f32 %v3878_v2 }
 0x128   : > { %v687_v22 = vsel %vm686_vm15, %v3317_v28, %v683_v6  ;;  %v710_v23 = vmul.f32 %v3881_v15, %v709_v12  ;;  %v1001_v28 = vmul.f32 %v3886_v20, %v3886_v20  ;;  %v764_v27 = vmul.f32 %v747_v37, %v3711_v42 }
 0x129   : > { %v751_v29 = vmul.f32 0.5, %v750_v41  ;;  %v967_v33 = vpop.xlane.xlu0 %966  ;;  %v758_v36 = vmul.f32 %v687_v22, %v3718_v46  ;;  %2966 = vmatmul.msk.bf16.vlgmr.msra.gmra.mxu1 %vm582_vm0, %v790_v45  ;;  %v1029_v45 = vmul.f32 %v3868_v61, %v3691_v26 }
 0x12a   : > { %v711_v38 = vmul.f32 0.5, %v710_v23  ;;  %v986_v52 = vmul.f32 %v967_v33, %v3691_v26  ;;  %v973_v39 = vpop.xlane.xlu1 %972  ;;  %v1017_v47 = vsel %vm582_vm0, %v1001_v28, 0.0 }
 0x12b   : > { %v752_v44 = vsub.f32 1.5, %v751_v29  ;;  %v988_v48 = vmul.f32 %v973_v39, %v3691_v26  ;;  %1018 = vadd.xlane.f32.xlu1 %v1017_v47  ;;  %v769_v50 = vmul.f32 %v3851_v43, %v758_v36  ;;  %v1037_v47 = vadd.f32 1e-05, %v1029_v45 }
 0x12c   : > { %v3323_v30 = vpop.eup %3322  ;;  %v712_v8 = vsub.f32 1.5, %v711_v38  ;;  %v3927_v49 = vsub.f32 %v3664_v9, %v986_v52 }
 0x12d   : > { %v753_v51 = vmul.f32 %v3319_v63, %v752_v44  ;;  %v699_v57 = vmul.f32 %v3323_v30, %v3878_v2  ;;  %v3933_v35 = vsub.f32 %v3669_v11, %v988_v48  ;;  %v780_v62 = vadd.f32 %v3876_v40, %v769_v50 }
 0x12e   : > { %v713_v59 = vmul.f32 %v3881_v15, %v712_v8  ;;  %v1002_v42 = vmul.f32 %v3927_v49, %v3927_v49  ;;  %vm705_vm9 = vweird.f32 %v3323_v30  ;;  %3324 = vrsqrt.f32 %v1037_v47  ;;  %v3132_v8 = vld [vmem:[%s4938_s4] sm:$0xff] }
 0x12f   : > { %v757_v1 = vsel %vm3922_vm6, %v3319_v63, %v753_v51  ;;  %v700_v13 = vmul.f32 %v3323_v30, %v699_v57  ;;  %v1004_v19 = vmul.f32 %v3933_v35, %v3933_v35  ;;  %v788_v31 = vpack.c.bf16 %v781_v55, %v780_v62  ;;  %vm706_vm10 = vmor %vm704_vm8, %vm705_vm9 }
 0x130   : > { %v765_v18 = vmul.f32 %v757_v1, %v3729_v54  ;;  %v717_v21 = vsel %vm3941_vm7, %v3881_v15, %v713_v59  ;;  %v1020_v63 = vsel %vm582_vm0, %v1002_v42, 0.0  ;;  %v775_v54 = vmul.f32 %v3851_v43, %v764_v27 }
 0x131   : > { %v701_v6 = vmul.f32 0.5, %v700_v13  ;;  %v970_v12 = vpop.xlane.xlu0 %969  ;;  %v1026_v41 = vsel %vm582_vm0, %v1004_v19, 0.0  ;;  %2964 = vmatmul.msk.bf16.vlgmr.msra.gmra.mxu0 %vm582_vm0, %v788_v31  ;;  %1021 = vadd.xlane.f32.xlu2 %v1020_v63  ;;  %v761_v24 = vmul.f32 %v717_v21, %v3733_v56  ;;  %vm1051_vm11 = vweird.f32 %v1037_v47  ;;  %v4003_v63 = vld [vmem:[%s4936_s2] ss:$0 sm:$0xff] }
 0x132   : > { %v987_v14 = vmul.f32 %v970_v12, %v3691_v26  ;;  %v776_v22 = vmul.f32 %v3851_v43, %v765_v18  ;;  %v786_v28 = vadd.f32 %v3876_v40, %v775_v54  ;;  %vm877_vm8 = vcmask 519168  }
 0x133   : > { %v702_v23 = vsub.f32 1.5, %v701_v6  ;;  %1027 = vadd.xlane.f32.xlu1 %v1026_v41  ;;  %v772_v37 = vmul.f32 %v3851_v43, %v761_v24 }
 0x134   : > { %v3967_v15 = vsub.f32 %v3651_v5, %v987_v14  ;;  %v787_v29 = vadd.f32 %v3876_v40, %v776_v22 }
 0x135   : > { %v703_v53 = vmul.f32 %v3323_v30, %v702_v23  ;;  %v783_v39 = vadd.f32 %v3876_v40, %v772_v37 }
 0x136   : > { %v1003_v34 = vmul.f32 %v3967_v15, %v3967_v15  ;;  %v791_v38 = vpack.c.bf16 %v787_v29, %v786_v28 }
 0x137   : > { %v707_v33 = vsel %vm706_vm10, %v3323_v30, %v703_v53  ;;  %v3133_v30 = vld [vmem:[%s4938_s4 + $0x8] sm:$0xff] }
 0x138   : > { %v1023_v36 = vsel %vm582_vm0, %v1003_v34, 0.0  ;;  %v760_v2 = vmul.f32 %v707_v33, %v3743_v0  ;;  %v3135_v0 = vld [vmem:[%s4938_s4 + $0x18] sm:$0xff] }
 0x139   : > { %1024 = vadd.xlane.f32.xlu0 %v1023_v36  ;;  %2967 = vmatmul.msk.bf16.gmra.mxu1 %vm582_vm0, %v791_v38 }
 0x13a   : > { %v771_v52 = vmul.f32 %v3851_v43, %v760_v2  ;;  %1211 = vmatpush.bf16.msrb.mxu1 %v3135_v0  ;;  %v3134_v43 = vld [vmem:[%s4938_s4 + $0x10] sm:$0xff] }
 0x13c   : > { %v782_v56 = vadd.f32 %v3876_v40, %v771_v52  ;;  %v3325_v40 = vpop.eup %3324 }
 0x13d   : > { %v1046_v48 = vmul.f32 %v3325_v40, %v1037_v47  ;;  %vm1052_vm12 = vweird.f32 %v3325_v40 }
 0x13e   : > { %v789_v44 = vpack.c.bf16 %v783_v39, %v782_v56  ;;  %1212 = vmatpush.bf16.msrb.mxu1 %v3134_v43  ;;  %vm1053_vm13 = vmor %vm1051_vm11, %vm1052_vm12 }
 0x13f   : > { %v1047_v61 = vmul.f32 %v3325_v40, %v1046_v48 }
 0x141   : > { %2965 = vmatmul.msk.bf16.gmra.mxu0 %vm582_vm0, %v789_v44  ;;  %v1048_v57 = vmul.f32 0.5, %v1047_v61 }
 0x142   : > { %1213 = vmatpush.bf16.msrb.mxu1 %v3133_v30  ;;  %v4021_v30 = vld [vmem:[%s4941_s7] ss:$0 sm:$0xff] }
 0x143   : > { %v1049_v27 = vsub.f32 1.5, %v1048_v57 }
 0x145   : > { %v1050_v55 = vmul.f32 %v3325_v40, %v1049_v27 }
 0x146   : > { %1214 = vmatpush.bf16.msrb.mxu1 %v3132_v8 }
 0x147   : > { %v1054_v19 = vsel %vm1053_vm13, %v3325_v40, %v1050_v55 }
 0x148   : > { %v1125_v6 = vmul.f32 %v1054_v19, %v3748_v7  ;;  %v4010_v7 = vld [vmem:[%s4937_s3] ss:$0 sm:$0xff] }
 0x14a   : > { %v1136_v53 = vmul.f32 %v4003_v63, %v1125_v6 }
 0x14c   : > { %v1147_v36 = vadd.f32 %v4010_v7, %v1136_v53 }
 0x184   : > { %v1010_v46 = vpop.xlane.xlu2 %1009 }
 0x185   : > { %v1030_v50 = vmul.f32 %v1010_v46, %v3691_v26 }
 0x187   : > { %v1038_v51 = vadd.f32 1e-05, %v1030_v50 }
 0x189   : > { %3326 = vrsqrt.f32 %v1038_v51  ;;  %vm1061_vm15 = vweird.f32 %v1038_v51 }
 0x18d   : > { %v1013_v59 = vpop.xlane.xlu2 %1012 }
 0x18e   : > { %v1031_v62 = vmul.f32 %v1013_v59, %v3691_v26 }
 0x18f   : > { %v3327_v60 = vpop.eup %3326 }
 0x190   : > { %v1056_v1 = vmul.f32 %v3327_v60, %v1038_v51  ;;  %v1039_v13 = vadd.f32 1e-05, %v1031_v62  ;;  %vm1062_vm14 = vweird.f32 %v3327_v60 }
 0x191   : > { %vm1063_vm1 = vmor %vm1061_vm15, %vm1062_vm14 }
 0x192   : > { %v1057_v42 = vmul.f32 %v3327_v60, %v1056_v1  ;;  %3328 = vrsqrt.f32 %v1039_v13  ;;  %vm1071_vm2 = vweird.f32 %v1039_v13 }
 0x194   : > { %v1058_v31 = vmul.f32 0.5, %v1057_v42  ;;  %v1016_v21 = vpop.xlane.xlu0 %1015 }
 0x195   : > { %v1032_v12 = vmul.f32 %v1016_v21, %v3691_v26 }
 0x196   : > { %v1059_v18 = vsub.f32 1.5, %v1058_v31 }
 0x197   : > { %v1040_v22 = vadd.f32 1e-05, %v1032_v12 }
 0x198   : > { %v1060_v41 = vmul.f32 %v3327_v60, %v1059_v18  ;;  %v3329_v14 = vpop.eup %3328 }
 0x199   : > { %v1066_v54 = vmul.f32 %v3329_v14, %v1039_v13  ;;  %3330 = vrsqrt.f32 %v1040_v22  ;;  %vm1072_vm3 = vweird.f32 %v3329_v14  ;;  %vm1081_vm6 = vweird.f32 %v1040_v22 }
 0x19a   : > { %v1064_v23 = vsel %vm1063_vm1, %v3327_v60, %v1060_v41  ;;  %vm1073_vm4 = vmor %vm1071_vm2, %vm1072_vm3 }
 0x19b   : > { %v1126_v24 = vmul.f32 %v1064_v23, %v3779_v32  ;;  %v1067_v29 = vmul.f32 %v3329_v14, %v1066_v54 }
 0x19d   : > { %v1137_v34 = vmul.f32 %v4003_v63, %v1126_v24  ;;  %v1068_v33 = vmul.f32 0.5, %v1067_v29 }
 0x19e   : > { %v1019_v28 = vpop.xlane.xlu1 %1018 }
 0x19f   : > { %v1148_v2 = vadd.f32 %v4010_v7, %v1137_v34  ;;  %v1069_v37 = vsub.f32 1.5, %v1068_v33  ;;  %v1033_v32 = vmul.f32 %v1019_v28, %v3691_v26  ;;  %v3331_v38 = vpop.eup %3330 }
 0x1a0   : > { %v1076_v56 = vmul.f32 %v3331_v38, %v1040_v22  ;;  %vm1082_vm5 = vweird.f32 %v3331_v38 }
 0x1a1   : > { %v1155_v52 = vpack.c.bf16 %v1148_v2, %v1147_v36  ;;  %v1041_v39 = vadd.f32 1e-05, %v1033_v32  ;;  %v1070_v44 = vmul.f32 %v3329_v14, %v1069_v37  ;;  %vm1083_vm7 = vmor %vm1081_vm6, %vm1082_vm5  ;;  %vm1304_vm6 = vcmask 130048  }
 0x1a2   : > { %v1077_v45 = vmul.f32 %v3331_v38, %v1076_v56 }
 0x1a3   : > { %2984 = vmatmul.msk.bf16.vlgmr.msrb.gmra.mxu1 %vm582_vm0, %v1155_v52  ;;  %3332 = vrsqrt.f32 %v1041_v39  ;;  %v1074_v40 = vsel %vm1073_vm4, %v3329_v14, %v1070_v44  ;;  %vm1091_vm9 = vweird.f32 %v1041_v39 }
 0x1a4   : > { %v1022_v47 = vpop.xlane.xlu2 %1021  ;;  %v1078_v0 = vmul.f32 0.5, %v1077_v45  ;;  %v1127_v51 = vmul.f32 %v1074_v40, %v3799_v58 }
 0x1a5   : > { %v1034_v43 = vmul.f32 %v1022_v47, %v3691_v26 }
 0x1a6   : > { %v1028_v48 = vpop.xlane.xlu1 %1027  ;;  %v1079_v61 = vsub.f32 1.5, %v1078_v0  ;;  %v859_v59 = vpop.f32.mrf.mxu1  ;;  %v1138_v31 = vmul.f32 %v4003_v63, %v1127_v51 }
 0x1a7   : > { %v1042_v46 = vadd.f32 1e-05, %v1034_v43  ;;  %v1036_v8 = vmul.f32 %v1028_v48, %v3691_v26  ;;  %v860_v62 = vadd.f32 %v4021_v30, %v859_v59 }
 0x1a8   : > { %v1080_v57 = vmul.f32 %v3331_v38, %v1079_v61  ;;  %v1149_v29 = vadd.f32 %v4010_v7, %v1138_v31 }
 0x1a9   : > { %v3333_v50 = vpop.eup %3332  ;;  %3334 = vrsqrt.f32 %v1042_v46  ;;  %v4025_v27 = vadd.f32 1e-05, %v1036_v8  ;;  %v873_v42 = vpack.c.bf16 %v860_v62, %v860_v62  ;;  %vm1101_vm12 = vweird.f32 %v1042_v46 }
 0x1aa   : > { %v1086_v60 = vmul.f32 %v3333_v50, %v1041_v39  ;;  %v1084_v55 = vsel %vm1083_vm7, %v3331_v38, %v1080_v57  ;;  %vm1092_vm10 = vweird.f32 %v3333_v50  ;;  %vm2261_vm7 = vcmask 261120  }
 0x1ab   : > { %3336 = vrsqrt.f32 %v4025_v27  ;;  %v1128_v58 = vmul.f32 %v1084_v55, %v3831_v25  ;;  %882 = vst.msk [vmem:[#allocation2 + $0x10] sm:$0xf] %vm877_vm8, %v873_v42  ;;  %902 = vrot.lane.b32.xlu1 %v873_v42, %s3525_s17  ;;  %vm4042_vm11 = vmor %vm1091_vm9, %vm1092_vm10  ;;  %vm1121_vm2 = vweird.f32 %v4025_v27  ;;  %vm2270_vm9 = vcmask 392192  }
 0x1ac   : > { %v1025_v1 = vpop.xlane.xlu0 %1024  ;;  %v1087_v13 = vmul.f32 %v3333_v50, %v1086_v60 }
 0x1ad   : > { %v1035_v19 = vmul.f32 %v1025_v1, %v3691_v26  ;;  %v1139_v12 = vmul.f32 %v4003_v63, %v1128_v58 }
 0x1ae   : > { %v1088_v18 = vmul.f32 0.5, %v1087_v13  ;;  %v849_v6 = vpop.f32.mrf.mxu0  ;;  %v861_v53 = vpop.f32.mrf.mxu1 }
 0x1af   : > { %v4034_v21 = vadd.f32 1e-05, %v1035_v19  ;;  %v3335_v41 = vpop.eup %3334  ;;  %v850_v14 = vadd.f32 %v4021_v30, %v849_v6  ;;  %v1150_v34 = vadd.f32 %v4010_v7, %v1139_v12  ;;  %v862_v2 = vadd.f32 %v4021_v30, %v861_v53 }
 0x1b0   : > { %v1089_v22 = vsub.f32 1.5, %v1088_v18  ;;  %v1096_v25 = vmul.f32 %v3335_v41, %v1042_v46  ;;  %vm1102_vm13 = vweird.f32 %v3335_v41 }
 0x1b1   : > { %3338 = vrsqrt.f32 %v4034_v21  ;;  %v4039_v23 = vpop.eup %3336  ;;  %v869_v24 = vpack.c.bf16 %v850_v14, %v850_v14  ;;  %v1156_v37 = vpack.c.bf16 %v1150_v34, %v1149_v29  ;;  %v874_v52 = vpack.c.bf16 %v862_v2, %v862_v2  ;;  %vm1103_vm14 = vmor %vm1101_vm12, %vm1102_vm13 }
 0x1b2   : > { %v1090_v33 = vmul.f32 %v3333_v50, %v1089_v22  ;;  %v1097_v28 = vmul.f32 %v3335_v41, %v1096_v25  ;;  %v1116_v36 = vmul.f32 %v4039_v23, %v4025_v27  ;;  %vm1111_vm15 = vweird.f32 %v4034_v21 }
 0x1b3   : > { %878 = vst.msk [vmem:[#allocation2] sm:$0xf] %vm877_vm8, %v869_v24  ;;  %2985 = vmatmul.msk.bf16.gmra.mxu1 %vm582_vm0, %v1156_v37  ;;  %894 = vrot.lane.b32.xlu1 %v869_v24, %s3525_s17  ;;  %vm1122_vm3 = vweird.f32 %v4039_v23 }
 0x1b4   : > { %v1094_v32 = vsel %vm4042_vm11, %v3333_v50, %v1090_v33  ;;  %v1098_v38 = vmul.f32 0.5, %v1097_v28  ;;  %v1117_v44 = vmul.f32 %v4039_v23, %v1116_v36  ;;  %883 = vst.msk [vmem:[#allocation2 + $0x14] sm:$0xf] %vm877_vm8, %v874_v52  ;;  %904 = vrot.lane.b32.xlu2 %v874_v52, %s3525_s17  ;;  %vm1123_vm5 = vmor %vm1121_vm2, %vm1122_vm3 }
 0x1b5   : > { %v1129_v47 = vmul.f32 %v1094_v32, %v3886_v20 }
 0x1b6   : > { %v1099_v39 = vsub.f32 1.5, %v1098_v38  ;;  %v851_v45 = vpop.f32.mrf.mxu0  ;;  %v864_v46 = vpop.f32.mrf.mxu1  ;;  %v1118_v50 = vmul.f32 0.5, %v1117_v44  ;;  %v3300_v44 = vld [vmem:[%s4939_s5] ss:$0 sm:$0xff] }
 0x1b7   : > { %v3339_v56 = vpop.eup %3338  ;;  %v852_v43 = vadd.f32 %v4021_v30, %v851_v45  ;;  %v865_v51 = vadd.f32 %v4021_v30, %v864_v46  ;;  %v1140_v59 = vmul.f32 %v4003_v63, %v1129_v47 }
 0x1b8   : > { %v1106_v0 = vmul.f32 %v3339_v56, %v4034_v21  ;;  %v1100_v40 = vmul.f32 %v3335_v41, %v1099_v39  ;;  %v1119_v1 = vsub.f32 1.5, %v1118_v50  ;;  %vm1112_vm1 = vweird.f32 %v3339_v56 }
 0x1b9   : > { %v870_v61 = vpack.c.bf16 %v852_v43, %v852_v43  ;;  %v875_v60 = vpack.c.bf16 %v865_v51, %v865_v51  ;;  %v1151_v42 = vadd.f32 %v4010_v7, %v1140_v59  ;;  %vm4076_vm4 = vmor %vm1111_vm15, %vm1112_vm1 }
 0x1ba   : > { %v1107_v48 = vmul.f32 %v3339_v56, %v1106_v0  ;;  %v1104_v8 = vsel %vm1103_vm14, %v3335_v41, %v1100_v40  ;;  %v1120_v12 = vmul.f32 %v4039_v23, %v1119_v1 }
 0x1bb   : > { %v1130_v57 = vmul.f32 %v1104_v8, %v3927_v49  ;;  %879 = vst.msk [vmem:[#allocation2 + $0x4] sm:$0xf] %vm877_vm8, %v870_v61  ;;  %896 = vrot.lane.b32.xlu1 %v870_v61, %s3525_s17  ;;  %v3138_v33 = vld [vmem:[#allocation2 + $0x10] sm:$0xff] }
 0x1bc   : > { %v1108_v20 = vmul.f32 0.5, %v1107_v48  ;;  %884 = vst.msk [vmem:[#allocation2 + $0x18] sm:$0xf] %vm877_vm8, %v875_v60  ;;  %906 = vrot.lane.b32.xlu2 %v875_v60, %s3525_s17  ;;  %v1124_v25 = vsel %vm1123_vm5, %v4039_v23, %v1120_v12 }
 0x1bd   : > { %v1141_v55 = vmul.f32 %v4003_v63, %v1130_v57  ;;  %v1132_v29 = vmul.f32 %v1124_v25, %v3933_v35 }
 0x1be   : > { %v1109_v62 = vsub.f32 1.5, %v1108_v20  ;;  %v854_v13 = vpop.f32.mrf.mxu0  ;;  %v866_v21 = vpop.f32.mrf.mxu1 }
 0x1bf   : > { %v855_v49 = vadd.f32 %v4021_v30, %v854_v13  ;;  %v1152_v19 = vadd.f32 %v4010_v7, %v1141_v55  ;;  %v867_v41 = vadd.f32 %v4021_v30, %v866_v21  ;;  %v1143_v36 = vmul.f32 %v4003_v63, %v1132_v29 }
 0x1c0   : > { %v1110_v58 = vmul.f32 %v3339_v56, %v1109_v62 }
 0x1c1   : > { %v871_v18 = vpack.c.bf16 %v855_v49, %v855_v49  ;;  %v1157_v6 = vpack.c.bf16 %v1152_v19, %v1151_v42  ;;  %v876_v22 = vpack.c.bf16 %v867_v41, %v867_v41 }
 0x1c2   : > { %v4082_v14 = vld [vmem:[#allocation2] sm:$0xff]  ;;  %v1114_v27 = vsel %vm4076_vm4, %v3339_v56, %v1110_v58 }
 0x1c3   : > { %880 = vst.msk [vmem:[#allocation2 + $0x8] sm:$0xf] %vm877_vm8, %v871_v18  ;;  %1523 = vrot.lane.b32.xlu0 %v4082_v14, %s3526_s18  ;;  %2986 = vmatmul.msk.bf16.gmra.mxu1 %vm582_vm0, %v1157_v6  ;;  %v1131_v53 = vmul.f32 %v1114_v27, %v3967_v15 }
 0x1c4   : > { %885 = vst.msk [vmem:[#allocation2 + $0x1c] sm:$0xf] %vm877_vm8, %v876_v22  ;;  %1737 = vrot.lane.b32.xlu1 %v4082_v14, %s3527_s19  ;;  %898 = vrot.lane.b32.xlu2 %v871_v18, %s3525_s17 }
 0x1c5   : > { %v1142_v23 = vmul.f32 %v4003_v63, %v1131_v53  ;;  %v1324_v63 = vsel %vm1304_vm6, %v3138_v33, 0 }
 0x1c6   : > { %v856_v54 = vpop.f32.mrf.mxu0 }
 0x1c7   : > { %v857_v24 = vadd.f32 %v4021_v30, %v856_v54  ;;  %v1153_v35 = vadd.f32 %v4010_v7, %v1142_v23  ;;  %v1154_v30 = vadd.f32 %v4010_v7, %v1143_v36  ;;  %v1318_v7 = vsel %vm1304_vm6, %v4082_v14, 0 }
 0x1c9   : > { %v872_v34 = vpack.c.bf16 %v857_v24, %v857_v24  ;;  %v1158_v2 = vpack.c.bf16 %v1154_v30, %v1153_v35 }
 0x1cb   : > { %881 = vst.msk [vmem:[#allocation2 + $0xc] sm:$0xf] %vm877_vm8, %v872_v34  ;;  %1741 = vrot.lane.b32.xlu0 %v3138_v33, %s3527_s19  ;;  %v3139_v28 = vld [vmem:[#allocation2 + $0x18] sm:$0xff] }
 0x1cc   : > { %900 = vrot.lane.b32.xlu1 %v872_v34, %s3525_s17  ;;  %1527 = vrot.lane.b32.xlu2 %v3138_v33, %s3526_s18  ;;  %v1327_v15 = vsel %vm1304_vm6, %v3139_v28, 0 }
 0x1cd   : > { %1333 = vmatpush.bf16.xpose.msra.mxu2 %v1327_v15 }
 0x1d2   : > { %v4110_v37 = vld [vmem:[#allocation2 + $0x8] sm:$0xff] }
 0x1d3   : > { %1955 = vrot.lane.b32.xlu0 %v3138_v33, %s3528_s20  ;;  %2987 = vmatmul.msk.bf16.gmra.mxu1 %vm582_vm0, %v1158_v2  ;;  %v1321_v32 = vsel %vm1304_vm6, %v4110_v37, 0 }
 0x1d5   : > { %1334 = vmatpush.bf16.xpose.msra.mxu2 %v1324_v63 }
 0x1db   : > { %908 = vrot.lane.b32.xlu0 %v876_v22, %s3525_s17  ;;  %s3531_s17 = smov 48  }
 0x1dd   : > { %1335 = vmatpush.bf16.xpose.msra.mxu2 %v1321_v32 }
 0x1e3   : > { %1529 = vrot.lane.b32.xlu0 %v3139_v28, %s3526_s18 }
 0x1e5   : > { %1336 = vmatpush.bf16.xpose.msra.mxu2 %v1318_v7 }
 0x1eb   : > { %1525 = vrot.lane.b32.xlu0 %v4110_v37, %s3526_s18 }
 0x1f3   : > { %1743 = vrot.lane.b32.xlu0 %v3139_v28, %s3527_s19 }
 0x1fb   : > { %1957 = vrot.lane.b32.xlu0 %v3139_v28, %s3528_s20 }
 0x203   : > { %1739 = vrot.lane.b32.xlu0 %v4110_v37, %s3527_s19 }
 0x20e   : > { %v905_v38 = vpop.permute.xlu2 %904 }
 0x20f   : > { %923 = vst.msk [vmem:[#allocation3 + $0x14] sm:$0xf] %vm877_vm8, %v905_v38 }
 0x216   : > { %v907_v52 = vpop.permute.xlu2 %906 }
 0x217   : > { %924 = vst.msk [vmem:[#allocation3 + $0x18] sm:$0xf] %vm877_vm8, %v907_v52 }
 0x21d   : > { %v903_v39 = vpop.permute.xlu1 %902 }
 0x21e   : > { %v899_v45 = vpop.permute.xlu2 %898  ;;  %922 = vst.msk [vmem:[#allocation3 + $0x10] sm:$0xf] %vm877_vm8, %v903_v39 }
 0x21f   : > { %920 = vst.msk [vmem:[#allocation3 + $0x8] sm:$0xf] %vm877_vm8, %v899_v45 }
 0x220   : > { %v1216_v56 = vpop.f32.mrf.mxu1 }
 0x221   : > { %v1217_v47 = vadd.f32 %v3300_v44, %v1216_v56 }
 0x223   : > { %v1236_v43 = vpack.c.bf16 %v1217_v47, %v1217_v47 }
 0x225   : > { %v895_v40 = vpop.permute.xlu1 %894  ;;  %v1272_v46 = vunpack.c.l.b16 %v1236_v43  ;;  %v4159_v15 = vld [vmem:[#allocation3 + $0x10] sm:$0xff] }
 0x226   : > { %918 = vst.msk [vmem:[#allocation3] sm:$0xf] %vm877_vm8, %v895_v40  ;;  %v1528_v2 = vpop.permute.xlu2 %1527 }
 0x227   : > { %v1550_v56 = vsel %vm1304_vm6, %v1528_v2, 0 }
 0x228   : > { %v1218_v0 = vpop.f32.mrf.mxu1 }
 0x229   : > { %v1219_v48 = vadd.f32 %v3300_v44, %v1218_v0 }
 0x22b   : > { %v1237_v61 = vpack.c.bf16 %v1219_v48, %v1219_v48 }
 0x22d   : > { %v1273_v8 = vunpack.c.l.b16 %v1237_v61  ;;  %v897_v51 = vpop.permute.xlu1 %896 }
 0x22e   : > { %919 = vst.msk [vmem:[#allocation3 + $0x4] sm:$0xf] %vm877_vm8, %v897_v51 }
 0x22f   : > { %v4132_v50 = vpack.c.b16 %v1273_v8, %v1272_v46 }
 0x230   : > { %v1221_v57 = vpop.f32.mrf.mxu1 }
 0x231   : > { %3004 = vmatmul.msk.bf16.vlgmr.msra.gmra.mxu2 %vm1304_vm6, %v4132_v50  ;;  %1515 = vrot.lane.b32.xlu1 %v4132_v50, %s3526_s18  ;;  %v1222_v59 = vadd.f32 %v3300_v44, %v1221_v57 }
 0x233   : > { %v1238_v55 = vpack.c.bf16 %v1222_v59, %v1222_v59 }
 0x235   : > { %v1524_v20 = vpop.permute.xlu0 %1523  ;;  %v1274_v42 = vunpack.c.l.b16 %v1238_v55  ;;  %v4168_v45 = vld [vmem:[#allocation3] sm:$0xff] }
 0x236   : > { %v4139_v60 = vpop.permute.xlu1 %1737  ;;  %v1544_v48 = vsel %vm1304_vm6, %v1524_v20, 0  ;;  %v4190_v20 = vld [vmem:[%s548_s28] ss:$0 sm:$0xff]  ;;  %s3529_s28 = smov 16  }
 0x237   : > { %v1758_v57 = vsel %vm1304_vm6, %v4139_v60, 0 }
 0x238   : > { %v1223_v62 = vpop.f32.mrf.mxu1 }
 0x239   : > { %v1224_v1 = vadd.f32 %v3300_v44, %v1223_v62 }
 0x23b   : > { %v1239_v13 = vpack.c.bf16 %v1224_v1, %v1224_v1 }
 0x23d   : > { %v1742_v49 = vpop.permute.xlu0 %1741  ;;  %v1275_v19 = vunpack.c.l.b16 %v1239_v13 }
 0x23e   : > { %v901_v58 = vpop.permute.xlu1 %900  ;;  %v1764_v61 = vsel %vm1304_vm6, %v1742_v49, 0 }
 0x23f   : > { %v4141_v31 = vpack.c.b16 %v1275_v19, %v1274_v42  ;;  %921 = vst.msk [vmem:[#allocation3 + $0xc] sm:$0xf] %vm877_vm8, %v901_v58 }
 0x240   : > { %v1226_v18 = vpop.f32.mrf.mxu1 }
 0x241   : > { %1517 = vrot.lane.b32.xlu2 %v4141_v31, %s3526_s18  ;;  %3005 = vmatmul.msk.bf16.gmra.mxu2 %vm1304_vm6, %v4141_v31  ;;  %v1227_v6 = vadd.f32 %v3300_v44, %v1226_v18 }
 0x243   : > { %v1240_v41 = vpack.c.bf16 %v1227_v6, %v1227_v6 }
 0x245   : > { %v1956_v21 = vpop.permute.xlu0 %1955  ;;  %v1276_v54 = vunpack.c.l.b16 %v1240_v41 }
 0x246   : > { %v4162_v7 = vld [vmem:[#allocation3 + $0x8] sm:$0xff]  ;;  %v1978_v51 = vsel %vm1304_vm6, %v1956_v21, 0 }
 0x248   : > { %v1228_v12 = vpop.f32.mrf.mxu1 }
 0x249   : > { %v1229_v27 = vadd.f32 %v3300_v44, %v1228_v12 }
 0x24b   : > { %v1241_v22 = vpack.c.bf16 %v1229_v27, %v1229_v27 }
 0x24d   : > { %v909_v25 = vpop.permute.xlu0 %908  ;;  %v1277_v24 = vunpack.c.l.b16 %v1241_v22 }
 0x24e   : > { %925 = vst.msk [vmem:[#allocation3 + $0x1c] sm:$0xf] %vm877_vm8, %v909_v25 }
 0x24f   : > { %v4149_v53 = vpack.c.b16 %v1277_v24, %v1276_v54 }
 0x250   : > { %v1231_v29 = vpop.f32.mrf.mxu1 }
 0x251   : > { %1519 = vrot.lane.b32.xlu1 %v4149_v53, %s3526_s18  ;;  %3006 = vmatmul.msk.bf16.gmra.mxu2 %vm1304_vm6, %v4149_v53  ;;  %v1232_v23 = vadd.f32 %v3300_v44, %v1231_v29 }
 0x253   : > { %v1242_v35 = vpack.c.bf16 %v1232_v23, %v1232_v23 }
 0x255   : > { %v1530_v34 = vpop.permute.xlu0 %1529  ;;  %v4155_v33 = vld [vmem:[#allocation3 + $0x18] sm:$0xff]  ;;  %v1278_v38 = vunpack.c.l.b16 %v1242_v35 }
 0x256   : > { %v1553_v28 = vsel %vm1304_vm6, %v1530_v34, 0  ;;  %1490 = vmatpush.bf16.msra.mxu3 %v4155_v33 }
 0x257   : > { %1559 = vmatpush.bf16.xpose.msrb.mxu0 %v1553_v28 }
 0x258   : > { %v1233_v36 = vpop.f32.mrf.mxu1 }
 0x259   : > { %v1234_v30 = vadd.f32 %v3300_v44, %v1233_v36 }
 0x25a   : > { %1491 = vmatpush.bf16.msra.mxu3 %v4159_v15 }
 0x25b   : > { %v1243_v63 = vpack.c.bf16 %v1234_v30, %v1234_v30 }
 0x25d   : > { %v1526_v32 = vpop.permute.xlu0 %1525  ;;  %v1279_v52 = vunpack.c.l.b16 %v1243_v63 }
 0x25e   : > { %1492 = vmatpush.bf16.msra.mxu3 %v4162_v7  ;;  %v1547_v47 = vsel %vm1304_vm6, %v1526_v32, 0 }
 0x25f   : > { %1560 = vmatpush.bf16.xpose.msrb.mxu0 %v1550_v56  ;;  %v4166_v39 = vpack.c.b16 %v1279_v52, %v1278_v38 }
 0x261   : > { %1521 = vrot.lane.b32.xlu0 %v4166_v39, %s3526_s18  ;;  %3007 = vmatmul.msk.bf16.gmra.mxu2 %vm1304_vm6, %v4166_v39 }
 0x262   : > { %1493 = vmatpush.bf16.msra.mxu3 %v4168_v45 }
 0x265   : > { %v1744_v44 = vpop.permute.xlu0 %1743 }
 0x266   : > { %v1767_v0 = vsel %vm1304_vm6, %v1744_v44, 0 }
 0x267   : > { %1561 = vmatpush.bf16.xpose.msrb.mxu0 %v1547_v47  ;;  %1773 = vmatpush.bf16.xpose.msrb.mxu3 %v1767_v0 }
 0x26d   : > { %v1958_v43 = vpop.permute.xlu0 %1957 }
 0x26e   : > { %v1981_v40 = vsel %vm1304_vm6, %v1958_v43, 0 }
 0x26f   : > { %1562 = vmatpush.bf16.xpose.msrb.mxu0 %v1544_v48  ;;  %1774 = vmatpush.bf16.xpose.msrb.mxu3 %v1764_v61 }
 0x275   : > { %v1740_v46 = vpop.permute.xlu0 %1739 }
 0x276   : > { %v1761_v8 = vsel %vm1304_vm6, %v1740_v46, 0 }
 0x277   : > { %1987 = vmatpush.bf16.xpose.msra.mxu0 %v1981_v40  ;;  %1775 = vmatpush.bf16.xpose.msrb.mxu3 %v1761_v8 }
 0x27f   : > { %1988 = vmatpush.bf16.xpose.msra.mxu0 %v1978_v51  ;;  %1776 = vmatpush.bf16.xpose.msrb.mxu3 %v1758_v57 }
 0x29b   : > { %v1518_v62 = vpop.permute.xlu2 %1517 }
 0x2a3   : > { %v1516_v59 = vpop.permute.xlu1 %1515 }
 0x2a4   : > { %3028 = vmatmul.msk.bf16.vlgmr.msrb.gmra.mxu0 %vm1304_vm6, %v1516_v59 }
 0x2b4   : > { %v1338_v55 = vpop.f32.mrf.mxu2  ;;  %3029 = vmatmul.msk.bf16.gmra.mxu0 %vm1304_vm6, %v1518_v62 }
 0x2b5   : > { %v1339_v1 = vadd.f32 %v4190_v20, %v1338_v55 }
 0x2b7   : > { %v1358_v13 = vsel %vm582_vm0, %v1339_v1, -inf }
 0x2b8   : > { %1359 = vmax.xlane.f32.xlu2 %v1358_v13 }
 0x2bc   : > { %v1340_v60 = vpop.f32.mrf.mxu2 }
 0x2bd   : > { %v1341_v49 = vadd.f32 %v4190_v20, %v1340_v60 }
 0x2bf   : > { %v1361_v42 = vsel %vm582_vm0, %v1341_v49, -inf }
 0x2c0   : > { %1362 = vmax.xlane.f32.xlu0 %v1361_v42 }
 0x2c3   : > { %v1520_v19 = vpop.permute.xlu1 %1519 }
 0x2c4   : > { %v1343_v58 = vpop.f32.mrf.mxu2  ;;  %3030 = vmatmul.msk.bf16.gmra.mxu0 %vm1304_vm6, %v1520_v19 }
 0x2c5   : > { %v1344_v18 = vadd.f32 %v4190_v20, %v1343_v58 }
 0x2c7   : > { %v1364_v21 = vsel %vm582_vm0, %v1344_v18, -inf }
 0x2c8   : > { %1365 = vmax.xlane.f32.xlu1 %v1364_v21 }
 0x2cc   : > { %v1345_v6 = vpop.f32.mrf.mxu2 }
 0x2cd   : > { %v1346_v12 = vadd.f32 %v4190_v20, %v1345_v6 }
 0x2cf   : > { %v1367_v41 = vsel %vm582_vm0, %v1346_v12, -inf }
 0x2d0   : > { %1368 = vmax.xlane.f32.xlu2 %v1367_v41 }
 0x2d3   : > { %v1522_v27 = vpop.permute.xlu0 %1521 }
 0x2d4   : > { %v1348_v22 = vpop.f32.mrf.mxu2  ;;  %3031 = vmatmul.msk.bf16.gmra.mxu0 %vm1304_vm6, %v1522_v27 }
 0x2d5   : > { %v1349_v25 = vadd.f32 %v4190_v20, %v1348_v22 }
 0x2d7   : > { %v1370_v54 = vsel %vm582_vm0, %v1349_v25, -inf }
 0x2d8   : > { %1371 = vmax.xlane.f32.xlu0 %v1370_v54 }
 0x2dc   : > { %v1350_v24 = vpop.f32.mrf.mxu2 }
 0x2dd   : > { %v1351_v29 = vadd.f32 %v4190_v20, %v1350_v24 }
 0x2df   : > { %v1373_v34 = vsel %vm582_vm0, %v1351_v29, -inf }
 0x2e0   : > { %1374 = vmax.xlane.f32.xlu1 %v1373_v34 }
 0x2e4   : > { %v1353_v23 = vpop.f32.mrf.mxu2 }
 0x2e5   : > { %v1354_v28 = vadd.f32 %v4190_v20, %v1353_v23 }
 0x2e7   : > { %v1376_v36 = vsel %vm582_vm0, %v1354_v28, -inf }
 0x2e8   : > { %1377 = vmax.xlane.f32.xlu0 %v1376_v36 }
 0x2ec   : > { %v1355_v35 = vpop.f32.mrf.mxu2 }
 0x2ed   : > { %v4210_v30 = vadd.f32 %v4190_v20, %v1355_v35 }
 0x2ef   : > { %v1379_v2 = vsel %vm582_vm0, %v4210_v30, -inf }
 0x2f0   : > { %1380 = vmax.xlane.f32.xlu2 %v1379_v2 }
 0x321   : > { %v1564_v41 = vpop.f32.mrf.mxu0 }
 0x329   : > { %v1566_v22 = vpop.f32.mrf.mxu0 }
 0x32b   : > { %v1360_v63 = vpop.xlane.xlu2 %1359 }
 0x32c   : > { %v1382_v32 = vsub.f32 %v1339_v1, %v1360_v63 }
 0x32e   : > { %v1390_v38 = vmul.f32 1.442695, %v1382_v32 }
 0x330   : > { %3340 = vpow2.f32 %v1390_v38 }
 0x333   : > { %v1363_v52 = vpop.xlane.xlu0 %1362 }
 0x334   : > { %v1383_v56 = vsub.f32 %v1341_v49, %v1363_v52 }
 0x336   : > { %v4214_v44 = vpop.eup %3340  ;;  %v1392_v47 = vmul.f32 1.442695, %v1383_v56 }
 0x337   : > { %v1406_v0 = vsel %vm582_vm0, %v4214_v44, 0.0 }
 0x338   : > { %3342 = vpow2.f32 %v1392_v47  ;;  %1407 = vadd.xlane.f32.xlu1 %v1406_v0 }
 0x33b   : > { %v1366_v40 = vpop.xlane.xlu1 %1365 }
 0x33c   : > { %v1384_v48 = vsub.f32 %v1344_v18, %v1366_v40 }
 0x33e   : > { %v3343_v43 = vpop.eup %3342  ;;  %v1394_v46 = vmul.f32 1.442695, %v1384_v48 }
 0x33f   : > { %v1409_v61 = vsel %vm582_vm0, %v3343_v43, 0.0 }
 0x340   : > { %1410 = vadd.xlane.f32.xlu0 %v1409_v61  ;;  %3344 = vpow2.f32 %v1394_v46  ;;  %v4269_v61 = vadd.f32 %v4190_v20, %v1564_v41 }
 0x343   : > { %v1369_v8 = vpop.xlane.xlu2 %1368 }
 0x344   : > { %v1385_v51 = vsub.f32 %v1346_v12, %v1369_v8 }
 0x346   : > { %v4219_v57 = vpop.eup %3344  ;;  %v1396_v59 = vmul.f32 1.442695, %v1385_v51 }
 0x347   : > { %v1412_v62 = vsel %vm582_vm0, %v4219_v57, 0.0 }
 0x348   : > { %3346 = vpow2.f32 %v1396_v59  ;;  %1413 = vadd.xlane.f32.xlu1 %v1412_v62 }
 0x34b   : > { %v1372_v13 = vpop.xlane.xlu0 %1371 }
 0x34e   : > { %v3347_v55 = vpop.eup %3346 }
 0x34f   : > { %v1415_v1 = vsel %vm582_vm0, %v3347_v55, 0.0 }
 0x350   : > { %1416 = vadd.xlane.f32.xlu2 %v1415_v1 }
 0x353   : > { %v1375_v58 = vpop.xlane.xlu1 %1374 }
 0x354   : > { %1951 = vrot.lane.b32.xlu0 %v4082_v14, %s3528_s20  ;;  %v1386_v14 = vsub.f32 %v1349_v25, %v1372_v13  ;;  %v1387_v21 = vsub.f32 %v1351_v29, %v1375_v58  ;;  %v1569_v25 = vpop.f32.mrf.mxu0 }
 0x355   : > { %v4259_v38 = vadd.f32 %v4190_v20, %v1569_v25 }
 0x356   : > { %v1398_v49 = vmul.f32 1.442695, %v1386_v14  ;;  %v1400_v6 = vmul.f32 1.442695, %v1387_v21  ;;  %v4284_v14 = vadd.f32 %v4190_v20, %v1566_v22 }
 0x358   : > { %3348 = vpow2.f32 %v1398_v49 }
 0x35b   : > { %v1378_v60 = vpop.xlane.xlu0 %1377 }
 0x35c   : > { %1731 = vrot.lane.b32.xlu0 %v4141_v31, %s3527_s19  ;;  %v1388_v42 = vsub.f32 %v1354_v28, %v1378_v60  ;;  %v1571_v34 = vpop.f32.mrf.mxu0 }
 0x35d   : > { %v4281_v1 = vadd.f32 %v4190_v20, %v1571_v34 }
 0x35e   : > { %v1402_v19 = vmul.f32 1.442695, %v1388_v42  ;;  %v4238_v18 = vpop.eup %3348 }
 0x35f   : > { %v1593_v60 = vsel %vm582_vm0, %v4281_v1, -inf }
 0x360   : > { %3350 = vpow2.f32 %v1402_v19  ;;  %v1587_v19 = vsel %vm582_vm0, %v4284_v14, -inf }
 0x361   : > { %1729 = vrot.lane.b32.xlu1 %v4132_v50, %s3527_s19  ;;  %3352 = vpow2.f32 %v1400_v6 }
 0x363   : > { %v1381_v2 = vpop.xlane.xlu2 %1380 }
 0x364   : > { %1733 = vrot.lane.b32.xlu0 %v4149_v53, %s3527_s19  ;;  %v1574_v63 = vpop.f32.mrf.mxu0  ;;  %v1389_v62 = vsub.f32 %v4210_v30, %v1381_v2 }
 0x365   : > { %v4300_v6 = vadd.f32 %v4190_v20, %v1574_v63 }
 0x366   : > { %v1404_v13 = vmul.f32 1.442695, %v1389_v62 }
 0x367   : > { %v1596_v41 = vsel %vm582_vm0, %v4300_v6, -inf }
 0x368   : > { %1953 = vrot.lane.b32.xlu2 %v4110_v37, %s3528_s20  ;;  %v1418_v37 = vsel %vm582_vm0, %v4238_v18, 0.0 }
 0x369   : > { %1943 = vrot.lane.b32.xlu1 %v4132_v50, %s3528_s20  ;;  %v4242_v50 = vpop.eup %3350 }
 0x36a   : > { %v4246_v12 = vpop.eup %3352 }
 0x36b   : > { %v1421_v27 = vsel %vm582_vm0, %v4246_v12, 0.0 }
 0x36c   : > { %v1576_v56 = vpop.f32.mrf.mxu0 }
 0x36d   : > { %v4265_v40 = vadd.f32 %v4190_v20, %v1576_v56 }
 0x36f   : > { %v1599_v8 = vsel %vm582_vm0, %v4265_v40, -inf }
 0x371   : > { %1945 = vrot.lane.b32.xlu1 %v4141_v31, %s3528_s20  ;;  %v1424_v31 = vsel %vm582_vm0, %v4242_v50, 0.0 }
 0x374   : > { %v1579_v49 = vpop.f32.mrf.mxu0 }
 0x375   : > { %v4290_v30 = vadd.f32 %v4190_v20, %v1579_v49 }
 0x377   : > { %v1602_v58 = vsel %vm582_vm0, %v4290_v30, -inf }
 0x38e   : > { %1419 = vadd.xlane.f32.xlu0 %v1418_v37 }
 0x391   : > { %1425 = vadd.xlane.f32.xlu2 %v1424_v31 }
 0x39b   : > { %1422 = vadd.xlane.f32.xlu1 %v1421_v27  ;;  %v1581_v27 = vpop.f32.mrf.mxu0 }
 0x39c   : > { %v4306_v22 = vadd.f32 %v4190_v20, %v1581_v27 }
 0x39e   : > { %v1605_v25 = vsel %vm582_vm0, %v4306_v22, -inf }
 0x3a2   : > { %1949 = vrot.lane.b32.xlu0 %v4166_v39, %s3528_s20 }
 0x3a9   : > { %1947 = vrot.lane.b32.xlu2 %v4149_v53, %s3528_s20 }
 0x3ab   : > { %v1408_v54 = vpop.xlane.xlu1 %1407 }
 0x3ac   : > { %3354 = vrcp.f32 %v1408_v54 }
 0x3b2   : > { %v3355_v29 = vpop.eup %3354 }
 0x3b3   : > { %v1411_v24 = vpop.xlane.xlu0 %1410  ;;  %v1438_v28 = vmul.f32 %v3355_v29, %v4214_v44 }
 0x3b4   : > { %3356 = vrcp.f32 %v1411_v24  ;;  %1735 = vrot.lane.b32.xlu1 %v4166_v39, %s3527_s19  ;;  %v1590_v39 = vsel %vm582_vm0, %v4259_v38, -inf }
 0x3ba   : > { %v3357_v23 = vpop.eup %3356 }
 0x3bb   : > { %v1439_v36 = vmul.f32 %v3357_v23, %v3343_v43  ;;  %v1414_v53 = vpop.xlane.xlu1 %1413 }
 0x3bc   : > { %3358 = vrcp.f32 %v1414_v53 }
 0x3bd   : > { %v1446_v35 = vpack.c.bf16 %v1439_v36, %v1438_v28 }
 0x3bf   : > { %3024 = vmatmul.msk.bf16.vlgmr.msra.gmra.mxu3 %vm582_vm0, %v1446_v35 }
 0x3c2   : > { %v3359_v52 = vpop.eup %3358 }
 0x3c3   : > { %v1417_v32 = vpop.xlane.xlu2 %1416  ;;  %v1440_v0 = vmul.f32 %v3359_v52, %v4219_v57  ;;  %v1584_v57 = vsel %vm582_vm0, %v4269_v61, -inf }
 0x3c4   : > { %3360 = vrcp.f32 %v1417_v32 }
 0x3c5   : > { %3362 = vpow2.f32 %v1404_v13 }
 0x3c6   : > { %v1952_v51 = vpop.permute.xlu0 %1951 }
 0x3ca   : > { %v3361_v44 = vpop.eup %3360 }
 0x3cb   : > { %v1954_v47 = vpop.permute.xlu2 %1953  ;;  %v1441_v43 = vmul.f32 %v3361_v44, %v3347_v55  ;;  %v1972_v55 = vsel %vm1304_vm6, %v1952_v51, 0  ;;  %v3363_v21 = vpop.eup %3362 }
 0x3cc   : > { %1591 = vmax.xlane.f32.xlu0 %v1590_v39  ;;  %v1975_v48 = vsel %vm1304_vm6, %v1954_v47, 0  ;;  %v1427_v37 = vsel %vm582_vm0, %v3363_v21, 0.0 }
 0x3cd   : > { %1989 = vmatpush.bf16.xpose.msra.mxu0 %v1975_v48  ;;  %v1447_v46 = vpack.c.bf16 %v1441_v43, %v1440_v0 }
 0x3ce   : > { %v1732_v54 = vpop.permute.xlu0 %1731 }
 0x3cf   : > { %3025 = vmatmul.msk.bf16.gmra.mxu3 %vm582_vm0, %v1447_v46 }
 0x3d2   : > { %1585 = vmax.xlane.f32.xlu2 %v1584_v57 }
 0x3d3   : > { %v4276_v59 = vpop.permute.xlu1 %1729 }
 0x3d4   : > { %1600 = vmax.xlane.f32.xlu0 %v1599_v8 }
 0x3d5   : > { %1990 = vmatpush.bf16.xpose.msra.mxu0 %v1972_v55 }
 0x3d6   : > { %v4312_v24 = vpop.permute.xlu0 %1733 }
 0x3da   : > { %1594 = vmax.xlane.f32.xlu2 %v1593_v60 }
 0x3db   : > { %v1944_v42 = vpop.permute.xlu1 %1943 }
 0x3dc   : > { %3044 = vmatmul.msk.bf16.vlgmr.msra.gmra.mxu0 %vm1304_vm6, %v1944_v42 }
 0x3de   : > { %1588 = vmax.xlane.f32.xlu1 %v1587_v19 }
 0x3e2   : > { %1603 = vmax.xlane.f32.xlu2 %v1602_v58 }
 0x3e3   : > { %v1946_v31 = vpop.permute.xlu1 %1945 }
 0x3e6   : > { %1428 = vadd.xlane.f32.xlu1 %v1427_v37 }
 0x3e8   : > { %1682 = vrot.lane.b32.xlu0 %v4155_v33, %s3526_s18 }
 0x3ec   : > { %3045 = vmatmul.msk.bf16.gmra.mxu0 %vm1304_vm6, %v1946_v31 }
 0x3ee   : > { %1597 = vmax.xlane.f32.xlu1 %v1596_v41 }
 0x3f6   : > { %1606 = vmax.xlane.f32.xlu1 %v1605_v25 }
 0x3fa   : > { %1680 = vrot.lane.b32.xlu2 %v4159_v15, %s3526_s18 }
 0x401   : > { %v1420_v34 = vpop.xlane.xlu0 %1419 }
 0x402   : > { %2110 = vrot.lane.b32.xlu2 %v4155_v33, %s3528_s20  ;;  %3364 = vrcp.f32 %v1420_v34 }
 0x404   : > { %v1426_v29 = vpop.xlane.xlu2 %1425 }
 0x408   : > { %v3365_v36 = vpop.eup %3364 }
 0x409   : > { %v1442_v2 = vmul.f32 %v3365_v36, %v4238_v18 }
 0x40c   : > { %v1948_v23 = vpop.permute.xlu2 %1947 }
 0x40d   : > { %3046 = vmatmul.msk.bf16.gmra.mxu0 %vm1304_vm6, %v1948_v23 }
 0x40e   : > { %v1423_v28 = vpop.xlane.xlu1 %1422 }
 0x40f   : > { %3366 = vrcp.f32 %v1423_v28  ;;  %1678 = vrot.lane.b32.xlu1 %v4162_v7, %s3526_s18 }
 0x410   : > { %3368 = vrcp.f32 %v1426_v29 }
 0x414   : > { %v1950_v32 = vpop.permute.xlu0 %1949 }
 0x415   : > { %v3367_v35 = vpop.eup %3366 }
 0x416   : > { %v1443_v63 = vmul.f32 %v3367_v35, %v4246_v12  ;;  %v3369_v57 = vpop.eup %3368 }
 0x417   : > { %1676 = vrot.lane.b32.xlu1 %v4168_v45, %s3526_s18  ;;  %v1444_v60 = vmul.f32 %v3369_v57, %v4242_v50 }
 0x418   : > { %v1448_v53 = vpack.c.bf16 %v1443_v63, %v1442_v2 }
 0x41a   : > { %3026 = vmatmul.msk.bf16.gmra.mxu3 %vm582_vm0, %v1448_v53 }
 0x41d   : > { %3047 = vmatmul.msk.bf16.gmra.mxu0 %vm1304_vm6, %v1950_v32 }
 0x426   : > { %v1736_v56 = vpop.permute.xlu1 %1735 }
 0x43f   : > { %v4325_v52 = vpop.xlane.xlu0 %1591 }
 0x445   : > { %v1586_v39 = vpop.xlane.xlu2 %1585 }
 0x446   : > { %v1608_v29 = vsub.f32 %v4269_v61, %v1586_v39 }
 0x447   : > { %v4327_v47 = vpop.xlane.xlu0 %1600 }
 0x44d   : > { %v1595_v44 = vpop.xlane.xlu2 %1594 }
 0x44e   : > { %v1611_v23 = vsub.f32 %v4281_v1, %v1595_v44 }
 0x450   : > { %v1622_v28 = vmul.f32 1.442695, %v1611_v23 }
 0x451   : > { %v4329_v0 = vpop.xlane.xlu1 %1588 }
 0x452   : > { %v1609_v2 = vsub.f32 %v4284_v14, %v4329_v0 }
 0x455   : > { %v4331_v18 = vpop.xlane.xlu2 %1603 }
 0x456   : > { %v1614_v14 = vsub.f32 %v4290_v30, %v4331_v18 }
 0x459   : > { %v1992_v43 = vpop.f32.mrf.mxu0  ;;  %v1429_v48 = vpop.xlane.xlu1 %1428 }
 0x45a   : > { %v1683_v12 = vpop.permute.xlu0 %1682  ;;  %v4334_v46 = vadd.f32 %v4190_v20, %v1992_v43  ;;  %3370 = vrcp.f32 %v1429_v48  ;;  %v1628_v43 = vmul.f32 1.442695, %v1614_v14  ;;  %v1610_v48 = vsub.f32 %v4259_v38, %v4325_v52 }
 0x45b   : > { %1704 = vmatpush.bf16.msra.mxu1 %v1683_v12  ;;  %v1613_v52 = vsub.f32 %v4265_v40, %v4327_v47 }
 0x45c   : > { %v2012_v8 = vsel %vm582_vm0, %v4334_v46, -inf }
 0x45d   : > { %v1681_v51 = vpop.permute.xlu2 %1680  ;;  %2013 = vmax.xlane.f32.xlu1 %v2012_v8  ;;  %v4401_v8 = vpop.f32.mrf.mxu3 }
 0x45f   : > { %1705 = vmatpush.bf16.msra.mxu1 %v1681_v51 }
 0x460   : > { %v3371_v62 = vpop.eup %3370 }
 0x461   : > { %v1994_v55 = vpop.f32.mrf.mxu0  ;;  %v1445_v49 = vmul.f32 %v3371_v62, %v3363_v21  ;;  %v1598_v58 = vpop.xlane.xlu1 %1597  ;;  %v1620_v62 = vmul.f32 1.442695, %v1610_v48 }
 0x462   : > { %v4339_v13 = vadd.f32 %v4190_v20, %v1994_v55 }
 0x463   : > { %v1449_v19 = vpack.c.bf16 %v1445_v49, %v1444_v60 }
 0x464   : > { %v2015_v42 = vsel %vm582_vm0, %v4339_v13, -inf }
 0x465   : > { %2016 = vmax.xlane.f32.xlu0 %v2015_v42  ;;  %3027 = vmatmul.msk.bf16.gmra.mxu3 %vm582_vm0, %v1449_v19  ;;  %v2111_v41 = vpop.permute.xlu2 %2110  ;;  %v4422_v19 = vpop.f32.mrf.mxu3 }
 0x469   : > { %v1997_v37 = vpop.f32.mrf.mxu0  ;;  %v4349_v31 = vpop.xlane.xlu1 %1606 }
 0x46a   : > { %v4378_v1 = vadd.f32 %v4190_v20, %v1997_v37 }
 0x46c   : > { %v2018_v39 = vsel %vm582_vm0, %v4378_v1, -inf }
 0x46d   : > { %v4432_v47 = vpop.f32.mrf.mxu3 }
 0x471   : > { %v1999_v21 = vpop.f32.mrf.mxu0 }
 0x472   : > { %v4370_v61 = vadd.f32 %v4190_v20, %v1999_v21  ;;  %v1615_v21 = vsub.f32 %v4306_v22, %v4349_v31 }
 0x474   : > { %v2021_v63 = vsel %vm582_vm0, %v4370_v61, -inf }
 0x475   : > { %3036 = vmatmul.msk.bf16.vlgmr.msrb.gmra.mxu3 %vm1304_vm6, %v4276_v59 }
 0x476   : > { %1894 = vrot.lane.b32.xlu1 %v4159_v15, %s3527_s19 }
 0x479   : > { %1896 = vrot.lane.b32.xlu0 %v4155_v33, %s3527_s19  ;;  %v1616_v33 = vmul.f32 1.442695, %v1608_v29  ;;  %v4440_v29 = vpop.f32.mrf.mxu3 }
 0x47b   : > { %3372 = vpow2.f32 %v1616_v33 }
 0x47c   : > { %3374 = vpow2.f32 %v1622_v28 }
 0x47e   : > { %1892 = vrot.lane.b32.xlu1 %v4162_v7, %s3527_s19 }
 0x481   : > { %2108 = vrot.lane.b32.xlu0 %v4159_v15, %s3528_s20  ;;  %v1679_v50 = vpop.permute.xlu1 %1678  ;;  %v4367_v36 = vpop.eup %3372 }
 0x482   : > { %1706 = vmatpush.bf16.msra.mxu1 %v1679_v50  ;;  %v1632_v35 = vsel %vm582_vm0, %v4367_v36, 0.0  ;;  %v4383_v32 = vpop.eup %3374 }
 0x485   : > { %3037 = vmatmul.msk.bf16.gmra.mxu3 %vm1304_vm6, %v1732_v54 }
 0x489   : > { %v1677_v59 = vpop.permute.xlu1 %1676 }
 0x48a   : > { %1707 = vmatpush.bf16.msra.mxu1 %v1677_v59  ;;  %v2002_v27 = vpop.f32.mrf.mxu0  ;;  %v1630_v59 = vmul.f32 1.442695, %v1615_v21 }
 0x48b   : > { %v4395_v0 = vadd.f32 %v4190_v20, %v2002_v27 }
 0x48d   : > { %v2024_v18 = vsel %vm582_vm0, %v4395_v0, -inf }
 0x48e   : > { %2132 = vmatpush.bf16.msrb.mxu1 %v2111_v41 }
 0x492   : > { %v2004_v25 = vpop.f32.mrf.mxu0 }
 0x493   : > { %v4388_v44 = vadd.f32 %v4190_v20, %v2004_v25 }
 0x495   : > { %3038 = vmatmul.msk.bf16.gmra.mxu3 %vm1304_vm6, %v4312_v24  ;;  %v1612_v24 = vsub.f32 %v4300_v6, %v1598_v58  ;;  %v1618_v6 = vmul.f32 1.442695, %v1609_v2  ;;  %v2027_v12 = vsel %vm582_vm0, %v4388_v44, -inf  ;;  %v1626_v58 = vmul.f32 1.442695, %v1613_v52 }
 0x497   : > { %v1624_v53 = vmul.f32 1.442695, %v1612_v24 }
 0x499   : > { %3376 = vpow2.f32 %v1624_v53 }
 0x49a   : > { %v2007_v34 = vpop.f32.mrf.mxu0  ;;  %3378 = vpow2.f32 %v1618_v6 }
 0x49b   : > { %v4362_v15 = vadd.f32 %v4190_v20, %v2007_v34  ;;  %3380 = vpow2.f32 %v1628_v43 }
 0x49c   : > { %3382 = vpow2.f32 %v1620_v62 }
 0x49d   : > { %v2030_v54 = vsel %vm582_vm0, %v4362_v15, -inf  ;;  %3384 = vpow2.f32 %v1626_v58  ;;  %v4445_v23 = vpop.f32.mrf.mxu3 }
 0x49e   : > { %2031 = vmax.xlane.f32.xlu2 %v2030_v54  ;;  %3386 = vpow2.f32 %v1630_v59 }
 0x49f   : > { %v4403_v30 = vpop.eup %3376 }
 0x4a0   : > { %v4407_v57 = vpop.eup %3378  ;;  %v1644_v55 = vsel %vm582_vm0, %v4403_v30, 0.0 }
 0x4a1   : > { %v1635_v38 = vsel %vm582_vm0, %v4407_v57, 0.0  ;;  %v4418_v49 = vpop.eup %3380 }
 0x4a2   : > { %v2009_v51 = vpop.f32.mrf.mxu0  ;;  %v1650_v37 = vsel %vm582_vm0, %v4418_v49, 0.0  ;;  %v4426_v50 = vpop.eup %3382 }
 0x4a3   : > { %v4412_v60 = vadd.f32 %v4190_v20, %v2009_v51  ;;  %v1638_v40 = vsel %vm582_vm0, %v4426_v50, 0.0  ;;  %v4434_v41 = vpop.eup %3384 }
 0x4a4   : > { %v1647_v27 = vsel %vm582_vm0, %v4434_v41, 0.0  ;;  %v4438_v25 = vpop.eup %3386 }
 0x4a5   : > { %3039 = vmatmul.msk.bf16.gmra.mxu3 %vm1304_vm6, %v1736_v56  ;;  %v1641_v56 = vsel %vm582_vm0, %v4383_v32, 0.0  ;;  %v2033_v42 = vsel %vm582_vm0, %v4412_v60, -inf  ;;  %v1653_v31 = vsel %vm582_vm0, %v4438_v25, 0.0 }
 0x4a6   : > { %1633 = vadd.xlane.f32.xlu2 %v1632_v35 }
 0x4a8   : > { %2022 = vmax.xlane.f32.xlu1 %v2021_v63 }
 0x4ab   : > { %2019 = vmax.xlane.f32.xlu0 %v2018_v39 }
 0x4ae   : > { %1642 = vadd.xlane.f32.xlu2 %v1641_v56 }
 0x4b0   : > { %2028 = vmax.xlane.f32.xlu1 %v2027_v12 }
 0x4b3   : > { %2025 = vmax.xlane.f32.xlu0 %v2024_v18 }
 0x4b6   : > { %1645 = vadd.xlane.f32.xlu2 %v1644_v55 }
 0x4b8   : > { %1636 = vadd.xlane.f32.xlu1 %v1635_v38 }
 0x4bb   : > { %2034 = vmax.xlane.f32.xlu0 %v2033_v42 }
 0x4be   : > { %1651 = vadd.xlane.f32.xlu2 %v1650_v37 }
 0x4c3   : > { %1639 = vadd.xlane.f32.xlu0 %v1638_v40 }
 0x4cb   : > { %1648 = vadd.xlane.f32.xlu0 %v1647_v27 }
 0x4d0   : > { %v2014_v33 = vpop.xlane.xlu1 %2013 }
 0x4d1   : > { %v2036_v22 = vsub.f32 %v4334_v46, %v2014_v33  ;;  %v4452_v46 = vpop.f32.mrf.mxu3 }
 0x4d3   : > { %v2044_v34 = vmul.f32 1.442695, %v2036_v22  ;;  %1654 = vadd.xlane.f32.xlu0 %v1653_v31 }
 0x4d5   : > { %3388 = vpow2.f32 %v2044_v34 }
 0x4d8   : > { %v2017_v54 = vpop.xlane.xlu0 %2016 }
 0x4d9   : > { %v2037_v28 = vsub.f32 %v4339_v13, %v2017_v54 }
 0x4db   : > { %v4448_v24 = vpop.eup %3388  ;;  %v2046_v35 = vmul.f32 1.442695, %v2037_v28 }
 0x4dc   : > { %v2060_v2 = vsel %vm582_vm0, %v4448_v24, 0.0 }
 0x4dd   : > { %3390 = vpow2.f32 %v2046_v35  ;;  %2061 = vadd.xlane.f32.xlu1 %v2060_v2 }
 0x4e3   : > { %v4454_v63 = vpop.eup %3390 }
 0x4e4   : > { %v2063_v53 = vsel %vm582_vm0, %v4454_v63, 0.0 }
 0x4e5   : > { %2064 = vadd.xlane.f32.xlu2 %v2063_v53 }
 0x4e8   : > { %v4458_v6 = vpop.f32.mrf.mxu3  ;;  %v1895_v39 = vpop.permute.xlu1 %1894 }
 0x4eb   : > { %v1897_v13 = vpop.permute.xlu0 %1896 }
 0x4ec   : > { %1918 = vmatpush.bf16.msrb.mxu2 %v1897_v13 }
 0x4f0   : > { %1919 = vmatpush.bf16.msrb.mxu2 %v1895_v39  ;;  %v4460_v14 = vpop.f32.mrf.mxu3  ;;  %v1893_v56 = vpop.permute.xlu1 %1892 }
 0x4f3   : > { %v2109_v12 = vpop.permute.xlu0 %2108 }
 0x4f4   : > { %1920 = vmatpush.bf16.msrb.mxu2 %v1893_v56  ;;  %2133 = vmatpush.bf16.msrb.mxu1 %v2109_v12 }
 0x4f8   : > { %v1778_v43 = vpop.f32.mrf.mxu3 }
 0x4f9   : > { %v4463_v48 = vadd.f32 %v4190_v20, %v1778_v43 }
 0x4fb   : > { %v1798_v18 = vsel %vm582_vm0, %v4463_v48, -inf }
 0x4fc   : > { %1799 = vmax.xlane.f32.xlu0 %v1798_v18 }
 0x500   : > { %v1780_v51 = vpop.f32.mrf.mxu3 }
 0x501   : > { %v4468_v62 = vadd.f32 %v4190_v20, %v1780_v51 }
 0x503   : > { %v1801_v55 = vsel %vm582_vm0, %v4468_v62, -inf }
 0x504   : > { %1802 = vmax.xlane.f32.xlu2 %v1801_v55 }
 0x508   : > { %v1783_v38 = vpop.f32.mrf.mxu3 }
 0x509   : > { %v4473_v52 = vadd.f32 %v4190_v20, %v1783_v38 }
 0x50b   : > { %v1804_v42 = vsel %vm582_vm0, %v4473_v52, -inf }
 0x50c   : > { %1805 = vmax.xlane.f32.xlu0 %v1804_v42 }
 0x510   : > { %v1785_v58 = vpop.f32.mrf.mxu3 }
 0x511   : > { %v4478_v37 = vadd.f32 %v4190_v20, %v1785_v58  ;;  %v4489_v22 = vpop.xlane.xlu2 %2031 }
 0x513   : > { %v1807_v21 = vsel %vm582_vm0, %v4478_v37, -inf }
 0x514   : > { %1808 = vmax.xlane.f32.xlu2 %v1807_v21 }
 0x518   : > { %v1788_v40 = vpop.f32.mrf.mxu3 }
 0x519   : > { %v4483_v59 = vadd.f32 %v4190_v20, %v1788_v40  ;;  %v1634_v53 = vpop.xlane.xlu2 %1633 }
 0x51a   : > { %3392 = vrcp.f32 %v1634_v53 }
 0x51b   : > { %v4485_v27 = vpop.xlane.xlu1 %2022  ;;  %v1810_v33 = vsel %vm582_vm0, %v4483_v59, -inf }
 0x51c   : > { %1811 = vmax.xlane.f32.xlu1 %v1810_v33 }
 0x51e   : > { %v4491_v31 = vpop.xlane.xlu0 %2019 }
 0x520   : > { %v1790_v34 = vpop.f32.mrf.mxu3  ;;  %1890 = vrot.lane.b32.xlu0 %v4168_v45, %s3527_s19  ;;  %v3393_v18 = vpop.eup %3392 }
 0x521   : > { %v4496_v54 = vadd.f32 %v4190_v20, %v1790_v34  ;;  %v1664_v42 = vmul.f32 %v3393_v18, %v4367_v36  ;;  %v1643_v34 = vpop.xlane.xlu2 %1642 }
 0x523   : > { %v4498_v28 = vpop.xlane.xlu1 %2028  ;;  %v1813_v35 = vsel %vm582_vm0, %v4496_v54, -inf }
 0x524   : > { %1814 = vmax.xlane.f32.xlu2 %v1813_v35 }
 0x526   : > { %v4502_v2 = vpop.xlane.xlu0 %2025 }
 0x528   : > { %v1793_v39 = vpop.f32.mrf.mxu3 }
 0x529   : > { %v4505_v13 = vadd.f32 %v4190_v20, %v1793_v39 }
 0x52b   : > { %v1637_v56 = vpop.xlane.xlu1 %1636  ;;  %v1816_v12 = vsel %vm582_vm0, %v4505_v13, -inf }
 0x52c   : > { %3394 = vrcp.f32 %v1637_v56  ;;  %1817 = vmax.xlane.f32.xlu1 %v1816_v12 }
 0x52e   : > { %v4509_v43 = vpop.xlane.xlu0 %2034 }
 0x530   : > { %v1795_v51 = vpop.f32.mrf.mxu3 }
 0x531   : > { %v4512_v38 = vadd.f32 %v4190_v20, %v1795_v51 }
 0x532   : > { %v3395_v55 = vpop.eup %3394 }
 0x533   : > { %v1665_v58 = vmul.f32 %v3395_v55, %v4407_v57  ;;  %v1819_v21 = vsel %vm582_vm0, %v4512_v38, -inf  ;;  %v1646_v57 = vpop.xlane.xlu2 %1645 }
 0x534   : > { %1820 = vmax.xlane.f32.xlu2 %v1819_v21 }
 0x535   : > { %v1672_v40 = vpack.c.bf16 %v1665_v58, %v1664_v42 }
 0x536   : > { %v1640_v33 = vpop.xlane.xlu0 %1639 }
 0x537   : > { %3032 = vmatmul.msk.bf16.vlgmr.msra.gmra.mxu1 %vm582_vm0, %v1672_v40  ;;  %3396 = vrcp.f32 %v1640_v33 }
 0x538   : > { %3398 = vrcp.f32 %v1643_v34 }
 0x53b   : > { %v1652_v51 = vpop.xlane.xlu2 %1651 }
 0x53d   : > { %v3397_v35 = vpop.eup %3396 }
 0x53e   : > { %v3399_v53 = vpop.eup %3398  ;;  %v1666_v20 = vmul.f32 %v3397_v35, %v4426_v50  ;;  %v1649_v36 = vpop.xlane.xlu0 %1648 }
 0x53f   : > { %v1667_v39 = vmul.f32 %v3399_v53, %v4383_v32  ;;  %3400 = vrcp.f32 %v1649_v36 }
 0x540   : > { %3402 = vrcp.f32 %v1646_v57 }
 0x541   : > { %v1673_v56 = vpack.c.bf16 %v1667_v39, %v1666_v20 }
 0x545   : > { %v3401_v12 = vpop.eup %3400 }
 0x546   : > { %v3403_v18 = vpop.eup %3402  ;;  %v1669_v55 = vmul.f32 %v3401_v12, %v4434_v41  ;;  %v1655_v21 = vpop.xlane.xlu0 %1654 }
 0x547   : > { %3033 = vmatmul.msk.bf16.gmra.mxu1 %vm582_vm0, %v1673_v56  ;;  %v1668_v42 = vmul.f32 %v3403_v18, %v4403_v30 }
 0x549   : > { %v1674_v40 = vpack.c.bf16 %v1669_v55, %v1668_v42 }
 0x550   : > { %v2062_v58 = vpop.xlane.xlu1 %2061 }
 0x551   : > { %3404 = vrcp.f32 %v2062_v58 }
 0x552   : > { %3406 = vrcp.f32 %v1655_v21 }
 0x557   : > { %3034 = vmatmul.msk.bf16.gmra.mxu1 %vm582_vm0, %v1674_v40  ;;  %v3405_v50 = vpop.eup %3404 }
 0x558   : > { %v2065_v32 = vpop.xlane.xlu2 %2064  ;;  %v3407_v33 = vpop.eup %3406  ;;  %v4526_v53 = vmul.f32 %v3405_v50, %v4448_v24 }
 0x559   : > { %3408 = vrcp.f32 %v2065_v32  ;;  %v1671_v30 = vmul.f32 %v3407_v33, %v4438_v25 }
 0x55a   : > { %3410 = vrcp.f32 %v1652_v51 }
 0x55f   : > { %v3409_v34 = vpop.eup %3408 }
 0x560   : > { %v3411_v35 = vpop.eup %3410  ;;  %v4529_v41 = vmul.f32 %v3409_v34, %v4454_v63 }
 0x561   : > { %v1670_v39 = vmul.f32 %v3411_v35, %v4418_v49 }
 0x562   : > { %v2100_v20 = vpack.c.bf16 %v4529_v41, %v4526_v53 }
 0x563   : > { %v1675_v36 = vpack.c.bf16 %v1671_v30, %v1670_v39 }
 0x567   : > { %3035 = vmatmul.msk.bf16.gmra.mxu1 %vm582_vm0, %v1675_v36 }
 0x56f   : > { %v1800_v56 = vpop.xlane.xlu0 %1799 }
 0x570   : > { %v1822_v57 = vsub.f32 %v4463_v48, %v1800_v56 }
 0x572   : > { %v1830_v12 = vmul.f32 1.442695, %v1822_v57 }
 0x574   : > { %3412 = vpow2.f32 %v1830_v12 }
 0x577   : > { %v1803_v24 = vpop.xlane.xlu2 %1802 }
 0x578   : > { %v1823_v18 = vsub.f32 %v4468_v62, %v1803_v24  ;;  %v2043_v24 = vsub.f32 %v4412_v60, %v4509_v43  ;;  %v2039_v60 = vsub.f32 %v4370_v61, %v4485_v27 }
 0x57a   : > { %v4538_v63 = vpop.eup %3412  ;;  %v1832_v51 = vmul.f32 1.442695, %v1823_v18 }
 0x57b   : > { %v1846_v25 = vsel %vm582_vm0, %v4538_v63, 0.0 }
 0x57c   : > { %3414 = vpow2.f32 %v1832_v51  ;;  %1847 = vadd.xlane.f32.xlu1 %v1846_v25  ;;  %v2058_v51 = vmul.f32 1.442695, %v2043_v24 }
 0x57f   : > { %v1806_v58 = vpop.xlane.xlu0 %1805 }
 0x580   : > { %v1824_v18 = vsub.f32 %v4473_v52, %v1806_v58  ;;  %v2050_v52 = vmul.f32 1.442695, %v2039_v60 }
 0x582   : > { %v4542_v49 = vpop.eup %3414 }
 0x583   : > { %v1849_v55 = vsel %vm582_vm0, %v4542_v49, 0.0 }
 0x584   : > { %1850 = vadd.xlane.f32.xlu2 %v1849_v55  ;;  %v2038_v55 = vsub.f32 %v4378_v1, %v4491_v31  ;;  %v2042_v31 = vsub.f32 %v4362_v15, %v4489_v22 }
 0x586   : > { %v2048_v43 = vmul.f32 1.442695, %v2038_v55 }
 0x587   : > { %v1809_v48 = vpop.xlane.xlu2 %1808 }
 0x588   : > { %v1825_v42 = vsub.f32 %v4478_v37, %v1809_v48 }
 0x58a   : > { %v1836_v21 = vmul.f32 1.442695, %v1825_v42 }
 0x58c   : > { %3416 = vpow2.f32 %v1836_v21 }
 0x58f   : > { %v1812_v62 = vpop.xlane.xlu1 %1811 }
 0x590   : > { %v1826_v40 = vsub.f32 %v4483_v59, %v1812_v62  ;;  %v2040_v59 = vsub.f32 %v4395_v0, %v4502_v2  ;;  %v2041_v62 = vsub.f32 %v4388_v44, %v4498_v28 }
 0x592   : > { %v4548_v32 = vpop.eup %3416  ;;  %v1838_v50 = vmul.f32 1.442695, %v1826_v40  ;;  %v1891_v33 = vpop.permute.xlu0 %1890  ;;  %v2052_v56 = vmul.f32 1.442695, %v2040_v59  ;;  %v2054_v27 = vmul.f32 1.442695, %v2041_v62 }
 0x593   : > { %1921 = vmatpush.bf16.msrb.mxu2 %v1891_v33  ;;  %v1855_v34 = vsel %vm582_vm0, %v4548_v32, 0.0  ;;  %v2056_v33 = vmul.f32 1.442695, %v2042_v31 }
 0x594   : > { %3418 = vpow2.f32 %v1838_v50  ;;  %1856 = vadd.xlane.f32.xlu0 %v1855_v34 }
 0x595   : > { %2104 = vrot.lane.b32.xlu1 %v4168_v45, %s3528_s20 }
 0x597   : > { %v1815_v37 = vpop.xlane.xlu2 %1814 }
 0x598   : > { %v1827_v35 = vsub.f32 %v4496_v54, %v1815_v37 }
 0x59a   : > { %v4555_v30 = vpop.eup %3418  ;;  %v1840_v39 = vmul.f32 1.442695, %v1827_v35 }
 0x59b   : > { %v1858_v36 = vsel %vm582_vm0, %v4555_v30, 0.0 }
 0x59c   : > { %3420 = vpow2.f32 %v1840_v39  ;;  %2106 = vrot.lane.b32.xlu2 %v4162_v7, %s3528_s20  ;;  %1859 = vadd.xlane.f32.xlu0 %v1858_v36 }
 0x59d   : > { %3422 = vpow2.f32 %v2052_v56 }
 0x59f   : > { %v1818_v57 = vpop.xlane.xlu1 %1817 }
 0x5a0   : > { %v1828_v54 = vsub.f32 %v4505_v13, %v1818_v57  ;;  %v1834_v13 = vmul.f32 1.442695, %v1824_v18 }
 0x5a2   : > { %v4563_v45 = vpop.eup %3420  ;;  %v1842_v0 = vmul.f32 1.442695, %v1828_v54 }
 0x5a3   : > { %v1861_v12 = vsel %vm582_vm0, %v4563_v45, 0.0  ;;  %v4568_v2 = vpop.eup %3422 }
 0x5a4   : > { %1862 = vadd.xlane.f32.xlu0 %v1861_v12  ;;  %3424 = vpow2.f32 %v1842_v0  ;;  %v2072_v7 = vsel %vm582_vm0, %v4568_v2, 0.0 }
 0x5a5   : > { %3426 = vpow2.f32 %v2058_v51 }
 0x5a6   : > { %3428 = vpow2.f32 %v1834_v13 }
 0x5a7   : > { %3430 = vpow2.f32 %v2048_v43  ;;  %v1821_v40 = vpop.xlane.xlu2 %1820 }
 0x5a8   : > { %3432 = vpow2.f32 %v2050_v52  ;;  %v1829_v44 = vsub.f32 %v4512_v38, %v1821_v40 }
 0x5a9   : > { %3434 = vpow2.f32 %v2054_v27 }
 0x5aa   : > { %v4575_v25 = vpop.eup %3424  ;;  %3436 = vpow2.f32 %v2056_v33  ;;  %v1844_v22 = vmul.f32 1.442695, %v1829_v44 }
 0x5ab   : > { %v1864_v48 = vsel %vm582_vm0, %v4575_v25, 0.0  ;;  %v4583_v42 = vpop.eup %3426 }
 0x5ac   : > { %2073 = vadd.xlane.f32.xlu0 %v2072_v7  ;;  %v4585_v21 = vpop.eup %3428  ;;  %v2081_v1 = vsel %vm582_vm0, %v4583_v42, 0.0  ;;  %3438 = vpow2.f32 %v1844_v22 }
 0x5ad   : > { %v1852_v61 = vsel %vm582_vm0, %v4585_v21, 0.0  ;;  %v4595_v50 = vpop.eup %3430 }
 0x5ae   : > { %v4597_v34 = vpop.eup %3432  ;;  %v2066_v37 = vsel %vm582_vm0, %v4595_v50, 0.0 }
 0x5af   : > { %v2069_v15 = vsel %vm582_vm0, %v4597_v34, 0.0  ;;  %v4604_v35 = vpop.eup %3434 }
 0x5b0   : > { %v4606_v59 = vpop.eup %3436  ;;  %v2075_v39 = vsel %vm582_vm0, %v4604_v35, 0.0 }
 0x5b1   : > { %v2078_v36 = vsel %vm582_vm0, %v4606_v59, 0.0 }
 0x5b2   : > { %v4612_v56 = vpop.eup %3438 }
 0x5b3   : > { %v1867_v57 = vsel %vm582_vm0, %v4612_v56, 0.0 }
 0x5b4   : > { %1865 = vadd.xlane.f32.xlu0 %v1864_v48  ;;  %v1709_v58 = vpop.f32.mrf.mxu1 }
 0x5bc   : > { %2082 = vadd.xlane.f32.xlu0 %v2081_v1  ;;  %v1711_v28 = vpop.f32.mrf.mxu1 }
 0x5bd   : > { %v3234_v0 = vpack.i.bf16 %v1711_v28, %v1709_v58 }
 0x5bf   : > { %1853 = vadd.xlane.f32.xlu1 %v1852_v61 }
 0x5c4   : > { %v1714_v38 = vpop.f32.mrf.mxu1 }
 0x5c5   : > { %2067 = vadd.xlane.f32.xlu2 %v2066_v37 }
 0x5c7   : > { %2070 = vadd.xlane.f32.xlu1 %v2069_v15 }
 0x5cc   : > { %v1716_v54 = vpop.f32.mrf.mxu1 }
 0x5cd   : > { %2076 = vadd.xlane.f32.xlu2 %v2075_v39  ;;  %v3249_v7 = vpack.i.bf16 %v1716_v54, %v1714_v38 }
 0x5cf   : > { %2079 = vadd.xlane.f32.xlu1 %v2078_v36 }
 0x5d4   : > { %v1719_v12 = vpop.f32.mrf.mxu1 }
 0x5d5   : > { %1868 = vadd.xlane.f32.xlu2 %v1867_v57 }
 0x5dc   : > { %v1721_v24 = vpop.f32.mrf.mxu1 }
 0x5dd   : > { %v3264_v55 = vpack.i.bf16 %v1721_v24, %v1719_v12 }
 0x5e4   : > { %v1724_v51 = vpop.f32.mrf.mxu1 }
 0x5ec   : > { %v1726_v58 = vpop.f32.mrf.mxu1 }
 0x5ed   : > { %3235 = vrot.lane.b32.xlu2 %v3234_v0, %s3529_s28  ;;  %v3279_v31 = vpack.i.bf16 %v1726_v58, %v1724_v51 }
 0x5ef   : > { %v1848_v18 = vpop.xlane.xlu1 %1847 }
 0x5f0   : > { %3440 = vrcp.f32 %v1848_v18 }
 0x5f5   : > { %3250 = vrot.lane.b32.xlu2 %v3249_v7, %s3529_s28 }
 0x5f6   : > { %v3441_v48 = vpop.eup %3440 }
 0x5f7   : > { %v1851_v13 = vpop.xlane.xlu2 %1850  ;;  %v1878_v43 = vmul.f32 %v3441_v48, %v4538_v63 }
 0x5f8   : > { %3442 = vrcp.f32 %v1851_v13 }
 0x5fd   : > { %3265 = vrot.lane.b32.xlu2 %v3264_v55, %s3529_s28 }
 0x5fe   : > { %v3443_v60 = vpop.eup %3442 }
 0x5ff   : > { %v1879_v52 = vmul.f32 %v3443_v60, %v4542_v49  ;;  %v2107_v62 = vpop.permute.xlu2 %2106 }
 0x600   : > { %2134 = vmatpush.bf16.msrb.mxu1 %v2107_v62 }
 0x601   : > { %v1886_v1 = vpack.c.bf16 %v1879_v52, %v1878_v43 }
 0x603   : > { %3040 = vmatmul.msk.bf16.vlgmr.msrb.gmra.mxu2 %vm582_vm0, %v1886_v1 }
 0x605   : > { %3280 = vrot.lane.b32.xlu2 %v3279_v31, %s3529_s28 }
 0x607   : > { %v2105_v61 = vpop.permute.xlu1 %2104  ;;  %v1857_v27 = vpop.xlane.xlu0 %1856 }
 0x608   : > { %2135 = vmatpush.bf16.msrb.mxu1 %v2105_v61  ;;  %3444 = vrcp.f32 %v1857_v27 }
 0x60b   : > { %3048 = vmatmul.msk.bf16.vlgmr.msrb.gmra.mxu1 %vm582_vm0, %v2100_v20 }
 0x60e   : > { %v3445_v49 = vpop.eup %3444 }
 0x60f   : > { %v1860_v40 = vpop.xlane.xlu0 %1859  ;;  %v1881_v22 = vmul.f32 %v3445_v49, %v4548_v32 }
 0x617   : > { %v1863_v33 = vpop.xlane.xlu0 %1862 }
 0x61f   : > { %v2074_v20 = vpop.xlane.xlu0 %2073 }
 0x627   : > { %v1866_v24 = vpop.xlane.xlu0 %1865 }
 0x632   : > { %v1854_v63 = vpop.xlane.xlu1 %1853 }
 0x633   : > { %3446 = vrcp.f32 %v1854_v63 }
 0x638   : > { %v2068_v44 = vpop.xlane.xlu2 %2067 }
 0x639   : > { %v3447_v28 = vpop.eup %3446  ;;  %3448 = vrcp.f32 %v2068_v44 }
 0x63a   : > { %v2071_v37 = vpop.xlane.xlu1 %2070  ;;  %v1880_v15 = vmul.f32 %v3447_v28, %v4585_v21 }
 0x63b   : > { %3450 = vrcp.f32 %v2071_v37 }
 0x63c   : > { %v1887_v39 = vpack.c.bf16 %v1881_v22, %v1880_v15  ;;  %3452 = vrcp.f32 %v1863_v33  ;;  %v3146_v15 = vld [vmem:[%s4942_s8 + $0x10] sm:$0xff]  ;;  %v3145_v22 = vld [vmem:[%s4942_s8 + $0x8] sm:$0xff] }
 0x63d   : > { %3454 = vrcp.f32 %v1860_v40 }
 0x63e   : > { %3041 = vmatmul.msk.bf16.gmra.mxu2 %vm582_vm0, %v1887_v39 }
 0x63f   : > { %v3449_v53 = vpop.eup %3448 }
 0x640   : > { %v2077_v38 = vpop.xlane.xlu2 %2076  ;;  %v2094_v36 = vmul.f32 %v3449_v53, %v4595_v50 }
 0x641   : > { %v3451_v41 = vpop.eup %3450  ;;  %3456 = vrcp.f32 %v2077_v38 }
 0x642   : > { %v2095_v57 = vmul.f32 %v3451_v41, %v4597_v34  ;;  %v3453_v12 = vpop.eup %3452  ;;  %3458 = vrcp.f32 %v2074_v20  ;;  %v2080_v55 = vpop.xlane.xlu1 %2079 }
 0x643   : > { %v3455_v21 = vpop.eup %3454  ;;  %v1883_v32 = vmul.f32 %v3453_v12, %v4563_v45  ;;  %v2083_v45 = vpop.xlane.xlu0 %2082  ;;  %v3144_v12 = vld [vmem:[%s4942_s8] sm:$0xff] }
 0x644   : > { %v2101_v54 = vpack.c.bf16 %v2095_v57, %v2094_v36  ;;  %v1882_v0 = vmul.f32 %v3455_v21, %v4555_v30 }
 0x646   : > { %3049 = vmatmul.msk.bf16.gmra.mxu1 %vm582_vm0, %v2101_v54  ;;  %v1888_v18 = vpack.c.bf16 %v1883_v32, %v1882_v0 }
 0x647   : > { %v3457_v51 = vpop.eup %3456 }
 0x648   : > { %v1869_v7 = vpop.xlane.xlu2 %1868  ;;  %v3459_v50 = vpop.eup %3458  ;;  %v2097_v34 = vmul.f32 %v3457_v51, %v4604_v35 }
 0x649   : > { %3460 = vrcp.f32 %v1869_v7  ;;  %v2096_v13 = vmul.f32 %v3459_v50, %v4568_v2 }
 0x64a   : > { %3462 = vrcp.f32 %v1866_v24 }
 0x64b   : > { %v2102_v48 = vpack.c.bf16 %v2097_v34, %v2096_v13  ;;  %3464 = vrcp.f32 %v2080_v55 }
 0x64c   : > { %3466 = vrcp.f32 %v2083_v45 }
 0x64e   : > { %3042 = vmatmul.msk.bf16.gmra.mxu2 %vm582_vm0, %v1888_v18 }
 0x64f   : > { %v3461_v60 = vpop.eup %3460 }
 0x650   : > { %v3463_v30 = vpop.eup %3462  ;;  %v1885_v43 = vmul.f32 %v3461_v60, %v4612_v56  ;;  %v3236_v7 = vpop.permute.xlu2 %3235 }
 0x651   : > { %v1884_v52 = vmul.f32 %v3463_v30, %v4575_v25  ;;  %v3465_v58 = vpop.eup %3464  ;;  %v3147_v25 = vld [vmem:[%s4942_s8 + $0x18] sm:$0xff]  ;;  %v3238_v18 = vunpack.i.h.bf16 %v3236_v7  ;;  %v3237_v51 = vunpack.i.l.bf16 %v3236_v7 }
 0x652   : > { %v3467_v35 = vpop.eup %3466  ;;  %v2098_v2 = vmul.f32 %v3465_v58, %v4606_v59  ;;  %2335 = vmatpush.bf16.msra.mxu3 %v3147_v25 }
 0x653   : > { %v1889_v62 = vpack.c.bf16 %v1885_v43, %v1884_v52  ;;  %v2099_v1 = vmul.f32 %v3467_v35, %v4583_v42  ;;  %v2254_v55 = vsel %vm1304_vm6, %v4422_v19, %v3238_v18 }
 0x655   : > { %v2103_v31 = vpack.c.bf16 %v2099_v1, %v2098_v2 }
 0x656   : > { %3050 = vmatmul.msk.bf16.gmra.mxu1 %vm582_vm0, %v2102_v48  ;;  %2336 = vmatpush.bf16.msra.mxu3 %v3146_v15  ;;  %v2253_v48 = vsel %vm1304_vm6, %v4401_v8, %v3237_v51 }
 0x658   : > { %v3251_v2 = vpop.permute.xlu2 %3250 }
 0x659   : > { %v3253_v19 = vunpack.i.h.bf16 %v3251_v2  ;;  %v3252_v1 = vunpack.i.l.bf16 %v3251_v2 }
 0x65a   : > { %2337 = vmatpush.bf16.msra.mxu3 %v3145_v22 }
 0x65e   : > { %3043 = vmatmul.msk.bf16.gmra.mxu2 %vm582_vm0, %v1889_v62  ;;  %2338 = vmatpush.bf16.msra.mxu3 %v3144_v12 }
 0x666   : > { %3051 = vmatmul.msk.bf16.gmra.mxu1 %vm582_vm0, %v2103_v31 }
 0x686   : > { %v1923_v61 = vpop.f32.mrf.mxu2 }
 0x688   : > { %v2137_v27 = vpop.f32.mrf.mxu1 }
 0x68e   : > { %v1925_v40 = vpop.f32.mrf.mxu2 }
 0x68f   : > { %v3239_v63 = vpack.i.bf16 %v1925_v40, %v1923_v61  ;;  %v2255_v40 = vsel %vm1304_vm6, %v4432_v47, %v3252_v1 }
 0x690   : > { %v2139_v56 = vpop.f32.mrf.mxu1 }
 0x691   : > { %v3244_v49 = vpack.i.bf16 %v2139_v56, %v2137_v27  ;;  %3240 = vrot.lane.b32.xlu1 %v3239_v63, %s3530_s0  ;;  %v2256_v27 = vsel %vm1304_vm6, %v4440_v29, %v3253_v19 }
 0x693   : > { %3245 = vrot.lane.b32.xlu0 %v3244_v49, %s3531_s17 }
 0x6c1   : > { %v1928_v42 = vpop.f32.mrf.mxu2 }
 0x6c3   : > { %v2142_v59 = vpop.f32.mrf.mxu1 }
 0x6c9   : > { %v1930_v33 = vpop.f32.mrf.mxu2 }
 0x6ca   : > { %v3254_v44 = vpack.i.bf16 %v1930_v33, %v1928_v42 }
 0x6cb   : > { %v2144_v28 = vpop.f32.mrf.mxu1 }
 0x6cc   : > { %v3259_v37 = vpack.i.bf16 %v2144_v28, %v2142_v59  ;;  %3255 = vrot.lane.b32.xlu0 %v3254_v44, %s3530_s0  ;;  %v3266_v28 = vpop.permute.xlu2 %3265 }
 0x6cd   : > { %v3267_v29 = vunpack.i.l.bf16 %v3266_v28 }
 0x6ce   : > { %3260 = vrot.lane.b32.xlu1 %v3259_v37, %s3531_s17  ;;  %v3268_v37 = vunpack.i.h.bf16 %v3266_v28 }
 0x6d1   : > { %v1933_v39 = vpop.f32.mrf.mxu2 }
 0x6d3   : > { %v2147_v53 = vpop.f32.mrf.mxu1 }
 0x6d9   : > { %v1935_v41 = vpop.f32.mrf.mxu2 }
 0x6da   : > { %v3269_v20 = vpack.i.bf16 %v1935_v41, %v1933_v39  ;;  %v2258_v39 = vsel %vm1304_vm6, %v4452_v46, %v3268_v37 }
 0x6db   : > { %v2149_v38 = vpop.f32.mrf.mxu1 }
 0x6dc   : > { %v3274_v36 = vpack.i.bf16 %v2149_v38, %v2147_v53  ;;  %3270 = vrot.lane.b32.xlu0 %v3269_v20, %s3530_s0  ;;  %v2257_v53 = vsel %vm1304_vm6, %v4445_v23, %v3267_v29 }
 0x6de   : > { %3275 = vrot.lane.b32.xlu1 %v3274_v36, %s3531_s17 }
 0x6e1   : > { %v1938_v57 = vpop.f32.mrf.mxu2 }
 0x6e3   : > { %v2152_v54 = vpop.f32.mrf.mxu1 }
 0x6e9   : > { %v1940_v21 = vpop.f32.mrf.mxu2 }
 0x6ea   : > { %v3284_v32 = vpack.i.bf16 %v1940_v21, %v1938_v57 }
 0x6eb   : > { %v2154_v0 = vpop.f32.mrf.mxu1 }
 0x6ec   : > { %v3289_v24 = vpack.i.bf16 %v2154_v0, %v2152_v54  ;;  %3285 = vrot.lane.b32.xlu0 %v3284_v32, %s3530_s0  ;;  %v3281_v32 = vpop.permute.xlu2 %3280 }
 0x6ed   : > { %v3283_v0 = vunpack.i.h.bf16 %v3281_v32  ;;  %v3282_v46 = vunpack.i.l.bf16 %v3281_v32 }
 0x6ee   : > { %3290 = vrot.lane.b32.xlu1 %v3289_v24, %s3531_s17 }
 0x6ef   : > { %v2260_v18 = vsel %vm1304_vm6, %v4460_v14, %v3283_v0  ;;  %v2259_v51 = vsel %vm1304_vm6, %v4458_v6, %v3282_v46  ;;  %v3301_v14 = vld [vmem:[%s4943_s9] ss:$0 sm:$0xff] }
 0x703   : > { %v3241_v50 = vpop.permute.xlu1 %3240 }
 0x704   : > { %v3243_v34 = vunpack.i.h.bf16 %v3241_v50  ;;  %v3242_v13 = vunpack.i.l.bf16 %v3241_v50 }
 0x705   : > { %v3246_v60 = vpop.permute.xlu0 %3245 }
 0x706   : > { %v2263_v45 = vsel %vm2261_vm7, %v2254_v55, %v3243_v34  ;;  %v2262_v30 = vsel %vm2261_vm7, %v2253_v48, %v3242_v13  ;;  %v3248_v43 = vunpack.i.h.bf16 %v3246_v60  ;;  %v3247_v52 = vunpack.i.l.bf16 %v3246_v60 }
 0x708   : > { %v2271_v62 = vsel %vm2270_vm9, %v2262_v30, %v3247_v52  ;;  %v2272_v58 = vsel %vm2270_vm9, %v2263_v45, %v3248_v43 }
 0x709   : > { %v2279_v35 = vpack.c.bf16 %v2272_v58, %v2271_v62 }
 0x70b   : > { %3068 = vmatmul.msk.bf16.vlgmr.msra.gmra.mxu3 %vm582_vm0, %v2279_v35 }
 0x73e   : > { %v3256_v31 = vpop.permute.xlu0 %3255 }
 0x73f   : > { %v3258_v8 = vunpack.i.h.bf16 %v3256_v31  ;;  %v3257_v61 = vunpack.i.l.bf16 %v3256_v31 }
 0x740   : > { %v3261_v63 = vpop.permute.xlu1 %3260 }
 0x741   : > { %v2265_v56 = vsel %vm2261_vm7, %v2256_v27, %v3258_v8  ;;  %v2264_v49 = vsel %vm2261_vm7, %v2255_v40, %v3257_v61  ;;  %v3263_v25 = vunpack.i.h.bf16 %v3261_v63  ;;  %v3262_v42 = vunpack.i.l.bf16 %v3261_v63 }
 0x743   : > { %v2273_v59 = vsel %vm2270_vm9, %v2264_v49, %v3262_v42  ;;  %v2274_v33 = vsel %vm2270_vm9, %v2265_v56, %v3263_v25 }
 0x744   : > { %v2280_v44 = vpack.c.bf16 %v2274_v33, %v2273_v59 }
 0x746   : > { %3069 = vmatmul.msk.bf16.gmra.mxu3 %vm582_vm0, %v2280_v44 }
 0x74e   : > { %v3271_v15 = vpop.permute.xlu0 %3270 }
 0x74f   : > { %v3273_v22 = vunpack.i.h.bf16 %v3271_v15  ;;  %v3272_v47 = vunpack.i.l.bf16 %v3271_v15 }
 0x750   : > { %v3276_v41 = vpop.permute.xlu1 %3275 }
 0x751   : > { %v2267_v20 = vsel %vm2261_vm7, %v2258_v39, %v3273_v22  ;;  %v2266_v38 = vsel %vm2261_vm7, %v2257_v53, %v3272_v47  ;;  %v3278_v36 = vunpack.i.h.bf16 %v3276_v41  ;;  %v3277_v57 = vunpack.i.l.bf16 %v3276_v41 }
 0x753   : > { %v2275_v54 = vsel %vm2270_vm9, %v2266_v38, %v3277_v57  ;;  %v2276_v12 = vsel %vm2270_vm9, %v2267_v20, %v3278_v36 }
 0x754   : > { %v2281_v21 = vpack.c.bf16 %v2276_v12, %v2275_v54 }
 0x756   : > { %3070 = vmatmul.msk.bf16.gmra.mxu3 %vm582_vm0, %v2281_v21 }
 0x75e   : > { %v3286_v24 = vpop.permute.xlu0 %3285 }
 0x75f   : > { %v3288_v7 = vunpack.i.h.bf16 %v3286_v24  ;;  %v3287_v23 = vunpack.i.l.bf16 %v3286_v24 }
 0x760   : > { %v3291_v50 = vpop.permute.xlu1 %3290 }
 0x761   : > { %v2269_v34 = vsel %vm2261_vm7, %v2260_v18, %v3288_v7  ;;  %v2268_v13 = vsel %vm2261_vm7, %v2259_v51, %v3287_v23  ;;  %v3293_v55 = vunpack.i.h.bf16 %v3291_v50  ;;  %v3292_v48 = vunpack.i.l.bf16 %v3291_v50 }
 0x763   : > { %v2277_v60 = vsel %vm2270_vm9, %v2268_v13, %v3292_v48  ;;  %v2278_v45 = vsel %vm2270_vm9, %v2269_v34, %v3293_v55 }
 0x764   : > { %v2282_v30 = vpack.c.bf16 %v2278_v45, %v2277_v60 }
 0x766   : > { %3071 = vmatmul.msk.bf16.gmra.mxu3 %vm582_vm0, %v2282_v30 }
 0x78e   : > { %v2340_v43 = vpop.f32.mrf.mxu3 }
 0x78f   : > { %v2341_v6 = vadd.f32 %v3301_v14, %v2340_v43 }
 0x791   : > { %v4701_v52 = vadd.f32 %v3649_v4, %v2341_v6 }
 0x793   : > { %v2370_v62 = vsel %vm582_vm0, %v4701_v52, 0.0 }
 0x794   : > { %2371 = vadd.xlane.f32.xlu2 %v2370_v62 }
 0x796   : > { %v2342_v58 = vpop.f32.mrf.mxu3 }
 0x797   : > { %v2343_v35 = vadd.f32 %v3301_v14, %v2342_v58 }
 0x799   : > { %v4706_v2 = vadd.f32 %v3666_v10, %v2343_v35  ;;  %v3151_v35 = vld [vmem:[%s4946_s12 + $0x18] sm:$0xff] }
 0x79a   : > { %2624 = vmatpush.bf16.msra.mxu2 %v3151_v35 }
 0x79b   : > { %v2373_v19 = vsel %vm582_vm0, %v4706_v2, 0.0 }
 0x79c   : > { %2374 = vadd.xlane.f32.xlu0 %v2373_v19  ;;  %v3150_v19 = vld [vmem:[%s4946_s12 + $0x10] sm:$0xff] }
 0x79e   : > { %2625 = vmatpush.bf16.msra.mxu2 %v3150_v19 }
 0x7c9   : > { %v2345_v1 = vpop.f32.mrf.mxu3 }
 0x7ca   : > { %v2346_v31 = vadd.f32 %v3301_v14, %v2345_v1 }
 0x7cc   : > { %v4711_v8 = vadd.f32 %v3685_v17, %v2346_v31  ;;  %v3149_v31 = vld [vmem:[%s4946_s12 + $0x8] sm:$0xff] }
 0x7cd   : > { %2626 = vmatpush.bf16.msra.mxu2 %v3149_v31 }
 0x7ce   : > { %v2376_v4 = vsel %vm582_vm0, %v4711_v8, 0.0 }
 0x7cf   : > { %2377 = vadd.xlane.f32.xlu1 %v2376_v4 }
 0x7d1   : > { %v2347_v61 = vpop.f32.mrf.mxu3 }
 0x7d2   : > { %v2348_v27 = vadd.f32 %v3301_v14, %v2347_v61 }
 0x7d4   : > { %v4716_v40 = vadd.f32 %v3683_v16, %v2348_v27  ;;  %v3148_v27 = vld [vmem:[%s4946_s12] sm:$0xff] }
 0x7d5   : > { %2627 = vmatpush.bf16.msra.mxu2 %v3148_v27 }
 0x7d6   : > { %v2379_v10 = vsel %vm582_vm0, %v4716_v40, 0.0 }
 0x7d7   : > { %2380 = vadd.xlane.f32.xlu2 %v2379_v10 }
 0x7d9   : > { %v2350_v63 = vpop.f32.mrf.mxu3 }
 0x7da   : > { %v2351_v56 = vadd.f32 %v3301_v14, %v2350_v63 }
 0x7dc   : > { %v4721_v49 = vadd.f32 %v3647_v3, %v2351_v56 }
 0x7de   : > { %v2382_v17 = vsel %vm582_vm0, %v4721_v49, 0.0 }
 0x7df   : > { %2383 = vadd.xlane.f32.xlu0 %v2382_v17 }
 0x7e1   : > { %v2352_v25 = vpop.f32.mrf.mxu3 }
 0x7e2   : > { %v2353_v42 = vadd.f32 %v3301_v14, %v2352_v25 }
 0x7e4   : > { %v4726_v59 = vadd.f32 %v3664_v9, %v2353_v42 }
 0x7e6   : > { %v2385_v16 = vsel %vm582_vm0, %v4726_v59, 0.0 }
 0x7e7   : > { %2386 = vadd.xlane.f32.xlu1 %v2385_v16 }
 0x7e9   : > { %v2355_v33 = vpop.f32.mrf.mxu3 }
 0x7ea   : > { %v2356_v44 = vadd.f32 %v3301_v14, %v2355_v33 }
 0x7ec   : > { %v4731_v28 = vadd.f32 %v3651_v5, %v2356_v44 }
 0x7ee   : > { %v2388_v3 = vsel %vm582_vm0, %v4731_v28, 0.0 }
 0x7ef   : > { %2389 = vadd.xlane.f32.xlu1 %v2388_v3 }
 0x7f1   : > { %v2357_v9 = vpop.f32.mrf.mxu3 }
 0x7f2   : > { %v2358_v47 = vadd.f32 %v3301_v14, %v2357_v9 }
 0x7f4   : > { %v4744_v41 = vadd.f32 %v3669_v11, %v2358_v47 }
 0x7f6   : > { %v2391_v57 = vsel %vm582_vm0, %v4744_v41, 0.0 }
 0x807   : > { %v2372_v37 = vpop.xlane.xlu2 %2371 }
 0x808   : > { %v2394_v29 = vmul.f32 %v2372_v37, %v3691_v26 }
 0x80a   : > { %v4737_v15 = vsub.f32 %v4701_v52, %v2394_v29 }
 0x80c   : > { %v2410_v22 = vmul.f32 %v4737_v15, %v4737_v15 }
 0x80e   : > { %v2418_v39 = vsel %vm582_vm0, %v2410_v22, 0.0 }
 0x80f   : > { %v2375_v53 = vpop.xlane.xlu0 %2374  ;;  %2419 = vadd.xlane.f32.xlu2 %v2418_v39 }
 0x810   : > { %v2395_v5 = vmul.f32 %v2375_v53, %v3691_v26 }
 0x812   : > { %v4747_v20 = vsub.f32 %v4706_v2, %v2395_v5 }
 0x814   : > { %v2411_v38 = vmul.f32 %v4747_v20, %v4747_v20 }
 0x816   : > { %v2421_v36 = vsel %vm582_vm0, %v2411_v38, 0.0 }
 0x817   : > { %2422 = vadd.xlane.f32.xlu0 %v2421_v36  ;;  %2392 = vadd.xlane.f32.xlu2 %v2391_v57  ;;  %v4813_v57 = vld [vmem:[%s4944_s10] ss:$0 sm:$0xff] }
 0x842   : > { %v2378_v54 = vpop.xlane.xlu1 %2377 }
 0x843   : > { %v2396_v12 = vmul.f32 %v2378_v54, %v3691_v26 }
 0x845   : > { %v4756_v21 = vsub.f32 %v4711_v8, %v2396_v12 }
 0x847   : > { %v2412_v11 = vmul.f32 %v4756_v21, %v4756_v21 }
 0x849   : > { %v2424_v32 = vsel %vm582_vm0, %v2412_v11, 0.0 }
 0x84a   : > { %2425 = vadd.xlane.f32.xlu0 %v2424_v32  ;;  %v2381_v0 = vpop.xlane.xlu2 %2380  ;;  %v4819_v32 = vld [vmem:[%s4945_s11] ss:$0 sm:$0xff] }
 0x84b   : > { %v2397_v46 = vmul.f32 %v2381_v0, %v3691_v26 }
 0x84d   : > { %v4763_v24 = vsub.f32 %v4716_v40, %v2397_v46 }
 0x84f   : > { %v2413_v7 = vmul.f32 %v4763_v24, %v4763_v24 }
 0x851   : > { %v2427_v23 = vsel %vm582_vm0, %v2413_v7, 0.0 }
 0x852   : > { %v2384_v18 = vpop.xlane.xlu0 %2383  ;;  %2428 = vadd.xlane.f32.xlu1 %v2427_v23 }
 0x853   : > { %v2398_v51 = vmul.f32 %v2384_v18, %v3691_v26 }
 0x855   : > { %v4770_v50 = vsub.f32 %v4721_v49, %v2398_v51 }
 0x857   : > { %v2414_v34 = vmul.f32 %v4770_v50, %v4770_v50 }
 0x859   : > { %v2430_v13 = vsel %vm582_vm0, %v2414_v34, 0.0 }
 0x85a   : > { %v2387_v55 = vpop.xlane.xlu1 %2386  ;;  %2431 = vadd.xlane.f32.xlu2 %v2430_v13 }
 0x85b   : > { %v2399_v48 = vmul.f32 %v2387_v55, %v3691_v26 }
 0x85d   : > { %v4777_v60 = vsub.f32 %v4726_v59, %v2399_v48 }
 0x85f   : > { %v2415_v45 = vmul.f32 %v4777_v60, %v4777_v60 }
 0x861   : > { %v2433_v30 = vsel %vm582_vm0, %v2415_v45, 0.0 }
 0x862   : > { %v2390_v14 = vpop.xlane.xlu1 %2389  ;;  %2434 = vadd.xlane.f32.xlu0 %v2433_v30 }
 0x863   : > { %v2400_v43 = vmul.f32 %v2390_v14, %v3691_v26 }
 0x865   : > { %v4784_v6 = vsub.f32 %v4731_v28, %v2400_v43 }
 0x867   : > { %v2416_v62 = vmul.f32 %v4784_v6, %v4784_v6 }
 0x869   : > { %v2436_v58 = vsel %vm582_vm0, %v2416_v62, 0.0 }
 0x86a   : > { %2437 = vadd.xlane.f32.xlu1 %v2436_v58 }
 0x882   : > { %v2420_v1 = vpop.xlane.xlu2 %2419 }
 0x883   : > { %v2442_v4 = vmul.f32 %v2420_v1, %v3691_v26 }
 0x885   : > { %v2450_v61 = vadd.f32 1e-05, %v2442_v4 }
 0x887   : > { %3468 = vrsqrt.f32 %v2450_v61  ;;  %vm2464_vm11 = vweird.f32 %v2450_v61 }
 0x88a   : > { %v2423_v10 = vpop.xlane.xlu0 %2422  ;;  %v2393_v63 = vpop.xlane.xlu2 %2392 }
 0x88b   : > { %v2443_v56 = vmul.f32 %v2423_v10, %v3691_v26  ;;  %v2401_v17 = vmul.f32 %v2393_v63, %v3691_v26 }
 0x88d   : > { %v3469_v25 = vpop.eup %3468  ;;  %v2451_v42 = vadd.f32 1e-05, %v2443_v56  ;;  %v4805_v16 = vsub.f32 %v4744_v41, %v2401_v17 }
 0x88e   : > { %v2459_v33 = vmul.f32 %v3469_v25, %v2450_v61  ;;  %vm2465_vm10 = vweird.f32 %v3469_v25 }
 0x88f   : > { %3470 = vrsqrt.f32 %v2451_v42  ;;  %v2417_v44 = vmul.f32 %v4805_v16, %v4805_v16  ;;  %vm2466_vm12 = vmor %vm2464_vm11, %vm2465_vm10  ;;  %vm2474_vm14 = vweird.f32 %v2451_v42 }
 0x890   : > { %v2460_v3 = vmul.f32 %v3469_v25, %v2459_v33 }
 0x891   : > { %v2439_v37 = vsel %vm582_vm0, %v2417_v44, 0.0 }
 0x892   : > { %v2461_v29 = vmul.f32 0.5, %v2460_v3  ;;  %2440 = vadd.xlane.f32.xlu2 %v2439_v37 }
 0x894   : > { %v2462_v9 = vsub.f32 1.5, %v2461_v29 }
 0x895   : > { %v3471_v22 = vpop.eup %3470 }
 0x896   : > { %v2463_v47 = vmul.f32 %v3469_v25, %v2462_v9  ;;  %v2469_v39 = vmul.f32 %v3471_v22, %v2451_v42  ;;  %vm2475_vm13 = vweird.f32 %v3471_v22 }
 0x897   : > { %vm2476_vm15 = vmor %vm2474_vm14, %vm2475_vm13 }
 0x898   : > { %v2470_v53 = vmul.f32 %v3471_v22, %v2469_v39  ;;  %v2467_v5 = vsel %vm2466_vm12, %v3469_v25, %v2463_v47 }
 0x899   : > { %v2538_v54 = vmul.f32 %v2467_v5, %v4737_v15 }
 0x89a   : > { %v2471_v38 = vmul.f32 0.5, %v2470_v53 }
 0x89b   : > { %v2549_v0 = vmul.f32 %v4813_v57, %v2538_v54 }
 0x89c   : > { %v2472_v36 = vsub.f32 1.5, %v2471_v38 }
 0x89d   : > { %v2560_v23 = vadd.f32 %v4819_v32, %v2549_v0 }
 0x89e   : > { %v2473_v12 = vmul.f32 %v3471_v22, %v2472_v36 }
 0x8a0   : > { %v2477_v11 = vsel %vm2476_vm15, %v3471_v22, %v2473_v12 }
 0x8a1   : > { %v2539_v46 = vmul.f32 %v2477_v11, %v4747_v20 }
 0x8a3   : > { %v2550_v7 = vmul.f32 %v4813_v57, %v2539_v46 }
 0x8a5   : > { %v2561_v18 = vadd.f32 %v4819_v32, %v2550_v7 }
 0x8a7   : > { %v2568_v15 = vpack.c.bf16 %v2561_v18, %v2560_v23 }
 0x8a9   : > { %3088 = vmatmul.msk.bf16.vlgmr.msra.gmra.mxu2 %vm582_vm0, %v2568_v15 }
 0x8bd   : > { %v2426_v51 = vpop.xlane.xlu0 %2425 }
 0x8be   : > { %v2444_v34 = vmul.f32 %v2426_v51, %v3691_v26 }
 0x8c0   : > { %v2452_v13 = vadd.f32 1e-05, %v2444_v34 }
 0x8c2   : > { %3472 = vrsqrt.f32 %v2452_v13  ;;  %vm2484_vm2 = vweird.f32 %v2452_v13 }
 0x8c5   : > { %v2429_v55 = vpop.xlane.xlu1 %2428 }
 0x8c6   : > { %v2445_v48 = vmul.f32 %v2429_v55, %v3691_v26 }
 0x8c8   : > { %v3473_v45 = vpop.eup %3472  ;;  %v2453_v30 = vadd.f32 1e-05, %v2445_v48 }
 0x8c9   : > { %v2479_v20 = vmul.f32 %v3473_v45, %v2452_v13  ;;  %vm2485_vm1 = vweird.f32 %v3473_v45 }
 0x8ca   : > { %3474 = vrsqrt.f32 %v2453_v30  ;;  %vm2486_vm3 = vmor %vm2484_vm2, %vm2485_vm1  ;;  %vm2494_vm5 = vweird.f32 %v2453_v30 }
 0x8cb   : > { %v2480_v14 = vmul.f32 %v3473_v45, %v2479_v20 }
 0x8cd   : > { %v2481_v43 = vmul.f32 0.5, %v2480_v14  ;;  %v2432_v62 = vpop.xlane.xlu2 %2431 }
 0x8ce   : > { %v2446_v58 = vmul.f32 %v2432_v62, %v3691_v26 }
 0x8cf   : > { %v2482_v35 = vsub.f32 1.5, %v2481_v43 }
 0x8d0   : > { %v3475_v19 = vpop.eup %3474  ;;  %v2454_v1 = vadd.f32 1e-05, %v2446_v58 }
 0x8d1   : > { %v2483_v31 = vmul.f32 %v3473_v45, %v2482_v35  ;;  %v2489_v4 = vmul.f32 %v3475_v19, %v2453_v30  ;;  %vm2495_vm4 = vweird.f32 %v3475_v19 }
 0x8d2   : > { %3476 = vrsqrt.f32 %v2454_v1  ;;  %vm2496_vm6 = vmor %vm2494_vm5, %vm2495_vm4  ;;  %vm2504_vm9 = vweird.f32 %v2454_v1 }
 0x8d3   : > { %v2490_v61 = vmul.f32 %v3475_v19, %v2489_v4  ;;  %v2487_v27 = vsel %vm2486_vm3, %v3473_v45, %v2483_v31 }
 0x8d4   : > { %v2540_v42 = vmul.f32 %v2487_v27, %v4756_v21 }
 0x8d5   : > { %v2491_v10 = vmul.f32 0.5, %v2490_v61  ;;  %v2435_v63 = vpop.xlane.xlu0 %2434  ;;  %v3159_v61 = vld [vmem:[%s4948_s14 + $0x38] sm:$0xff] }
 0x8d6   : > { %v2447_v56 = vmul.f32 %v2435_v63, %v3691_v26  ;;  %v2551_v22 = vmul.f32 %v4813_v57, %v2540_v42  ;;  %2793 = vmatpush.bf16.msrb.mxu0 %v3159_v61  ;;  %v3157_v42 = vld [vmem:[%s4948_s14 + $0x28] sm:$0xff] }
 0x8d7   : > { %v2492_v17 = vsub.f32 1.5, %v2491_v10 }
 0x8d8   : > { %v3477_v25 = vpop.eup %3476  ;;  %v2455_v33 = vadd.f32 1e-05, %v2447_v56  ;;  %v2562_v38 = vadd.f32 %v4819_v32, %v2551_v22  ;;  %v3155_v22 = vld [vmem:[%s4948_s14 + $0x18] sm:$0xff] }
 0x8d9   : > { %v2493_v44 = vmul.f32 %v3475_v19, %v2492_v17  ;;  %v2499_v3 = vmul.f32 %v3477_v25, %v2454_v1  ;;  %vm2505_vm7 = vweird.f32 %v3477_v25 }
 0x8da   : > { %3478 = vrsqrt.f32 %v2455_v33  ;;  %vm2506_vm10 = vmor %vm2504_vm9, %vm2505_vm7  ;;  %vm2514_vm12 = vweird.f32 %v2455_v33 }
 0x8db   : > { %v2497_v37 = vsel %vm2496_vm6, %v3475_v19, %v2493_v44  ;;  %v2500_v29 = vmul.f32 %v3477_v25, %v2499_v3 }
 0x8dc   : > { %v2541_v9 = vmul.f32 %v2497_v37, %v4763_v24  ;;  %v3156_v37 = vld [vmem:[%s4948_s14 + $0x20] sm:$0xff] }
 0x8dd   : > { %v2501_v47 = vmul.f32 0.5, %v2500_v29  ;;  %v2438_v34 = vpop.xlane.xlu1 %2437 }
 0x8de   : > { %v2552_v39 = vmul.f32 %v4813_v57, %v2541_v9  ;;  %v2448_v55 = vmul.f32 %v2438_v34, %v3691_v26 }
 0x8df   : > { %v2502_v53 = vsub.f32 1.5, %v2501_v47 }
 0x8e0   : > { %v3479_v5 = vpop.eup %3478  ;;  %v2563_v21 = vadd.f32 %v4819_v32, %v2552_v39  ;;  %v2456_v20 = vadd.f32 1e-05, %v2448_v55 }
 0x8e1   : > { %v2503_v36 = vmul.f32 %v3477_v25, %v2502_v53  ;;  %v2509_v54 = vmul.f32 %v3479_v5, %v2455_v33  ;;  %vm2515_vm11 = vweird.f32 %v3479_v5  ;;  %v3152_v53 = vld [vmem:[%s4948_s14] sm:$0xff] }
 0x8e2   : > { %v2569_v12 = vpack.c.bf16 %v2563_v21, %v2562_v38  ;;  %vm2516_vm13 = vmor %vm2514_vm12, %vm2515_vm11  ;;  %3480 = vrsqrt.f32 %v2456_v20  ;;  %vm2524_vm15 = vweird.f32 %v2456_v20 }
 0x8e3   : > { %v2510_v11 = vmul.f32 %v3479_v5, %v2509_v54  ;;  %v2507_v24 = vsel %vm2506_vm10, %v3477_v25, %v2503_v36 }
 0x8e4   : > { %3089 = vmatmul.msk.bf16.gmra.mxu2 %vm582_vm0, %v2569_v12  ;;  %v2542_v7 = vmul.f32 %v2507_v24, %v4770_v50 }
 0x8e5   : > { %v2511_v0 = vmul.f32 0.5, %v2510_v11 }
 0x8e6   : > { %v2553_v51 = vmul.f32 %v4813_v57, %v2542_v7 }
 0x8e7   : > { %v2512_v46 = vsub.f32 1.5, %v2511_v0 }
 0x8e8   : > { %v2564_v48 = vadd.f32 %v4819_v32, %v2553_v51  ;;  %v3481_v50 = vpop.eup %3480 }
 0x8e9   : > { %v2513_v23 = vmul.f32 %v3479_v5, %v2512_v46  ;;  %v2519_v14 = vmul.f32 %v3481_v50, %v2456_v20  ;;  %vm2525_vm14 = vweird.f32 %v3481_v50 }
 0x8ea   : > { %vm2526_vm1 = vmor %vm2524_vm15, %vm2525_vm14 }
 0x8eb   : > { %v2517_v18 = vsel %vm2516_vm13, %v3479_v5, %v2513_v23  ;;  %v2520_v43 = vmul.f32 %v3481_v50, %v2519_v14 }
 0x8ec   : > { %v2543_v15 = vmul.f32 %v2517_v18, %v4777_v60 }
 0x8ed   : > { %v2521_v35 = vmul.f32 0.5, %v2520_v43 }
 0x8ee   : > { %v2554_v13 = vmul.f32 %v4813_v57, %v2543_v15 }
 0x8ef   : > { %v2522_v19 = vsub.f32 1.5, %v2521_v35 }
 0x8f0   : > { %v2565_v45 = vadd.f32 %v4819_v32, %v2554_v13 }
 0x8f1   : > { %v2523_v31 = vmul.f32 %v3481_v50, %v2522_v19 }
 0x8f2   : > { %v2570_v30 = vpack.c.bf16 %v2565_v45, %v2564_v48 }
 0x8f3   : > { %v2527_v10 = vsel %vm2526_vm1, %v3481_v50, %v2523_v31 }
 0x8f4   : > { %3090 = vmatmul.msk.bf16.gmra.mxu2 %vm582_vm0, %v2570_v30  ;;  %v2544_v17 = vmul.f32 %v2527_v10, %v4784_v6 }
 0x8f6   : > { %v2555_v3 = vmul.f32 %v4813_v57, %v2544_v17 }
 0x8f8   : > { %v2566_v6 = vadd.f32 %v4819_v32, %v2555_v3 }
 0x905   : > { %v2441_v60 = vpop.xlane.xlu2 %2440 }
 0x906   : > { %v2449_v62 = vmul.f32 %v2441_v60, %v3691_v26  ;;  %v3158_v26 = vld [vmem:[%s4948_s14 + $0x30] sm:$0xff] }
 0x907   : > { %2794 = vmatpush.bf16.msrb.mxu0 %v3158_v26 }
 0x908   : > { %v2457_v58 = vadd.f32 1e-05, %v2449_v62 }
 0x90a   : > { %3482 = vrsqrt.f32 %v2457_v58  ;;  %vm2534_vm3 = vweird.f32 %v2457_v58 }
 0x90b   : > { %2795 = vmatpush.bf16.msrb.mxu0 %v3157_v42 }
 0x90f   : > { %2796 = vmatpush.bf16.msrb.mxu0 %v3156_v37 }
 0x910   : > { %v3483_v1 = vpop.eup %3482 }
 0x911   : > { %v2529_v4 = vmul.f32 %v3483_v1, %v2457_v58  ;;  %vm2535_vm2 = vweird.f32 %v3483_v1 }
 0x912   : > { %vm2536_vm4 = vmor %vm2534_vm3, %vm2535_vm2 }
 0x913   : > { %v2530_v27 = vmul.f32 %v3483_v1, %v2529_v4  ;;  %2797 = vmatpush.bf16.msrb.mxu0 %v3155_v22 }
 0x915   : > { %v2531_v63 = vmul.f32 0.5, %v2530_v27 }
 0x917   : > { %v2532_v56 = vsub.f32 1.5, %v2531_v63 }
 0x919   : > { %v2533_v25 = vmul.f32 %v3483_v1, %v2532_v56 }
 0x91b   : > { %v2537_v33 = vsel %vm2536_vm4, %v3483_v1, %v2533_v25 }
 0x91c   : > { %v2545_v44 = vmul.f32 %v2537_v33, %v4805_v16  ;;  %v3154_v16 = vld [vmem:[%s4948_s14 + $0x10] sm:$0xff] }
 0x91d   : > { %2798 = vmatpush.bf16.msrb.mxu0 %v3154_v16 }
 0x91e   : > { %v2556_v29 = vmul.f32 %v4813_v57, %v2545_v44  ;;  %v4875_v57 = vld [vmem:[%s4947_s13] ss:$0 sm:$0xff] }
 0x920   : > { %v2567_v9 = vadd.f32 %v4819_v32, %v2556_v29  ;;  %v3153_v32 = vld [vmem:[%s4948_s14 + $0x8] sm:$0xff] }
 0x921   : > { %2799 = vmatpush.bf16.msrb.mxu0 %v3153_v32 }
 0x922   : > { %v2571_v47 = vpack.c.bf16 %v2567_v9, %v2566_v6 }
 0x924   : > { %3091 = vmatmul.msk.bf16.gmra.mxu2 %vm582_vm0, %v2571_v47 }
 0x925   : > { %2800 = vmatpush.bf16.msrb.mxu0 %v3152_v53 }
 0x92c   : > { %v2629_v39 = vpop.f32.mrf.mxu2 }
 0x92d   : > { %v2630_v5 = vadd.f32 %v4875_v57, %v2629_v39 }
 0x92f   : > { %v2649_v38 = vmul.f32 %v2630_v5, %v2630_v5 }
 0x931   : > { %v2657_v21 = vmul.f32 %v2649_v38, %v2630_v5 }
 0x933   : > { %v2665_v36 = vmul.f32 0.044715, %v2657_v21 }
 0x934   : > { %v2631_v54 = vpop.f32.mrf.mxu2 }
 0x935   : > { %v2673_v12 = vadd.f32 %v2665_v36, %v2630_v5  ;;  %v2632_v11 = vadd.f32 %v4875_v57, %v2631_v54 }
 0x937   : > { %v2681_v24 = vmul.f32 0.7978846, %v2673_v12  ;;  %v2650_v0 = vmul.f32 %v2632_v11, %v2632_v11 }
 0x939   : > { %v2658_v46 = vmul.f32 %v2650_v0, %v2632_v11  ;;  %3484 = vtanh.f32 %v2681_v24 }
 0x93b   : > { %v2666_v7 = vmul.f32 0.044715, %v2658_v46 }
 0x93d   : > { %v2674_v23 = vadd.f32 %v2666_v7, %v2632_v11 }
 0x93f   : > { %v2682_v18 = vmul.f32 0.7978846, %v2674_v23  ;;  %v3485_v15 = vpop.eup %3484 }
 0x940   : > { %v2697_v51 = vadd.f32 1.0, %v3485_v15 }
 0x941   : > { %3486 = vtanh.f32 %v2682_v18 }
 0x942   : > { %v2705_v13 = vmul.f32 0.5, %v2697_v51 }
 0x944   : > { %v2713_v45 = vmul.f32 %v2705_v13, %v2630_v5 }
 0x947   : > { %v3487_v34 = vpop.eup %3486 }
 0x948   : > { %v2698_v55 = vadd.f32 1.0, %v3487_v34 }
 0x94a   : > { %v2706_v48 = vmul.f32 0.5, %v2698_v55 }
 0x94c   : > { %v2714_v30 = vmul.f32 %v2706_v48, %v2632_v11 }
 0x94e   : > { %v2721_v20 = vpack.c.bf16 %v2714_v30, %v2713_v45 }
 0x950   : > { %2801 = vmatmul.bf16.vlgmr.msrb.gmra.mxu0 %v2721_v20 }
 0x967   : > { %v2634_v50 = vpop.f32.mrf.mxu2 }
 0x968   : > { %v2635_v14 = vadd.f32 %v4875_v57, %v2634_v50 }
 0x96a   : > { %v2651_v43 = vmul.f32 %v2635_v14, %v2635_v14 }
 0x96c   : > { %v2659_v60 = vmul.f32 %v2651_v43, %v2635_v14 }
 0x96e   : > { %v2667_v62 = vmul.f32 0.044715, %v2659_v60 }
 0x96f   : > { %v2636_v58 = vpop.f32.mrf.mxu2 }
 0x970   : > { %v2675_v35 = vadd.f32 %v2667_v62, %v2635_v14  ;;  %v2637_v19 = vadd.f32 %v4875_v57, %v2636_v58 }
 0x972   : > { %v2652_v1 = vmul.f32 %v2637_v19, %v2637_v19  ;;  %v2683_v31 = vmul.f32 0.7978846, %v2675_v35 }
 0x974   : > { %v2660_v4 = vmul.f32 %v2652_v1, %v2637_v19  ;;  %3488 = vtanh.f32 %v2683_v31 }
 0x976   : > { %v2668_v61 = vmul.f32 0.044715, %v2660_v4 }
 0x977   : > { %v2639_v27 = vpop.f32.mrf.mxu2 }
 0x978   : > { %v2676_v10 = vadd.f32 %v2668_v61, %v2637_v19  ;;  %v2640_v63 = vadd.f32 %v4875_v57, %v2639_v27 }
 0x97a   : > { %v2653_v26 = vmul.f32 %v2640_v63, %v2640_v63  ;;  %v2684_v56 = vmul.f32 0.7978846, %v2676_v10  ;;  %v3489_v17 = vpop.eup %3488 }
 0x97b   : > { %v2699_v44 = vadd.f32 1.0, %v3489_v17 }
 0x97c   : > { %v2661_v25 = vmul.f32 %v2653_v26, %v2640_v63  ;;  %3490 = vtanh.f32 %v2684_v56 }
 0x97d   : > { %v2707_v47 = vmul.f32 0.5, %v2699_v44 }
 0x97e   : > { %v2669_v42 = vmul.f32 0.044715, %v2661_v25 }
 0x97f   : > { %v2641_v33 = vpop.f32.mrf.mxu2  ;;  %v2715_v53 = vmul.f32 %v2707_v47, %v2635_v14 }
 0x980   : > { %v2677_v3 = vadd.f32 %v2669_v42, %v2640_v63  ;;  %v2642_v37 = vadd.f32 %v4875_v57, %v2641_v33 }
 0x982   : > { %v3491_v29 = vpop.eup %3490  ;;  %v2685_v6 = vmul.f32 0.7978846, %v2677_v3  ;;  %v2654_v9 = vmul.f32 %v2642_v37, %v2642_v37 }
 0x983   : > { %v2700_v22 = vadd.f32 1.0, %v3491_v29 }
 0x984   : > { %v2662_v16 = vmul.f32 %v2654_v9, %v2642_v37  ;;  %3492 = vtanh.f32 %v2685_v6 }
 0x985   : > { %v2708_v32 = vmul.f32 0.5, %v2700_v22 }
 0x986   : > { %v2670_v39 = vmul.f32 0.044715, %v2662_v16 }
 0x987   : > { %v2716_v5 = vmul.f32 %v2708_v32, %v2637_v19 }
 0x988   : > { %v2678_v38 = vadd.f32 %v2670_v39, %v2642_v37 }
 0x989   : > { %v2722_v21 = vpack.c.bf16 %v2716_v5, %v2715_v53 }
 0x98a   : > { %v2686_v36 = vmul.f32 0.7978846, %v2678_v38  ;;  %v3493_v54 = vpop.eup %3492 }
 0x98b   : > { %2806 = vmatmul.bf16.gmra.mxu0 %v2722_v21  ;;  %v2701_v12 = vadd.f32 1.0, %v3493_v54 }
 0x98c   : > { %3494 = vtanh.f32 %v2686_v36 }
 0x98d   : > { %v2709_v0 = vmul.f32 0.5, %v2701_v12 }
 0x98f   : > { %v2717_v7 = vmul.f32 %v2709_v0, %v2640_v63 }
 0x992   : > { %v3495_v11 = vpop.eup %3494 }
 0x993   : > { %v2702_v24 = vadd.f32 1.0, %v3495_v11 }
 0x995   : > { %v2710_v46 = vmul.f32 0.5, %v2702_v24 }
 0x997   : > { %v2718_v23 = vmul.f32 %v2710_v46, %v2642_v37 }
 0x999   : > { %v2723_v18 = vpack.c.bf16 %v2718_v23, %v2717_v7 }
 0x99b   : > { %2811 = vmatmul.bf16.gmra.mxu0 %v2723_v18 }
 0x9a7   : > { %v2644_v15 = vpop.f32.mrf.mxu2 }
 0x9a8   : > { %v2645_v51 = vadd.f32 %v4875_v57, %v2644_v15 }
 0x9aa   : > { %v2655_v34 = vmul.f32 %v2645_v51, %v2645_v51 }
 0x9ac   : > { %v2663_v13 = vmul.f32 %v2655_v34, %v2645_v51 }
 0x9ae   : > { %v2671_v55 = vmul.f32 0.044715, %v2663_v13 }
 0x9af   : > { %v2646_v48 = vpop.f32.mrf.mxu2 }
 0x9b0   : > { %v2679_v45 = vadd.f32 %v2671_v55, %v2645_v51  ;;  %v2647_v30 = vadd.f32 %v4875_v57, %v2646_v48  ;;  %v3305_v57 = vld [vmem:[%s4949_s15] ss:$0 sm:$0xff] }
 0x9b2   : > { %v2687_v20 = vmul.f32 0.7978846, %v2679_v45  ;;  %v2656_v50 = vmul.f32 %v2647_v30, %v2647_v30 }
 0x9b4   : > { %v2664_v14 = vmul.f32 %v2656_v50, %v2647_v30  ;;  %3496 = vtanh.f32 %v2687_v20 }
 0x9b6   : > { %v2672_v43 = vmul.f32 0.044715, %v2664_v14 }
 0x9b8   : > { %v2680_v60 = vadd.f32 %v2672_v43, %v2647_v30 }
 0x9ba   : > { %v2688_v62 = vmul.f32 0.7978846, %v2680_v60  ;;  %v3497_v58 = vpop.eup %3496 }
 0x9bb   : > { %v2703_v35 = vadd.f32 1.0, %v3497_v58 }
 0x9bc   : > { %3498 = vtanh.f32 %v2688_v62 }
 0x9bd   : > { %v2711_v31 = vmul.f32 0.5, %v2703_v35 }
 0x9bf   : > { %v2719_v61 = vmul.f32 %v2711_v31, %v2645_v51 }
 0x9c2   : > { %v3499_v19 = vpop.eup %3498 }
 0x9c3   : > { %v2704_v1 = vadd.f32 1.0, %v3499_v19 }
 0x9c5   : > { %v2712_v4 = vmul.f32 0.5, %v2704_v1 }
 0x9c7   : > { %v2720_v27 = vmul.f32 %v2712_v4, %v2647_v30 }
 0x9c9   : > { %v2724_v10 = vpack.c.bf16 %v2720_v27, %v2719_v61 }
 0x9cb   : > { %2816 = vmatmul.bf16.gmra.mxu0 %v2724_v10 }
 0x9cd   : > { %v2802_v63 = vpop.f32.mrf.mxu0 }
 0x9ce   : > { %v2803_v26 = vadd.f32 %v3305_v57, %v2802_v63 }
 0x9d0   : > { %v2822_v56 = vadd.f32 %v2803_v26, %v4701_v52 }
 0x9d2   : > { %v2830_v17 = vpack.c.bf16 %v2822_v56, %v2822_v56 }
 0x9d4   : > { %2839 = vst.msk [vmem:[%s4900_s27] sm:$0xf] %vm877_vm8, %v2830_v17 }
 0x9d5   : > { %v2804_v25 = vpop.f32.mrf.mxu0 }
 0x9d6   : > { %v2805_v42 = vadd.f32 %v3305_v57, %v2804_v25 }
 0x9d8   : > { %v2823_v33 = vadd.f32 %v2805_v42, %v4706_v2 }
 0x9da   : > { %v2831_v44 = vpack.c.bf16 %v2823_v33, %v2823_v33 }
 0x9dc   : > { %2840 = vst.msk [vmem:[%s4900_s27 + $0x4] sm:$0xf] %vm877_vm8, %v2831_v44 }
 0xa08   : > { %v2807_v52 = vpop.f32.mrf.mxu0 }
 0xa09   : > { %v2808_v3 = vadd.f32 %v3305_v57, %v2807_v52 }
 0xa0b   : > { %v2824_v37 = vadd.f32 %v2808_v3, %v4711_v8 }
 0xa0d   : > { %v2832_v29 = vpack.c.bf16 %v2824_v37, %v2824_v37 }
 0xa0f   : > { %2841 = vst.msk [vmem:[%s4900_s27 + $0x8] sm:$0xf] %vm877_vm8, %v2832_v29 }
 0xa10   : > { %v2809_v6 = vpop.f32.mrf.mxu0 }
 0xa11   : > { %v2810_v9 = vadd.f32 %v3305_v57, %v2809_v6 }
 0xa13   : > { %v2825_v22 = vadd.f32 %v2810_v9, %v4716_v40 }
 0xa15   : > { %v2833_v47 = vpack.c.bf16 %v2825_v22, %v2825_v22 }
 0xa17   : > { %2842 = vst.msk [vmem:[%s4900_s27 + $0xc] sm:$0xf] %vm877_vm8, %v2833_v47 }
 0xa18   : > { %v2812_v2 = vpop.f32.mrf.mxu0 }
 0xa19   : > { %v2813_v16 = vadd.f32 %v3305_v57, %v2812_v2 }
 0xa1b   : > { %v2826_v32 = vadd.f32 %v2813_v16, %v4721_v49 }
 0xa1d   : > { %v2834_v39 = vpack.c.bf16 %v2826_v32, %v2826_v32 }
 0xa1f   : > { %2843 = vst.msk [vmem:[%s4900_s27 + $0x10] sm:$0xf] %vm877_vm8, %v2834_v39 }
 0xa20   : > { %v2814_v8 = vpop.f32.mrf.mxu0 }
 0xa21   : > { %v2815_v53 = vadd.f32 %v3305_v57, %v2814_v8 }
 0xa23   : > { %v2827_v5 = vadd.f32 %v2815_v53, %v4726_v59 }
 0xa25   : > { %v2835_v38 = vpack.c.bf16 %v2827_v5, %v2827_v5 }
 0xa27   : > { %2844 = vst.msk [vmem:[%s4900_s27 + $0x14] sm:$0xf] %vm877_vm8, %v2835_v38 }
 0xa48   : > { %v2817_v40 = vpop.f32.mrf.mxu0 }
 0xa49   : > { %v2818_v21 = vadd.f32 %v3305_v57, %v2817_v40 }
 0xa4b   : > { %v2828_v36 = vadd.f32 %v2818_v21, %v4731_v28 }
 0xa4d   : > { %v2836_v54 = vpack.c.bf16 %v2828_v36, %v2828_v36 }
 0xa4f   : > { %2845 = vst.msk [vmem:[%s4900_s27 + $0x18] sm:$0xf] %vm877_vm8, %v2836_v54 }
 0xa50   : > { %v2819_v12 = vpop.f32.mrf.mxu0 }
 0xa51   : > { %v2820_v49 = vadd.f32 %v3305_v57, %v2819_v12 }
 0xa53   : > { %v2829_v11 = vadd.f32 %v2820_v49, %v4744_v41 }
 0xa55   : > { %v2837_v24 = vpack.c.bf16 %v2829_v11, %v2829_v11 }
 0xa57   : > { %2846 = vst.msk [vmem:[%s4900_s27 + $0x1c] sm:$0xf] %vm877_vm8, %v2837_v24 }
 0xa58 PF: > { %s26_s23 = sadd.s32 1, %s3522_s23   ;;  %s4969_s21 = smov %s3518_s22 }
 0xa59   : > { %p23_p5 = scmp.ge.s32.totalorder %s26_s23, 4   ;;  %s4970_s22 = smov %s4972_s24 }
 0xa5b   :  { %25 = sbr.rel (!%p23_p5) target bundleno = 2 (0x2), region = 122 }

</bundles_post_ra>
